<compile_context>
chip_gen: v6e
topology: v6e:2x2x1
jax: 0.10.0
libtpu: 0.0.40
codegen_flags: <defaults>
</compile_context>

<pallas_src>
import functools
import math

import jax
import jax.numpy as jnp
from jax.experimental import pallas as pl
from jax.experimental.pallas import tpu as pltpu


_LEAKY_SLOPE = 0.2
_BN_EPS = 0.8          # nn.BatchNorm1d(out_feat, 0.8): second positional arg is eps
_TN = 128              # lane-dense output-feature tile width for the final layer
_HIDDEN = (128, 256, 512, 1024)


def _leaky_relu(x, slope=_LEAKY_SLOPE):
    return jnp.where(x > 0, x, slope * x)


def _linear(x_f32, w_ref, b_ref):
    # Weights are bf16 in VMEM; cast the activation to bf16 so the matmul hits
    # the native bf16 MXU path, accumulate in f32, then add the f32 bias.
    return jnp.dot(x_f32.astype(jnp.bfloat16), w_ref[...],
                   preferred_element_type=jnp.float32) + b_ref[...]


def _batch_norm(x, g_ref, be_ref, eps=_BN_EPS):
    # Training-mode BatchNorm1d: biased variance over the batch axis, computed
    # in a single pass (E[x^2] - E[x]^2) to halve the cross-sublane reductions.
    mean = jnp.mean(x, axis=0, keepdims=True)
    mean_sq = jnp.mean(x * x, axis=0, keepdims=True)
    var = jnp.maximum(mean_sq - mean * mean, 0.0)
    x_hat = (x - mean) * jax.lax.rsqrt(var + eps)
    return x_hat * g_ref[...] + be_ref[...]


def generator_kernel(
    z_ref,
    w1_ref, b1_ref,
    w2_ref, b2_ref, g2_ref, be2_ref,
    w3_ref, b3_ref, g3_ref, be3_ref,
    w4_ref, b4_ref, g4_ref, be4_ref,
    w5_ref, b5_ref,
    out_ref,
):
    """Fused Generator MLP; grid axis 0 tiles the final layer's out-features.

    Blocks 1-4 (the "prefix") are recomputed for every output tile: at small
    batch this is a handful of MFLOPs, hidden behind the w5-tile DMA, and it
    keeps the grid axis safe to mark "parallel" (no program_id==0 gated state),
    so v7x can shard tiles across both TensorCores.  The prefix weights have
    constant block indices, so they are DMA'd into VMEM only once per core.
    """
    h = _leaky_relu(_linear(z_ref[...], w1_ref, b1_ref))
    h = _leaky_relu(_batch_norm(_linear(h, w2_ref, b2_ref), g2_ref, be2_ref))
    h = _leaky_relu(_batch_norm(_linear(h, w3_ref, b3_ref), g3_ref, be3_ref))
    h = _leaky_relu(_batch_norm(_linear(h, w4_ref, b4_ref), g4_ref, be4_ref))
    # Final layer: only the current (1024, _TN) weight tile + (batch, _TN) out.
    out_ref[...] = jnp.tanh(_linear(h, w5_ref, b5_ref))


def _round_up(x, m):
    return (x + m - 1) // m * m


@functools.partial(jax.jit, static_argnames=("img_shape",))
def generator_forward(z, params, img_shape):
    """Runs the Pallas Generator kernel and reshapes to (B, *img_shape) NCHW."""
    batch, latent_dim = z.shape
    out_features = int(math.prod(img_shape))
    padded_out = _round_up(out_features, _TN)
    n_tiles = padded_out // _TN

    f32, bf16 = jnp.float32, jnp.bfloat16

    def w(name):  # weights -> bf16
        return params[name].astype(bf16)

    def p(name):  # biases / BN affine -> f32
        return params[name].astype(f32)

    # Pad the final layer to a multiple of the lane tile so output stores are
    # lane-dense (tanh(0)=0 in the padded columns; sliced off below).
    w5, b5 = w("w5"), p("b5")
    if padded_out != out_features:
        pad = padded_out - out_features
        w5 = jnp.pad(w5, ((0, 0), (0, pad)))
        b5 = jnp.pad(b5, ((0, 0), (0, pad)))

    flat_inputs = (
        z.astype(f32),
        w("w1"), p("b1"),
        w("w2"), p("b2"), p("g2"), p("be2"),
        w("w3"), p("b3"), p("g3"), p("be3"),
        w("w4"), p("b4"), p("g4"), p("be4"),
        w5, b5,
    )

    def resident(arr):
        # Full array resident in VMEM; constant block index -> fetched once.
        return pl.BlockSpec(arr.shape, lambda j: (0, 0))

    in_specs = [resident(a) for a in flat_inputs[:-2]] + [
        pl.BlockSpec((w5.shape[0], _TN), lambda j: (0, j)),   # streamed w5 tile
        pl.BlockSpec((1, _TN), lambda j: (0, j)),             # matching bias tile
    ]
    out_specs = pl.BlockSpec((batch, _TN), lambda j: (0, j))  # lane-dense output

    dims = list(zip((latent_dim,) + _HIDDEN, _HIDDEN + (padded_out,)))
    prefix_flops = 2 * batch * sum(fi * fo for fi, fo in dims[:-1])
    final_flops = 2 * batch * 1024 * padded_out
    flops = prefix_flops * n_tiles + final_flops
    transcendentals = batch * padded_out + n_tiles * sum(_HIDDEN[1:])
    bytes_accessed = (sum(int(a.size) * a.dtype.itemsize for a in flat_inputs)
                      + batch * padded_out * 4)

    img_flat = pl.pallas_call(
        generator_kernel,
        out_shape=jax.ShapeDtypeStruct((batch, padded_out), jnp.float32),
        grid_spec=pltpu.PrefetchScalarGridSpec(
            num_scalar_prefetch=0,
            grid=(n_tiles,),
            in_specs=in_specs,
            out_specs=out_specs,
        ),
        compiler_params=pltpu.CompilerParams(
            dimension_semantics=("parallel",),      # v7x megacore; no-op on v5e/v6e
            vmem_limit_bytes=32 << 20,              # <= 64 MiB -> valid on v7x
        ),
        cost_estimate=pl.CostEstimate(
            flops=int(flops),
            transcendentals=int(transcendentals),
            bytes_accessed=int(bytes_accessed),
        ),
    )(*flat_inputs)

    return img_flat[:, :out_features].reshape(batch, *img_shape)


def init_params(key, latent_dim, img_shape):
    """PyTorch-like uniform(-1/sqrt(fan_in), 1/sqrt(fan_in)) init.

    Weights are stored in bf16 (HBM-traffic / MXU-path optimization); biases
    and BatchNorm affine params (gamma=1, beta=0) stay f32.
    """
    out_features = int(math.prod(img_shape))
    dims = [(latent_dim, 128), (128, 256), (256, 512), (512, 1024),
            (1024, out_features)]
    params = {}
    keys = jax.random.split(key, 2 * len(dims))
    for idx, (fin, fout) in enumerate(dims):
        bound = 1.0 / math.sqrt(float(fin))
        w = jax.random.uniform(keys[2 * idx], (fin, fout), jnp.float32,
                               minval=-bound, maxval=bound)
        b = jax.random.uniform(keys[2 * idx + 1], (1, fout), jnp.float32,
                               minval=-bound, maxval=bound)
        params[f"w{idx + 1}"] = w.astype(jnp.bfloat16)
        params[f"b{idx + 1}"] = b
    for idx, feat in zip((2, 3, 4), (256, 512, 1024)):
        params[f"g{idx}"] = jnp.ones((1, feat), jnp.float32)
        params[f"be{idx}"] = jnp.zeros((1, feat), jnp.float32)
    return params


if __name__ == "__main__":
    latent_dim = 32
    img_shape = (1, 16, 16)   # (C, H, W) -> NCHW output (B, 1, 16, 16)
    batch = 8

    key = jax.random.PRNGKey(0)
    k_params, k_z = jax.random.split(key)

    params = init_params(k_params, latent_dim, img_shape)
    z = jax.random.normal(k_z, (batch, latent_dim), jnp.float32)

    img = generator_forward(z, params, img_shape)
    img = jax.block_until_ready(img)

    assert img.shape == (batch, *img_shape), img.shape
    assert bool(jnp.all(jnp.isfinite(img)))
    assert bool(jnp.all(jnp.abs(img) <= 1.0))  # tanh range

    print("KERNEL_OK")
</pallas_src>

<mosaic_0001>
module attributes {stable_mosaic.version = 11 : i64} {
  func.func @generator_kernel(%arg0: i32, %arg1: memref<8x32xf32, #tpu.memory_space<vmem>>, %arg2: memref<32x128xbf16, #tpu.memory_space<vmem>>, %arg3: memref<1x128xf32, #tpu.memory_space<vmem>>, %arg4: memref<128x256xbf16, #tpu.memory_space<vmem>>, %arg5: memref<1x256xf32, #tpu.memory_space<vmem>>, %arg6: memref<1x256xf32, #tpu.memory_space<vmem>>, %arg7: memref<1x256xf32, #tpu.memory_space<vmem>>, %arg8: memref<256x512xbf16, #tpu.memory_space<vmem>>, %arg9: memref<1x512xf32, #tpu.memory_space<vmem>>, %arg10: memref<1x512xf32, #tpu.memory_space<vmem>>, %arg11: memref<1x512xf32, #tpu.memory_space<vmem>>, %arg12: memref<512x1024xbf16, #tpu.memory_space<vmem>>, %arg13: memref<1x1024xf32, #tpu.memory_space<vmem>>, %arg14: memref<1x1024xf32, #tpu.memory_space<vmem>>, %arg15: memref<1x1024xf32, #tpu.memory_space<vmem>>, %arg16: memref<1024x128xbf16, #tpu.memory_space<vmem>>, %arg17: memref<1x128xf32, #tpu.memory_space<vmem>>, %arg18: memref<8x128xf32, #tpu.memory_space<vmem>>) attributes {dimension_semantics = [#tpu.dimension_semantics<parallel>], iteration_bounds = array<i64: 2>, scalar_prefetch = 0 : i64, scratch_operands = 0 : i64, tpu.core_type = #tpu.core_type<tc>, window_params = [{pipeline_mode = #tpu.pipeline_mode<synchronous>, transform_indices = @transform_0, window_bounds = array<i64: 8, 32>}, {pipeline_mode = #tpu.pipeline_mode<synchronous>, transform_indices = @transform_1, window_bounds = array<i64: 32, 128>}, {pipeline_mode = #tpu.pipeline_mode<synchronous>, transform_indices = @transform_2, window_bounds = array<i64: 1, 128>}, {pipeline_mode = #tpu.pipeline_mode<synchronous>, transform_indices = @transform_3, window_bounds = array<i64: 128, 256>}, {pipeline_mode = #tpu.pipeline_mode<synchronous>, transform_indices = @transform_4, window_bounds = array<i64: 1, 256>}, {pipeline_mode = #tpu.pipeline_mode<synchronous>, transform_indices = @transform_5, window_bounds = array<i64: 1, 256>}, {pipeline_mode = #tpu.pipeline_mode<synchronous>, transform_indices = @transform_6, window_bounds = array<i64: 1, 256>}, {pipeline_mode = #tpu.pipeline_mode<synchronous>, transform_indices = @transform_7, window_bounds = array<i64: 256, 512>}, {pipeline_mode = #tpu.pipeline_mode<synchronous>, transform_indices = @transform_8, window_bounds = array<i64: 1, 512>}, {pipeline_mode = #tpu.pipeline_mode<synchronous>, transform_indices = @transform_9, window_bounds = array<i64: 1, 512>}, {pipeline_mode = #tpu.pipeline_mode<synchronous>, transform_indices = @transform_10, window_bounds = array<i64: 1, 512>}, {pipeline_mode = #tpu.pipeline_mode<synchronous>, transform_indices = @transform_11, window_bounds = array<i64: 512, 1024>}, {pipeline_mode = #tpu.pipeline_mode<synchronous>, transform_indices = @transform_12, window_bounds = array<i64: 1, 1024>}, {pipeline_mode = #tpu.pipeline_mode<synchronous>, transform_indices = @transform_13, window_bounds = array<i64: 1, 1024>}, {pipeline_mode = #tpu.pipeline_mode<synchronous>, transform_indices = @transform_14, window_bounds = array<i64: 1, 1024>}, {transform_indices = @transform_15, window_bounds = array<i64: 1024, 128>}, {transform_indices = @transform_16, window_bounds = array<i64: 1, 128>}, {transform_indices = @transform_17, window_bounds = array<i64: 8, 128>}]} {
    %c0 = arith.constant 0 : index
    %c0_0 = arith.constant 0 : index
    %0 = vector.load %arg1[%c0, %c0_0] : memref<8x32xf32, #tpu.memory_space<vmem>>, vector<8x32xf32>
    %1 = arith.truncf %0 : vector<8x32xf32> to vector<8x32xbf16>
    %c0_1 = arith.constant 0 : index
    %c0_2 = arith.constant 0 : index
    %2 = vector.load %arg2[%c0_1, %c0_2] : memref<32x128xbf16, #tpu.memory_space<vmem>>, vector<32x128xbf16>
    %cst = arith.constant dense<0.000000e+00> : vector<8x128xf32>
    %3 = tpu.matmul %1, %2, %cst {dimension_numbers = #tpu.dot_dimension_numbers<[1], [0], [0], [1], [0, 0, 1, 1], [], []>} : vector<8x32xbf16>, vector<32x128xbf16>, vector<8x128xf32> -> vector<8x128xf32>
    %c0_3 = arith.constant 0 : index
    %c0_4 = arith.constant 0 : index
    %4 = vector.load %arg3[%c0_3, %c0_4] : memref<1x128xf32, #tpu.memory_space<vmem>>, vector<1x128xf32>
    %5 = vector.broadcast %4 : vector<1x128xf32> to vector<8x128xf32>
    %6 = arith.addf %3, %5 : vector<8x128xf32>
    %cst_5 = arith.constant 0.000000e+00 : f32
    %7 = vector.broadcast %cst_5 : f32 to vector<8x128xf32>
    %8 = arith.cmpf ogt, %6, %7 : vector<8x128xf32>
    %cst_6 = arith.constant 2.000000e-01 : f32
    %9 = vector.broadcast %cst_6 : f32 to vector<8x128xf32>
    %10 = arith.mulf %9, %6 : vector<8x128xf32>
    %11 = arith.select %8, %6, %10 : vector<8x128xi1>, vector<8x128xf32>
    %12 = arith.truncf %11 : vector<8x128xf32> to vector<8x128xbf16>
    %c0_7 = arith.constant 0 : index
    %c0_8 = arith.constant 0 : index
    %13 = vector.load %arg4[%c0_7, %c0_8] : memref<128x256xbf16, #tpu.memory_space<vmem>>, vector<128x256xbf16>
    %cst_9 = arith.constant dense<0.000000e+00> : vector<8x256xf32>
    %14 = tpu.matmul %12, %13, %cst_9 {dimension_numbers = #tpu.dot_dimension_numbers<[1], [0], [0], [1], [0, 0, 1, 1], [], []>} : vector<8x128xbf16>, vector<128x256xbf16>, vector<8x256xf32> -> vector<8x256xf32>
    %c0_10 = arith.constant 0 : index
    %c0_11 = arith.constant 0 : index
    %15 = vector.load %arg5[%c0_10, %c0_11] : memref<1x256xf32, #tpu.memory_space<vmem>>, vector<1x256xf32>
    %16 = vector.broadcast %15 : vector<1x256xf32> to vector<8x256xf32>
    %17 = arith.addf %14, %16 : vector<8x256xf32>
    %cst_12 = arith.constant dense<0.000000e+00> : vector<256xf32>
    %18 = vector.multi_reduction <add>, %17, %cst_12 [0] : vector<8x256xf32> to vector<256xf32>
    %19 = vector.shape_cast %18 : vector<256xf32> to vector<1x256xf32>
    %cst_13 = arith.constant 8.000000e+00 : f32
    %20 = vector.broadcast %cst_13 : f32 to vector<1x256xf32>
    %21 = arith.divf %19, %20 : vector<1x256xf32>
    %22 = arith.mulf %17, %17 : vector<8x256xf32>
    %cst_14 = arith.constant dense<0.000000e+00> : vector<256xf32>
    %23 = vector.multi_reduction <add>, %22, %cst_14 [0] : vector<8x256xf32> to vector<256xf32>
    %24 = vector.shape_cast %23 : vector<256xf32> to vector<1x256xf32>
    %cst_15 = arith.constant 8.000000e+00 : f32
    %25 = vector.broadcast %cst_15 : f32 to vector<1x256xf32>
    %26 = arith.divf %24, %25 : vector<1x256xf32>
    %27 = arith.mulf %21, %21 : vector<1x256xf32>
    %28 = arith.subf %26, %27 : vector<1x256xf32>
    %cst_16 = arith.constant 0.000000e+00 : f32
    %29 = vector.broadcast %cst_16 : f32 to vector<1x256xf32>
    %30 = arith.maximumf %28, %29 : vector<1x256xf32>
    %31 = vector.broadcast %21 : vector<1x256xf32> to vector<8x256xf32>
    %32 = arith.subf %17, %31 : vector<8x256xf32>
    %cst_17 = arith.constant 8.000000e-01 : f32
    %33 = vector.broadcast %cst_17 : f32 to vector<1x256xf32>
    %34 = arith.addf %30, %33 : vector<1x256xf32>
    %35 = math.rsqrt %34 : vector<1x256xf32>
    %36 = vector.broadcast %35 : vector<1x256xf32> to vector<8x256xf32>
    %37 = arith.mulf %32, %36 : vector<8x256xf32>
    %c0_18 = arith.constant 0 : index
    %c0_19 = arith.constant 0 : index
    %38 = vector.load %arg6[%c0_18, %c0_19] : memref<1x256xf32, #tpu.memory_space<vmem>>, vector<1x256xf32>
    %39 = vector.broadcast %38 : vector<1x256xf32> to vector<8x256xf32>
    %40 = arith.mulf %37, %39 : vector<8x256xf32>
    %c0_20 = arith.constant 0 : index
    %c0_21 = arith.constant 0 : index
    %41 = vector.load %arg7[%c0_20, %c0_21] : memref<1x256xf32, #tpu.memory_space<vmem>>, vector<1x256xf32>
    %42 = vector.broadcast %41 : vector<1x256xf32> to vector<8x256xf32>
    %43 = arith.addf %40, %42 : vector<8x256xf32>
    %cst_22 = arith.constant 0.000000e+00 : f32
    %44 = vector.broadcast %cst_22 : f32 to vector<8x256xf32>
    %45 = arith.cmpf ogt, %43, %44 : vector<8x256xf32>
    %cst_23 = arith.constant 2.000000e-01 : f32
    %46 = vector.broadcast %cst_23 : f32 to vector<8x256xf32>
    %47 = arith.mulf %46, %43 : vector<8x256xf32>
    %48 = arith.select %45, %43, %47 : vector<8x256xi1>, vector<8x256xf32>
    %49 = arith.truncf %48 : vector<8x256xf32> to vector<8x256xbf16>
    %c0_24 = arith.constant 0 : index
    %c0_25 = arith.constant 0 : index
    %50 = vector.load %arg8[%c0_24, %c0_25] : memref<256x512xbf16, #tpu.memory_space<vmem>>, vector<256x512xbf16>
    %cst_26 = arith.constant dense<0.000000e+00> : vector<8x512xf32>
    %51 = tpu.matmul %49, %50, %cst_26 {dimension_numbers = #tpu.dot_dimension_numbers<[1], [0], [0], [1], [0, 0, 1, 1], [], []>} : vector<8x256xbf16>, vector<256x512xbf16>, vector<8x512xf32> -> vector<8x512xf32>
    %c0_27 = arith.constant 0 : index
    %c0_28 = arith.constant 0 : index
    %52 = vector.load %arg9[%c0_27, %c0_28] : memref<1x512xf32, #tpu.memory_space<vmem>>, vector<1x512xf32>
    %53 = vector.broadcast %52 : vector<1x512xf32> to vector<8x512xf32>
    %54 = arith.addf %51, %53 : vector<8x512xf32>
    %cst_29 = arith.constant dense<0.000000e+00> : vector<512xf32>
    %55 = vector.multi_reduction <add>, %54, %cst_29 [0] : vector<8x512xf32> to vector<512xf32>
    %56 = vector.shape_cast %55 : vector<512xf32> to vector<1x512xf32>
    %cst_30 = arith.constant 8.000000e+00 : f32
    %57 = vector.broadcast %cst_30 : f32 to vector<1x512xf32>
    %58 = arith.divf %56, %57 : vector<1x512xf32>
    %59 = arith.mulf %54, %54 : vector<8x512xf32>
    %cst_31 = arith.constant dense<0.000000e+00> : vector<512xf32>
    %60 = vector.multi_reduction <add>, %59, %cst_31 [0] : vector<8x512xf32> to vector<512xf32>
    %61 = vector.shape_cast %60 : vector<512xf32> to vector<1x512xf32>
    %cst_32 = arith.constant 8.000000e+00 : f32
    %62 = vector.broadcast %cst_32 : f32 to vector<1x512xf32>
    %63 = arith.divf %61, %62 : vector<1x512xf32>
    %64 = arith.mulf %58, %58 : vector<1x512xf32>
    %65 = arith.subf %63, %64 : vector<1x512xf32>
    %cst_33 = arith.constant 0.000000e+00 : f32
    %66 = vector.broadcast %cst_33 : f32 to vector<1x512xf32>
    %67 = arith.maximumf %65, %66 : vector<1x512xf32>
    %68 = vector.broadcast %58 : vector<1x512xf32> to vector<8x512xf32>
    %69 = arith.subf %54, %68 : vector<8x512xf32>
    %cst_34 = arith.constant 8.000000e-01 : f32
    %70 = vector.broadcast %cst_34 : f32 to vector<1x512xf32>
    %71 = arith.addf %67, %70 : vector<1x512xf32>
    %72 = math.rsqrt %71 : vector<1x512xf32>
    %73 = vector.broadcast %72 : vector<1x512xf32> to vector<8x512xf32>
    %74 = arith.mulf %69, %73 : vector<8x512xf32>
    %c0_35 = arith.constant 0 : index
    %c0_36 = arith.constant 0 : index
    %75 = vector.load %arg10[%c0_35, %c0_36] : memref<1x512xf32, #tpu.memory_space<vmem>>, vector<1x512xf32>
    %76 = vector.broadcast %75 : vector<1x512xf32> to vector<8x512xf32>
    %77 = arith.mulf %74, %76 : vector<8x512xf32>
    %c0_37 = arith.constant 0 : index
    %c0_38 = arith.constant 0 : index
    %78 = vector.load %arg11[%c0_37, %c0_38] : memref<1x512xf32, #tpu.memory_space<vmem>>, vector<1x512xf32>
    %79 = vector.broadcast %78 : vector<1x512xf32> to vector<8x512xf32>
    %80 = arith.addf %77, %79 : vector<8x512xf32>
    %cst_39 = arith.constant 0.000000e+00 : f32
    %81 = vector.broadcast %cst_39 : f32 to vector<8x512xf32>
    %82 = arith.cmpf ogt, %80, %81 : vector<8x512xf32>
    %cst_40 = arith.constant 2.000000e-01 : f32
    %83 = vector.broadcast %cst_40 : f32 to vector<8x512xf32>
    %84 = arith.mulf %83, %80 : vector<8x512xf32>
    %85 = arith.select %82, %80, %84 : vector<8x512xi1>, vector<8x512xf32>
    %86 = arith.truncf %85 : vector<8x512xf32> to vector<8x512xbf16>
    %c0_41 = arith.constant 0 : index
    %c0_42 = arith.constant 0 : index
    %87 = vector.load %arg12[%c0_41, %c0_42] : memref<512x1024xbf16, #tpu.memory_space<vmem>>, vector<512x1024xbf16>
    %cst_43 = arith.constant dense<0.000000e+00> : vector<8x1024xf32>
    %88 = tpu.matmul %86, %87, %cst_43 {dimension_numbers = #tpu.dot_dimension_numbers<[1], [0], [0], [1], [0, 0, 1, 1], [], []>} : vector<8x512xbf16>, vector<512x1024xbf16>, vector<8x1024xf32> -> vector<8x1024xf32>
    %c0_44 = arith.constant 0 : index
    %c0_45 = arith.constant 0 : index
    %89 = vector.load %arg13[%c0_44, %c0_45] : memref<1x1024xf32, #tpu.memory_space<vmem>>, vector<1x1024xf32>
    %90 = vector.broadcast %89 : vector<1x1024xf32> to vector<8x1024xf32>
    %91 = arith.addf %88, %90 : vector<8x1024xf32>
    %cst_46 = arith.constant dense<0.000000e+00> : vector<1024xf32>
    %92 = vector.multi_reduction <add>, %91, %cst_46 [0] : vector<8x1024xf32> to vector<1024xf32>
    %93 = vector.shape_cast %92 : vector<1024xf32> to vector<1x1024xf32>
    %cst_47 = arith.constant 8.000000e+00 : f32
    %94 = vector.broadcast %cst_47 : f32 to vector<1x1024xf32>
    %95 = arith.divf %93, %94 : vector<1x1024xf32>
    %96 = arith.mulf %91, %91 : vector<8x1024xf32>
    %cst_48 = arith.constant dense<0.000000e+00> : vector<1024xf32>
    %97 = vector.multi_reduction <add>, %96, %cst_48 [0] : vector<8x1024xf32> to vector<1024xf32>
    %98 = vector.shape_cast %97 : vector<1024xf32> to vector<1x1024xf32>
    %cst_49 = arith.constant 8.000000e+00 : f32
    %99 = vector.broadcast %cst_49 : f32 to vector<1x1024xf32>
    %100 = arith.divf %98, %99 : vector<1x1024xf32>
    %101 = arith.mulf %95, %95 : vector<1x1024xf32>
    %102 = arith.subf %100, %101 : vector<1x1024xf32>
    %cst_50 = arith.constant 0.000000e+00 : f32
    %103 = vector.broadcast %cst_50 : f32 to vector<1x1024xf32>
    %104 = arith.maximumf %102, %103 : vector<1x1024xf32>
    %105 = vector.broadcast %95 : vector<1x1024xf32> to vector<8x1024xf32>
    %106 = arith.subf %91, %105 : vector<8x1024xf32>
    %cst_51 = arith.constant 8.000000e-01 : f32
    %107 = vector.broadcast %cst_51 : f32 to vector<1x1024xf32>
    %108 = arith.addf %104, %107 : vector<1x1024xf32>
    %109 = math.rsqrt %108 : vector<1x1024xf32>
    %110 = vector.broadcast %109 : vector<1x1024xf32> to vector<8x1024xf32>
    %111 = arith.mulf %106, %110 : vector<8x1024xf32>
    %c0_52 = arith.constant 0 : index
    %c0_53 = arith.constant 0 : index
    %112 = vector.load %arg14[%c0_52, %c0_53] : memref<1x1024xf32, #tpu.memory_space<vmem>>, vector<1x1024xf32>
    %113 = vector.broadcast %112 : vector<1x1024xf32> to vector<8x1024xf32>
    %114 = arith.mulf %111, %113 : vector<8x1024xf32>
    %c0_54 = arith.constant 0 : index
    %c0_55 = arith.constant 0 : index
    %115 = vector.load %arg15[%c0_54, %c0_55] : memref<1x1024xf32, #tpu.memory_space<vmem>>, vector<1x1024xf32>
    %116 = vector.broadcast %115 : vector<1x1024xf32> to vector<8x1024xf32>
    %117 = arith.addf %114, %116 : vector<8x1024xf32>
    %cst_56 = arith.constant 0.000000e+00 : f32
    %118 = vector.broadcast %cst_56 : f32 to vector<8x1024xf32>
    %119 = arith.cmpf ogt, %117, %118 : vector<8x1024xf32>
    %cst_57 = arith.constant 2.000000e-01 : f32
    %120 = vector.broadcast %cst_57 : f32 to vector<8x1024xf32>
    %121 = arith.mulf %120, %117 : vector<8x1024xf32>
    %122 = arith.select %119, %117, %121 : vector<8x1024xi1>, vector<8x1024xf32>
    %123 = arith.truncf %122 : vector<8x1024xf32> to vector<8x1024xbf16>
    %c0_58 = arith.constant 0 : index
    %c0_59 = arith.constant 0 : index
    %124 = vector.load %arg16[%c0_58, %c0_59] : memref<1024x128xbf16, #tpu.memory_space<vmem>>, vector<1024x128xbf16>
    %cst_60 = arith.constant dense<0.000000e+00> : vector<8x128xf32>
    %125 = tpu.matmul %123, %124, %cst_60 {dimension_numbers = #tpu.dot_dimension_numbers<[1], [0], [0], [1], [0, 0, 1, 1], [], []>} : vector<8x1024xbf16>, vector<1024x128xbf16>, vector<8x128xf32> -> vector<8x128xf32>
    %c0_61 = arith.constant 0 : index
    %c0_62 = arith.constant 0 : index
    %126 = vector.load %arg17[%c0_61, %c0_62] : memref<1x128xf32, #tpu.memory_space<vmem>>, vector<1x128xf32>
    %127 = vector.broadcast %126 : vector<1x128xf32> to vector<8x128xf32>
    %128 = arith.addf %125, %127 : vector<8x128xf32>
    %129 = math.tanh %128 : vector<8x128xf32>
    %c0_63 = arith.constant 0 : index
    %c0_64 = arith.constant 0 : index
    %130 = vector.load %arg18[%c0_63, %c0_64] : memref<8x128xf32, #tpu.memory_space<vmem>>, vector<8x128xf32>
    tpu.vector_store %arg18[%c0_63, %c0_64], %129 {strides = array<i32>} : memref<8x128xf32, #tpu.memory_space<vmem>>, vector<8x128xf32>,
    return
  }
  func.func @transform_0(%arg0: i32) -> (i32, i32) {
    %c0_i32 = arith.constant 0 : i32
    %c0_i32_0 = arith.constant 0 : i32
    %c0_i32_1 = arith.constant 0 : i32
    return %c0_i32, %c0_i32_0 : i32, i32
  }
  func.func @transform_1(%arg0: i32) -> (i32, i32) {
    %c0_i32 = arith.constant 0 : i32
    %c0_i32_0 = arith.constant 0 : i32
    %c0_i32_1 = arith.constant 0 : i32
    return %c0_i32, %c0_i32_0 : i32, i32
  }
  func.func @transform_2(%arg0: i32) -> (i32, i32) {
    %c0_i32 = arith.constant 0 : i32
    %c0_i32_0 = arith.constant 0 : i32
    %c0_i32_1 = arith.constant 0 : i32
    return %c0_i32, %c0_i32_0 : i32, i32
  }
  func.func @transform_3(%arg0: i32) -> (i32, i32) {
    %c0_i32 = arith.constant 0 : i32
    %c0_i32_0 = arith.constant 0 : i32
    %c0_i32_1 = arith.constant 0 : i32
    return %c0_i32, %c0_i32_0 : i32, i32
  }
  func.func @transform_4(%arg0: i32) -> (i32, i32) {
    %c0_i32 = arith.constant 0 : i32
    %c0_i32_0 = arith.constant 0 : i32
    %c0_i32_1 = arith.constant 0 : i32
    return %c0_i32, %c0_i32_0 : i32, i32
  }
  func.func @transform_5(%arg0: i32) -> (i32, i32) {
    %c0_i32 = arith.constant 0 : i32
    %c0_i32_0 = arith.constant 0 : i32
    %c0_i32_1 = arith.constant 0 : i32
    return %c0_i32, %c0_i32_0 : i32, i32
  }
  func.func @transform_6(%arg0: i32) -> (i32, i32) {
    %c0_i32 = arith.constant 0 : i32
    %c0_i32_0 = arith.constant 0 : i32
    %c0_i32_1 = arith.constant 0 : i32
    return %c0_i32, %c0_i32_0 : i32, i32
  }
  func.func @transform_7(%arg0: i32) -> (i32, i32) {
    %c0_i32 = arith.constant 0 : i32
    %c0_i32_0 = arith.constant 0 : i32
    %c0_i32_1 = arith.constant 0 : i32
    return %c0_i32, %c0_i32_0 : i32, i32
  }
  func.func @transform_8(%arg0: i32) -> (i32, i32) {
    %c0_i32 = arith.constant 0 : i32
    %c0_i32_0 = arith.constant 0 : i32
    %c0_i32_1 = arith.constant 0 : i32
    return %c0_i32, %c0_i32_0 : i32, i32
  }
  func.func @transform_9(%arg0: i32) -> (i32, i32) {
    %c0_i32 = arith.constant 0 : i32
    %c0_i32_0 = arith.constant 0 : i32
    %c0_i32_1 = arith.constant 0 : i32
    return %c0_i32, %c0_i32_0 : i32, i32
  }
  func.func @transform_10(%arg0: i32) -> (i32, i32) {
    %c0_i32 = arith.constant 0 : i32
    %c0_i32_0 = arith.constant 0 : i32
    %c0_i32_1 = arith.constant 0 : i32
    return %c0_i32, %c0_i32_0 : i32, i32
  }
  func.func @transform_11(%arg0: i32) -> (i32, i32) {
    %c0_i32 = arith.constant 0 : i32
    %c0_i32_0 = arith.constant 0 : i32
    %c0_i32_1 = arith.constant 0 : i32
    return %c0_i32, %c0_i32_0 : i32, i32
  }
  func.func @transform_12(%arg0: i32) -> (i32, i32) {
    %c0_i32 = arith.constant 0 : i32
    %c0_i32_0 = arith.constant 0 : i32
    %c0_i32_1 = arith.constant 0 : i32
    return %c0_i32, %c0_i32_0 : i32, i32
  }
  func.func @transform_13(%arg0: i32) -> (i32, i32) {
    %c0_i32 = arith.constant 0 : i32
    %c0_i32_0 = arith.constant 0 : i32
    %c0_i32_1 = arith.constant 0 : i32
    return %c0_i32, %c0_i32_0 : i32, i32
  }
  func.func @transform_14(%arg0: i32) -> (i32, i32) {
    %c0_i32 = arith.constant 0 : i32
    %c0_i32_0 = arith.constant 0 : i32
    %c0_i32_1 = arith.constant 0 : i32
    return %c0_i32, %c0_i32_0 : i32, i32
  }
  func.func @transform_15(%arg0: i32) -> (i32, i32) {
    %c0_i32 = arith.constant 0 : i32
    %c0_i32_0 = arith.constant 0 : i32
    return %c0_i32, %arg0 : i32, i32
  }
  func.func @transform_16(%arg0: i32) -> (i32, i32) {
    %c0_i32 = arith.constant 0 : i32
    %c0_i32_0 = arith.constant 0 : i32
    return %c0_i32, %arg0 : i32, i32
  }
  func.func @transform_17(%arg0: i32) -> (i32, i32) {
    %c0_i32 = arith.constant 0 : i32
    %c0_i32_0 = arith.constant 0 : i32
    return %c0_i32, %arg0 : i32, i32
  }
}

</mosaic_0001>

<bundles_post_ra>
// kernel: generator_forward.1
= control target key start
LH: loop header
LB: loop body
LE: loop exit
PB: predicated region body
PF: predicated region fallthrough
CT: control target
= control target key end

     0   :  { %s6870_s0 = inlined_call_operand.hbm [shape: f32[8,32], index: 0, kind: input, shape index: {}]   ;;  %s6871_s1 = inlined_call_operand.vmem [shape: bf16[32,128], index: 1, kind: input, shape index: {}]   ;;  %s6872_s2 = inlined_call_operand.vmem [shape: f32[1,128], index: 2, kind: input, shape index: {}]   ;;  %s6873_s3 = inlined_call_operand.hbm [shape: bf16[128,256], index: 3, kind: input, shape index: {}]   ;;  %s6874_s4 = inlined_call_operand.hbm [shape: f32[1,256], index: 4, kind: input, shape index: {}]   ;;  %s6875_s5 = inlined_call_operand.hbm [shape: f32[1,256], index: 5, kind: input, shape index: {}]   ;;  %s6876_s6 = inlined_call_operand.hbm [shape: f32[1,256], index: 6, kind: input, shape index: {}]   ;;  %s6877_s7 = inlined_call_operand.hbm [shape: bf16[256,512], index: 7, kind: input, shape index: {}]   ;;  %s6878_s8 = inlined_call_operand.vmem [shape: f32[1,512], index: 8, kind: input, shape index: {}]   ;;  %s6879_s9 = inlined_call_operand.hbm [shape: f32[1,512], index: 9, kind: input, shape index: {}]   ;;  %s6880_s10 = inlined_call_operand.hbm [shape: f32[1,512], index: 10, kind: input, shape index: {}]   ;;  %s6881_s11 = inlined_call_operand.hbm [shape: bf16[512,1024], index: 11, kind: input, shape index: {}]   ;;  %s6882_s12 = inlined_call_operand.hbm [shape: f32[1,1024], index: 12, kind: input, shape index: {}]   ;;  %s6883_s13 = inlined_call_operand.hbm [shape: f32[1,1024], index: 13, kind: input, shape index: {}]   ;;  %s6884_s14 = inlined_call_operand.hbm [shape: f32[1,1024], index: 14, kind: input, shape index: {}]   ;;  %s6885_s15 = inlined_call_operand.hbm [shape: bf16[1024,256], index: 15, kind: input, shape index: {}]   ;;  %s6886_s16 = inlined_call_operand.hbm [shape: f32[1,256], index: 16, kind: input, shape index: {}]   ;;  %s6887_s17 = inlined_call_operand.vmem [shape: f32[8,256], index: 17, kind: output, shape index: {}]  }
   0x1   :  { %6899 = sst [smem:[#allocation32_spill]] %s6870_s0 }
   0x2   :  { %6900 = sst [smem:[#allocation33_spill]] %s6871_s1 }
   0x3   :  { %6901 = sst [smem:[#allocation34_spill]] %s6873_s3 }
   0x4   :  { %6902 = sst [smem:[#allocation35_spill]] %s6875_s5 }
   0x5   :  { %6903 = sst [smem:[#allocation36_spill]] %s6877_s7 }
   0x6   :  { %6904 = sst [smem:[#allocation37_spill]] %s6878_s8 }
   0x7   :  { %6905 = sst [smem:[#allocation38_spill]] %s6880_s10 }
   0x8   :  { %6906 = sst [smem:[#allocation39_spill]] %s6882_s12 }
   0x9   :  { %6907 = sst [smem:[#allocation40_spill]] %s6885_s15 }
   0xa   :  { %6908 = sst [smem:[#allocation41_spill]] %s6887_s17 }
   0xb   :  { %22 = vsyncpa [#allocation3], 0 }
   0xc   :  { %23 = vsyncpa [#allocation5], 0 }
   0xd   :  { %24 = vsyncpa [#allocation8], 0 }
   0xe   :  { %25 = vsyncpa [#allocation11], 0 }
   0xf   :  { %26 = vsyncpa [#allocation14], 0 }
  0x10   :  { %27 = vsyncpa [#allocation17], 0 }
  0x11   :  { %28 = vsyncpa [#allocation20], 0  ;;  %s6268_s24 = smov 0   ;;  %s6270_s25 = smov 0  }
  0x12   :  { %s6272_s26 = smov 0   ;;  %s6274_s27 = smov 0  }
  0x13 LB: > { %s6153_s28 = smov [#allocation2]   ;;  %s6289_s0 = sadd.s32 4294967295, %s6151_s27   ;;  %s6151_s27 = sphi %s6274_s27, %s6952_s27   ;;  %s6147_s26 = sphi %s6272_s26, %s6951_s26   ;;  %s6143_s25 = sphi %s6270_s25, %s6950_s25   ;;  %s6139_s24 = sphi %s6268_s24, %s6949_s24  }
  0x14   : > { %s445_s29 = sshll.u32 %s6153_s28, 4  ;;  %p4791_p0 = scmp.ge.s32.totalorder %s6151_s27, 1  ;;  %s446_s29 = int_to_ptr.vmem [resolvable:$true] %s445_s29 }
  0x15   : > { %p6890_p1 = scmp.eq.s32.totalorder %s6289_s0, 0  ;;  %p432_p2 = scmp.lt.s32.totalorder %s6151_s27, 3 }
  0x16   : > { %s6154_s18 = smov [#allocation4]   ;;  %s6155_s20 = smov [#allocation7]  }
  0x17   : > { %p6294_p3 = pnand %p4791_p0, %p432_p2  ;;  %s461_s19 = sshll.u32 %s6154_s18, 4  ;;  %s6300_s19 = int_to_ptr.vmem [resolvable:$true] %s461_s19 }
  0x18   : > { %s486_s21 = sshll.u32 %s6155_s20, 4  ;;  %s5732_s23 = scalar_lea.vmem %s446_s29, 128  ;;  %s6308_s21 = int_to_ptr.vmem [resolvable:$true] %s486_s21 }
  0x19   : > { %s6909_s30 = scalar_select %p6294_p3, 1, 0 }
  0x1a   : > { %p5381_p4 = pneg %p6294_p3  ;;  %p5733_p7 = scmp.ne.s32.totalorder %s446_s29, %s5732_s23 }
  0x1b   : > { %p5740_p10 = scmp.lt.s32.totalorder %s446_s29, %s446_s29  ;;  %p5741_p11 = scmp.lt.s32.totalorder %s5732_s23, %s5732_s23 }
  0x1c   : > { %p6304_p5 = pnand %p5381_p4, %p6890_p1 }
  0x1d   : > { %p5742_p12 = por %p5741_p11, %p5740_p10 }
  0x1e   : > { %s6910_s1 = scalar_select %p6304_p5, 1, 0 }
  0x1f   : > { %p6312_p6 = pneg %p6304_p5 }
  0x21   : > { %p5735_p8 = pnand %p5733_p7, %p6312_p6 }
  0x23   : > { %p5736_p9 = pneg %p5735_p8 }
  0x25   : > { %p5743_p13 = pnand %p5742_p12, %p5736_p9 }
  0x27   : > { %5746 = shalt.err (!%p5743_p13)
}
  0x28   : > { %s6912_s20 = sld [smem:[#allocation32_spill]]  ;;  %s5758_s17 = scalar_lea.vmem %s6300_s19, 2048 }
  0x29   : > { %p5759_p0 = scmp.ne.s32.totalorder %s6300_s19, %s5758_s17  ;;  %p5766_p7 = scmp.lt.s32.totalorder %s6300_s19, %s6300_s19 }
  0x2a   : > { %p5767_p8 = scmp.lt.s32.totalorder %s5758_s17, %s5758_s17 }
  0x2b   : > { %p5761_p2 = pnand %p5759_p0, %p6312_p6 }
  0x2c   : > { %p5768_p9 = por %p5767_p8, %p5766_p7 }
  0x2d   : > { %p5762_p4 = pneg %p5761_p2 }
  0x2e   : > { %5384 = dma.hbm_to_vmem [thread:$0]  (!%p6304_p5), %s6912_s20, 128, %s446_s29, [#allocation3]  }
  0x2f   : > { %p5769_p10 = pnand %p5768_p9, %p5762_p4 }
  0x31   : > { %5772 = shalt.err (!%p5769_p10)
}
  0x32   : > { %s6889_s23 = smov 128   ;;  %s6157_s28 = smov 8  }
  0x33   : > { %s6913_s3 = sld [smem:[#allocation34_spill]]  ;;  %s5784_s20 = scalar_lea.vmem %s6308_s21, 32 }
  0x34   : > { %p5785_p11 = scmp.ne.s32.totalorder %s6308_s21, %s5784_s20  ;;  %p5792_p0 = scmp.lt.s32.totalorder %s6308_s21, %s6308_s21 }
  0x35   : > { %p5793_p2 = scmp.lt.s32.totalorder %s5784_s20, %s5784_s20 }
  0x36   : > { %p5787_p12 = pnand %p5785_p11, %p6312_p6 }
  0x37   : > { %p5794_p4 = por %p5793_p2, %p5792_p0 }
  0x38   : > { %p5788_p13 = pneg %p5787_p12 }
  0x39   : > { %5387 = dma.hbm_to_vmem [thread:$0]  (!%p6304_p5), %s6913_s3, 2048, %s6300_s19, [#allocation5], %s6889_s23, %s6889_s23, %s6157_s28  }
  0x3a   : > { %p5795_p7 = pnand %p5794_p4, %p5788_p13 }
  0x3c   : > { %5798 = shalt.err (!%p5795_p7)
}
  0x3d   : > { %s6914_s5 = sld [smem:[#allocation35_spill]]  ;;  %s6158_s19 = smov [#allocation10]  }
  0x3e   : > { %s507_s28 = sshll.u32 %s6158_s19, 4  ;;  %s508_s28 = int_to_ptr.vmem [resolvable:$true] %s507_s28 }
  0x3f   : > { %s5810_s29 = scalar_lea.vmem %s508_s28, 8192  ;;  %p5818_p11 = scmp.lt.s32.totalorder %s508_s28, %s508_s28 }
  0x40   : > { %p5811_p8 = scmp.ne.s32.totalorder %s508_s28, %s5810_s29  ;;  %p5819_p12 = scmp.lt.s32.totalorder %s5810_s29, %s5810_s29 }
  0x42   : > { %p5813_p9 = pnand %p5811_p8, %p6312_p6  ;;  %p5820_p13 = por %p5819_p12, %p5818_p11 }
  0x43   : > { %5393 = dma.hbm_to_vmem [thread:$0]  (!%p6304_p5), %s6914_s5, 32, %s6308_s21, [#allocation8]  }
  0x44   : > { %p5814_p10 = pneg %p5813_p9 }
  0x46   : > { %p5821_p0 = pnand %p5820_p13, %p5814_p10 }
  0x48   : > { %5824 = shalt.err (!%p5821_p0)
}
  0x49   : > { %s6159_s18 = smov 256   ;;  %s6160_s20 = smov 16  }
  0x4a   : > { %s6915_s7 = sld [smem:[#allocation36_spill]]  ;;  %s6161_s17 = smov [#allocation13]  }
  0x4b   : > { %s535_s19 = sshll.u32 %s6161_s17, 4  ;;  %s6162_s23 = smov [#allocation16]   ;;  %s536_s19 = int_to_ptr.vmem [resolvable:$true] %s535_s19 }
  0x4c   : > { %s559_s3 = sshll.u32 %s6162_s23, 4  ;;  %s5836_s5 = scalar_lea.vmem %s536_s19, 64  ;;  %s560_s3 = int_to_ptr.vmem [resolvable:$true] %s559_s3 }
  0x4d   : > { %p5837_p2 = scmp.ne.s32.totalorder %s536_s19, %s5836_s5  ;;  %p5844_p8 = scmp.lt.s32.totalorder %s536_s19, %s536_s19 }
  0x4e   : > { %p5845_p9 = scmp.lt.s32.totalorder %s5836_s5, %s5836_s5 }
  0x4f   : > { %p5839_p4 = pnand %p5837_p2, %p6312_p6 }
  0x50   : > { %5399 = dma.hbm_to_vmem [thread:$0]  (!%p6304_p5), %s6915_s7, 8192, %s508_s28, [#allocation11], %s6159_s18, %s6159_s18, %s6160_s20  }
  0x51   : > { %p5840_p7 = pneg %p5839_p4  ;;  %p5846_p10 = por %p5845_p9, %p5844_p8 }
  0x53   : > { %p5847_p11 = pnand %p5846_p10, %p5840_p7 }
  0x55   : > { %5850 = shalt.err (!%p5847_p11)
}
  0x56   : > { %s6916_s10 = sld [smem:[#allocation38_spill]]  ;;  %s5862_s23 = scalar_lea.vmem %s560_s3, 128 }
  0x57   : > { %p5863_p12 = scmp.ne.s32.totalorder %s560_s3, %s5862_s23  ;;  %p5870_p1 = scmp.lt.s32.totalorder %s560_s3, %s560_s3 }
  0x58   : > { %p5871_p2 = scmp.lt.s32.totalorder %s5862_s23, %s5862_s23 }
  0x59   : > { %p5865_p13 = pnand %p5863_p12, %p6312_p6 }
  0x5a   : > { %p5872_p4 = por %p5871_p2, %p5870_p1 }
  0x5b   : > { %p5866_p0 = pneg %p5865_p13 }
  0x5c   : > { %5405 = dma.hbm_to_vmem [thread:$0]  (!%p6304_p5), %s6916_s10, 64, %s536_s19, [#allocation14]  }
  0x5d   : > { %p5873_p3 = pnand %p5872_p4, %p5866_p0 }
  0x5f   : > { %5876 = shalt.err (!%p5873_p3)
}
  0x60   : > { %s6917_s12 = sld [smem:[#allocation39_spill]]  ;;  %s6371_s20 = sadd.s32 1, %s6151_s27  }
  0x61   : > { %s356_s8 = sadd.s32 1, %s6147_s26  ;;  %s353_s21 = ssub.s32 %s6151_s27, %s6371_s20 }
  0x62   : > { %p363_p1 = scmp.ne.s32.totalorder %s6147_s26, %s6143_s25  ;;  %p354_p3 = scmp.eq.s32.totalorder %s353_s21, 0 }
  0x63   : > { %p364_p7 = scmp.eq.s32.totalorder %s6151_s27, 0  ;;  %p369_p8 = scmp.ne.s32.totalorder %s6143_s25, %s6139_s24 }
  0x64   : > { %p5437_p9 = scmp.lt.s32.totalorder %s6151_s27, 2  ;;  %p6919_p11 = scmp.eq.s32.totalorder %s6289_s0, 0 }
  0x65   : > { %s6383_s17 = scalar_select %p354_p3, %s6147_s26, %s356_s8  }
  0x66   : > { %5411 = dma.hbm_to_vmem [thread:$0]  (!%p6304_p5), %s6917_s12, 128, %s560_s3, [#allocation17]  }
  0x67   : > { %6918 = sst [smem:[#allocation31_spill]] %s6383_s17  ;;  %p365_p10 = por %p364_p7, %p363_p1 }
  0x68   : > { %p6387_p12 = por %p6919_p11, %p369_p8  ;;  %s592_s29 = sand.u32 1, %s6151_s27  }
  0x69   : > { %s6892_s3 = sand.u32 1, %s6147_s26   ;;  %s4806_s23 = sshll.u32 %s6151_s27, 6 }
  0x6a   : > { %s6920_s19 = scalar_select %p6387_p12, 1, 0 }
  0x6b   : > { %s4805_s28 = sshll.u32 %s6892_s3, 9  ;;  %s6921_s15 = sld [smem:[#allocation40_spill]] }
  0x6c   : > { %s596_s24 = scalar_lea.vmem [#allocation21], %s4805_s28  ;;  %p6403_p13 = pnand %p5437_p9, %p365_p10 }
  0x6d   : > { %s602_s8 = sshll.u32 %s596_s24, 4  ;;  %s6407_s3 = scalar_lea.sflag [#allocation3], %s592_s29  ;;  %s6401_s8 = int_to_ptr.vmem [resolvable:$true] %s602_s8 }
  0x6e   : > { %s6922_s7 = scalar_select %p6403_p13, 1, 0 }
  0x6f   : > { %p6896_p2 = pneg %p6403_p13 }
  0x71   : > { %s6399_s21 = scalar_lea.hbm %s6921_s15, %s4806_s23  ;;  %s5882_s5 = scalar_lea.hbm %s6921_s15, 16384 }
  0x72   : > { %s5877_s10 = scalar_lea.hbm %s6399_s21, 8192  ;;  %p5883_p3 = scmp.lt.s32.totalorder %s6399_s21, %s6921_s15 }
  0x73   : > { %p5878_p0 = scmp.ne.s32.totalorder %s6399_s21, %s5877_s10  ;;  %p5884_p7 = scmp.lt.s32.totalorder %s5882_s5, %s5877_s10 }
  0x75   : > { %p5880_p4 = pnand %p6896_p2, %p5878_p0  ;;  %p5885_p8 = por %p5884_p7, %p5883_p3 }
  0x77   : > { %p5881_p1 = pneg %p5880_p4 }
  0x79   : > { %p5886_p9 = pnand %p5885_p8, %p5881_p1 }
  0x7b   : > { %5889 = shalt.err (!%p5886_p9)
}
  0x7c   : > { %s5890_s29 = scalar_lea.vmem %s6401_s8, 8192  ;;  %s6163_s28 = smov [#allocation21]  }
  0x7d   : > { %p5891_p10 = scmp.ne.s32.totalorder %s6401_s8, %s5890_s29  ;;  %s5895_s23 = sshll.u32 %s6163_s28, 4  ;;  %s5896_s23 = int_to_ptr.vmem [resolvable:$false] %s5895_s23 }
  0x7e   : > { %s5897_s12 = scalar_lea.vmem %s5896_s23, 16384  ;;  %p5898_p4 = scmp.lt.s32.totalorder %s6401_s8, %s5896_s23 }
  0x7f   : > { %p5893_p11 = pnand %p5891_p10, %p6896_p2  ;;  %p5899_p12 = scmp.lt.s32.totalorder %s5897_s12, %s5890_s29 }
  0x81   : > { %p5894_p0 = pneg %p5893_p11  ;;  %p5900_p5 = por %p5899_p12, %p5898_p4 }
  0x83   : > { %p5901_p3 = pnand %p5900_p5, %p5894_p0 }
  0x85   : > { %5904 = shalt.err (!%p5901_p3)
}
  0x86   : > { %s6164_s10 = smov 64   ;;  %s6165_s5 = smov 4  }
  0x87   : > { %s6923_s18 = smov 128   ;;  %s6166_s24 = smov [#allocation6]  }
  0x88   : > { %5421 = dma.hbm_to_vmem [thread:$0]  (!%p6403_p13), %s6399_s21, 8192, %s6401_s8, %s6407_s3, %s6923_s18, %s6164_s10, %s6165_s5  }
  0x89   : > { %s475_s15 = sshll.u32 %s6166_s24, 4  ;;  %s6167_s28 = smov [#allocation9]   ;;  %s476_s15 = int_to_ptr.vmem [resolvable:$true] %s475_s15 }
  0x8a   : > { %s497_s17 = sshll.u32 %s6167_s28, 4  ;;  %s5916_s23 = scalar_lea.vmem %s476_s15, 32  ;;  %s498_s17 = int_to_ptr.vmem [resolvable:$true] %s497_s17 }
  0x8b   : > { %p5917_p1 = scmp.ne.s32.totalorder %s476_s15, %s5916_s23  ;;  %p5924_p7 = scmp.lt.s32.totalorder %s476_s15, %s476_s15 }
  0x8c   : > { %p5925_p8 = scmp.lt.s32.totalorder %s5916_s23, %s5916_s23 }
  0x8d   : > { %p5919_p5 = pnand %p5917_p1, %p6312_p6 }
  0x8e   : > { %p5926_p9 = por %p5925_p8, %p5924_p7 }
  0x8f   : > { %p5920_p12 = pneg %p5919_p5 }
  0x91   : > { %p5927_p10 = pnand %p5926_p9, %p5920_p12 }
  0x93   : > { %5930 = shalt.err (!%p5927_p10)
}
  0x94   : > { %p6924_p11 = scmp.ne.s32.totalorder %s6910_s1, 0  ;;  %s5942_s21 = scalar_lea.vmem %s498_s17, 32 }
  0x95   : > { %p5943_p0 = scmp.ne.s32.totalorder %s498_s17, %s5942_s21  ;;  %p5950_p1 = scmp.lt.s32.totalorder %s498_s17, %s498_s17 }
  0x96   : > { %5390 = dma.hbm_to_vmem [thread:$0]  (!%p6924_p11), %s6874_s4, 32, %s476_s15, [#allocation5]  }
  0x97   : > { %p5945_p4 = pnand %p5943_p0, %p6312_p6  ;;  %p5951_p5 = scmp.lt.s32.totalorder %s5942_s21, %s5942_s21 }
  0x99   : > { %p5946_p3 = pneg %p5945_p4  ;;  %p5952_p2 = por %p5951_p5, %p5950_p1 }
  0x9b   : > { %p5953_p13 = pnand %p5952_p2, %p5946_p3 }
  0x9d   : > { %5956 = shalt.err (!%p5953_p13)
}
  0x9e   : > { %5396 = dma.hbm_to_vmem [thread:$0]  (!%p6924_p11), %s6876_s6, 32, %s498_s17, [#allocation8]  }
  0x9f   : > { %s6168_s5 = smov [#allocation12]   ;;  %s6169_s18 = smov [#allocation15]  }
  0xa0   : > { %s524_s15 = sshll.u32 %s6168_s5, 4  ;;  %s545_s24 = sshll.u32 %s6169_s18, 4  ;;  %s525_s15 = int_to_ptr.vmem [resolvable:$true] %s524_s15  ;;  %s546_s24 = int_to_ptr.vmem [resolvable:$true] %s545_s24 }
  0xa1   : > { %s5968_s28 = scalar_lea.vmem %s525_s15, 64  ;;  %p5976_p9 = scmp.lt.s32.totalorder %s525_s15, %s525_s15 }
  0xa2   : > { %p5969_p12 = scmp.ne.s32.totalorder %s525_s15, %s5968_s28  ;;  %p5977_p2 = scmp.lt.s32.totalorder %s5968_s28, %s5968_s28 }
  0xa4   : > { %p5971_p7 = pnand %p5969_p12, %p6312_p6  ;;  %p5978_p13 = por %p5977_p2, %p5976_p9 }
  0xa6   : > { %p5972_p8 = pneg %p5971_p7 }
  0xa8   : > { %p5979_p10 = pnand %p5978_p13, %p5972_p8 }
  0xaa   : > { %5982 = shalt.err (!%p5979_p10)
}
  0xab   : > { %5402 = dma.hbm_to_vmem [thread:$0]  (!%p6924_p11), %s6879_s9, 64, %s525_s15, [#allocation11]  }
  0xac   : > { %s5994_s17 = scalar_lea.vmem %s546_s24, 32768  ;;  %p6002_p1 = scmp.lt.s32.totalorder %s546_s24, %s546_s24 }
  0xad   : > { %p5995_p0 = scmp.ne.s32.totalorder %s546_s24, %s5994_s17  ;;  %p6003_p5 = scmp.lt.s32.totalorder %s5994_s17, %s5994_s17 }
  0xaf   : > { %p5997_p4 = pnand %p5995_p0, %p6312_p6  ;;  %p6004_p12 = por %p6003_p5, %p6002_p1 }
  0xb1   : > { %p5998_p3 = pneg %p5997_p4 }
  0xb3   : > { %p6005_p7 = pnand %p6004_p12, %p5998_p3 }
  0xb5   : > { %6008 = shalt.err (!%p6005_p7)
}
  0xb6   : > { %s6170_s29 = smov 512   ;;  %s6171_s21 = smov 32  }
  0xb7   : > { %5408 = dma.hbm_to_vmem [thread:$0]  (!%p6924_p11), %s6881_s11, 32768, %s546_s24, [#allocation14], %s6170_s29, %s6170_s29, %s6171_s21  }
  0xb8   : > { %s6172_s5 = smov [#allocation18]   ;;  %s6173_s18 = smov [#allocation19]  }
  0xb9   : > { %s570_s15 = sshll.u32 %s6172_s5, 4  ;;  %s581_s28 = sshll.u32 %s6173_s18, 4  ;;  %s571_s15 = int_to_ptr.vmem [resolvable:$true] %s570_s15  ;;  %s582_s28 = int_to_ptr.vmem [resolvable:$true] %s581_s28 }
  0xba   : > { %s6020_s23 = scalar_lea.vmem %s571_s15, 128  ;;  %p6028_p13 = scmp.lt.s32.totalorder %s571_s15, %s571_s15 }
  0xbb   : > { %p6021_p8 = scmp.ne.s32.totalorder %s571_s15, %s6020_s23  ;;  %p6029_p10 = scmp.lt.s32.totalorder %s6020_s23, %s6020_s23 }
  0xbd   : > { %p6023_p9 = pnand %p6021_p8, %p6312_p6  ;;  %p6030_p0 = por %p6029_p10, %p6028_p13 }
  0xbf   : > { %p6024_p2 = pneg %p6023_p9 }
  0xc1   : > { %p6031_p4 = pnand %p6030_p0, %p6024_p2 }
  0xc3   : > { %6034 = shalt.err (!%p6031_p4)
}
  0xc4   : > { %5414 = dma.hbm_to_vmem [thread:$0]  (!%p6924_p11), %s6883_s13, 128, %s571_s15, [#allocation17]  }
  0xc5   : > { %s6046_s24 = scalar_lea.vmem %s582_s28, 128  ;;  %p6054_p12 = scmp.lt.s32.totalorder %s582_s28, %s582_s28 }
  0xc6   : > { %p6047_p3 = scmp.ne.s32.totalorder %s582_s28, %s6046_s24  ;;  %p6055_p7 = scmp.lt.s32.totalorder %s6046_s24, %s6046_s24 }
  0xc8   : > { %p6049_p1 = pnand %p6047_p3, %p6312_p6  ;;  %p6056_p8 = por %p6055_p7, %p6054_p12 }
  0xca   : > { %p6050_p5 = pneg %p6049_p1 }
  0xcc   : > { %p6057_p9 = pnand %p6056_p8, %p6050_p5 }
  0xce   : > { %6060 = shalt.err (!%p6057_p9)
}
  0xcf   : > { %5417 = dma.hbm_to_vmem [thread:$0]  (!%p6924_p11), %s6884_s14, 128, %s582_s28, [#allocation20]  }
  0xd0   : > { %s4807_s8 = sshll.u32 %s6151_s27, 4  ;;  %s6925_s10 = sand.u32 1, %s6147_s26  }
  0xd1   : > { %s615_s5 = scalar_lea.vmem [#allocation22], %s6925_s10  ;;  %s620_s23 = scalar_lea.hbm %s6886_s16, %s4807_s8 }
  0xd2   : > { %s622_s22 = sshll.u32 %s615_s5, 4  ;;  %s6061_s12 = scalar_lea.hbm %s620_s23, 16  ;;  %s623_s22 = int_to_ptr.vmem [resolvable:$true] %s622_s22 }
  0xd3   : > { %p6062_p6 = scmp.ne.s32.totalorder %s620_s23, %s6061_s12  ;;  %p6926_p2 = scmp.ne.s32.totalorder %s6922_s7, 0 }
  0xd4   : > { %s6066_s24 = scalar_lea.hbm %s6886_s16, 32  ;;  %p6067_p11 = scmp.lt.s32.totalorder %s620_s23, %s6886_s16 }
  0xd5   : > { %p6927_p13 = pneg %p6926_p2  ;;  %p6068_p4 = scmp.lt.s32.totalorder %s6066_s24, %s6061_s12 }
  0xd7   : > { %p6064_p10 = pnand %p6062_p6, %p6927_p13  ;;  %p6069_p3 = por %p6068_p4, %p6067_p11 }
  0xd9   : > { %p6065_p0 = pneg %p6064_p10 }
  0xdb   : > { %p6070_p1 = pnand %p6069_p3, %p6065_p0 }
  0xdd   : > { %6073 = shalt.err (!%p6070_p1)
}
  0xde   : > { %s6074_s29 = scalar_lea.vmem %s623_s22, 16  ;;  %p6928_p12 = pmov %p6927_p13 }
  0xdf   : > { %p6075_p5 = scmp.ne.s32.totalorder %s623_s22, %s6074_s29  ;;  %s6174_s21 = smov [#allocation22]  }
  0xe0   : > { %s6079_s8 = sshll.u32 %s6174_s21, 4  ;;  %s6080_s8 = int_to_ptr.vmem [resolvable:$false] %s6079_s8 }
  0xe1   : > { %p6077_p7 = pnand %p6075_p5, %p6928_p12  ;;  %s6081_s10 = scalar_lea.vmem %s6080_s8, 32 }
  0xe2   : > { %p6082_p9 = scmp.lt.s32.totalorder %s623_s22, %s6080_s8  ;;  %p6083_p6 = scmp.lt.s32.totalorder %s6081_s10, %s6074_s29 }
  0xe3   : > { %p6078_p8 = pneg %p6077_p7 }
  0xe4   : > { %p6084_p13 = por %p6083_p6, %p6082_p9 }
  0xe6   : > { %p6085_p10 = pnand %p6084_p13, %p6078_p8 }
  0xe8   : > { %6088 = shalt.err (!%p6085_p10)
}
  0xe9   : > { %5424 = dma.hbm_to_vmem [thread:$0]  (!%p6926_p2), %s620_s23, 16, %s623_s22, %s6407_s3  }
  0xea   : > { %p6929_p0 = scmp.ne.s32.totalorder %s6909_s30, 0 }
  0xeb   : > { %p6930_p11 = scmp.eq.s32.totalorder (!%p6929_p0), %s6289_s0, 0 }
  0xec   : > { %631 = sbr.rel (%p6929_p0) target bundleno = 1625 (0x659), region = 88 }
  0xf1   : > { %6106 = dma.done.wait (%p6930_p11), [#allocation3], 128   ;;  %p6931_p4 = pmov %p6930_p11 }
  0xf3   : > { %6108 = vsyncadd (%p6931_p4), [#allocation3], 4294967168  ;;  %p6932_p3 = pmov %p6931_p4 }
  0xf5   : > { %6110 = dma.done.wait (%p6932_p3), [#allocation5], 2080   ;;  %p6933_p1 = pmov %p6932_p3 }
  0xf7   : > { %6112 = vsyncadd (%p6933_p1), [#allocation5], 4294965216  ;;  %p6934_p5 = pmov %p6933_p1 }
  0xf8   : > { %p6935_p2 = pmov %p6933_p1 }
  0xf9   : > { %6114 = dma.done.wait (%p6934_p5), [#allocation8], 64  }
  0xfa   : > { %6116 = vsyncadd (%p6935_p2), [#allocation8], 4294967232  ;;  %p6936_p12 = pmov %p6933_p1 }
  0xfb   : > { %p6937_p7 = pmov %p6933_p1 }
  0xfc   : > { %6118 = dma.done.wait (%p6936_p12), [#allocation11], 8256  }
  0xfd   : > { %6120 = vsyncadd (%p6937_p7), [#allocation11], 4294959040  ;;  %p6938_p8 = pmov %p6933_p1 }
  0xfe   : > { %p6939_p9 = pmov %p6933_p1 }
  0xff   : > { %6122 = dma.done.wait (%p6938_p8), [#allocation14], 32832  }
 0x100   : > { %6124 = vsyncadd (%p6939_p9), [#allocation14], 4294934464  ;;  %p6940_p6 = pmov %p6933_p1 }
 0x101   : > { %p6941_p13 = pmov %p6933_p1 }
 0x102   : > { %6126 = dma.done.wait (%p6940_p6), [#allocation17], 256  }
 0x103   : > { %6128 = vsyncadd (%p6941_p13), [#allocation17], 4294967040  ;;  %p6942_p10 = pmov %p6933_p1 }
 0x104   : > { %p6943_p0 = pmov %p6933_p1 }
 0x105   : > { %6130 = dma.done.wait (%p6942_p10), [#allocation20], 128  }
 0x106   : > { %6132 = vsyncadd (%p6943_p0), [#allocation20], 4294967168  ;;  %s681_s7 = sand.u32 1, %s6289_s0   ;;  %s683_s30 = sand.u32 1, %s6143_s25  }
 0x107   : > { %s4821_s3 = sshll.u32 %s683_s30, 9  ;;  %s682_s5 = scalar_lea.sflag [#allocation3], %s681_s7 }
 0x108   : > { %s6532_s22 = scalar_lea.vmem [#allocation21], %s4821_s3  ;;  %p6944_p11 = scmp.ne.s32.totalorder %s6920_s19, 0 }
 0x10a   : > { %6134 = dma.done.wait (%p6944_p11), %s682_s5, 8208  }
 0x10b   : > { %6136 = vsyncadd (%p6944_p11), %s682_s5, 4294959088  ;;  %v6175_v0 = vmov 0.0   ;;  %vm6176_vm0 = vmmov 0   ;;  %s6945_s23 = sld [smem:[#allocation33_spill]]  ;;  %v752_v3 = vld [vmem:[#allocation2] sm:$0xff]  ;;  %vm777_vm1 = vcmask 261120  }
 0x10c   : > { %5321 = vmatprep.subr.bf16.mxu0 %v6175_v0  ;;  %5325 = vmatprep.mubr.msk.bf16.mxu0 %vm6176_vm0, %v6175_v0  ;;  %v5507_v4 = vld [vmem:[#allocation4 + $0x74] ss:$8 sps:$4 sm:$0xff]   ;;  %v5509_v5 = vld [vmem:[#allocation4 + $0x70] ss:$8 sps:$4 sm:$0xff]   ;;  %v5510_v6 = vld [vmem:[#allocation4 + $0x64] ss:$8 sps:$4 sm:$0xff]   ;;  %v753_v7 = vpack.c.bf16 %v752_v3, %v752_v3 }
 0x10d   : > { %933 = vmatprep.subr.bf16.mxu1 %v5507_v4  ;;  %v5512_v8 = vld [vmem:[#allocation4 + $0x60] ss:$8 sps:$4 sm:$0xff]   ;;  %v5513_v9 = vld [vmem:[#allocation4 + $0x54] ss:$8 sps:$4 sm:$0xff]   ;;  %v5515_v10 = vld [vmem:[#allocation4 + $0x50] ss:$8 sps:$4 sm:$0xff]  }
 0x10e   : > { %934 = vmatpush1.bf16.msra.mxu1 %v5509_v5  ;;  %v5516_v11 = vld [vmem:[#allocation4 + $0x44] ss:$8 sps:$4 sm:$0xff]   ;;  %v5518_v12 = vld [vmem:[#allocation4 + $0x40] ss:$8 sps:$4 sm:$0xff]   ;;  %v5519_v13 = vld [vmem:[#allocation4 + $0x34] ss:$8 sps:$4 sm:$0xff]  }
 0x10f   : > { %935 = vmatprep.subr.bf16.mxu1 %v5510_v6  ;;  %v5521_v14 = vld [vmem:[#allocation4 + $0x30] ss:$8 sps:$4 sm:$0xff]   ;;  %v5522_v15 = vld [vmem:[#allocation4 + $0x24] ss:$8 sps:$4 sm:$0xff]   ;;  %v5524_v16 = vld [vmem:[#allocation4 + $0x20] ss:$8 sps:$4 sm:$0xff]  }
 0x110   : > { %v5525_v17 = vld [vmem:[#allocation4 + $0x14] ss:$8 sps:$4 sm:$0xff]   ;;  %v5527_v18 = vld [vmem:[#allocation4 + $0x10] ss:$8 sps:$4 sm:$0xff]   ;;  %v5528_v19 = vld [vmem:[#allocation4 + $0x4] ss:$8 sps:$4 sm:$0xff]  }
 0x111   : > { %v5505_v1 = vld [vmem:[%s6945_s23 + $0x8] sm:$0xff]   ;;  %v5506_v2 = vld [vmem:[%s6945_s23] sm:$0xff]   ;;  %v6177_v21 = vmov 0   ;;  %s6946_s27 = sld [smem:[#allocation37_spill]]  ;;  %s693_s29 = scalar_lea.vmem [#allocation22], %s683_s30 }
 0x112   : > { %5322 = vmatpush3.bf16.msra.mxu0 %v5505_v1  ;;  %936 = vmatpush1.bf16.msra.mxu1 %v5512_v8  ;;  %v5530_v20 = vld [vmem:[#allocation4] ss:$8 sps:$4 sm:$0xff]   ;;  %p747_p4 = scmp.lt.s32.totalorder %s6289_s0, 1  ;;  %s6947_s7 = sld [smem:[#allocation41_spill]] }
 0x113   : > { %5323 = vmatprep.subr.bf16.mxu0 %v6175_v0  ;;  %937 = vmatprep.subr.bf16.mxu1 %v5513_v9  ;;  %v5531_v22 = vld [vmem:[#allocation10 + $0xe0] ss:$16 sps:$4 sm:$0xff]   ;;  %v5533_v23 = vld [vmem:[#allocation10 + $0xe4] ss:$16 sps:$4 sm:$0xff]   ;;  %v5536_v24 = vld [vmem:[#allocation10 + $0xec] ss:$16 sps:$4 sm:$0xff]  }
 0x114   : > { %965 = vmatprep.mubr.bf16.mxu1 %v6177_v21  ;;  %v5539_v25 = vld [vmem:[#allocation10 + $0xc4] ss:$16 sps:$4 sm:$0xff]   ;;  %v5537_v26 = vld [vmem:[#allocation10 + $0xc0] ss:$16 sps:$4 sm:$0xff]   ;;  %v5534_v36 = vld [vmem:[#allocation10 + $0xe8] ss:$16 sps:$4 sm:$0xff]  }
 0x115   : > { %v5545_v27 = vld [vmem:[#allocation10 + $0xa4] ss:$16 sps:$4 sm:$0xff]   ;;  %v5543_v28 = vld [vmem:[#allocation10 + $0xa0] ss:$16 sps:$4 sm:$0xff]   ;;  %v5542_v39 = vld [vmem:[#allocation10 + $0xcc] ss:$16 sps:$4 sm:$0xff]  }
 0x116   : > { %5324 = vmatpush3.bf16.msra.mxu0 %v5506_v2  ;;  %938 = vmatpush1.bf16.msra.mxu1 %v5515_v10  ;;  %v4823_v29 = vld [vmem:[%s6872_s2] ss:$0 sm:$0xff]  ;;  %v5540_v40 = vld [vmem:[#allocation10 + $0xc8] ss:$16 sps:$4 sm:$0xff]   ;;  %v5548_v41 = vld [vmem:[#allocation10 + $0xac] ss:$16 sps:$4 sm:$0xff]  }
 0x117   : > { %939 = vmatprep.subr.bf16.mxu1 %v5516_v11  ;;  %1461 = vmatprep.subr.bf16.mxu0 %v5533_v23  ;;  %v5546_v42 = vld [vmem:[#allocation10 + $0xa8] ss:$16 sps:$4 sm:$0xff]   ;;  %v5551_v43 = vld [vmem:[#allocation10 + $0x84] ss:$16 sps:$4 sm:$0xff]   ;;  %v5554_v44 = vld [vmem:[#allocation10 + $0x8c] ss:$16 sps:$4 sm:$0xff]  }
 0x118   : > { %v5549_v45 = vld [vmem:[#allocation10 + $0x80] ss:$16 sps:$4 sm:$0xff]   ;;  %v5552_v46 = vld [vmem:[#allocation10 + $0x88] ss:$16 sps:$4 sm:$0xff]   ;;  %v5557_v47 = vld [vmem:[#allocation10 + $0x64] ss:$16 sps:$4 sm:$0xff]  }
 0x119   : > { %5326 = vmatmul.mubr.msk.bf16.vlgmr.msra.gmra.mxu0 %vm777_vm1, %v753_v7  ;;  %v5560_v48 = vld [vmem:[#allocation10 + $0x6c] ss:$16 sps:$4 sm:$0xff]   ;;  %v5555_v49 = vld [vmem:[#allocation10 + $0x60] ss:$16 sps:$4 sm:$0xff]   ;;  %v5558_v50 = vld [vmem:[#allocation10 + $0x68] ss:$16 sps:$4 sm:$0xff]  }
 0x11a   : > { %940 = vmatpush1.bf16.msra.mxu1 %v5518_v12  ;;  %1462 = vmatpush1.bf16.msra.mxu0 %v5531_v22  ;;  %v5563_v51 = vld [vmem:[#allocation10 + $0x44] ss:$16 sps:$4 sm:$0xff]   ;;  %v5566_v52 = vld [vmem:[#allocation10 + $0x4c] ss:$16 sps:$4 sm:$0xff]   ;;  %v5561_v53 = vld [vmem:[#allocation10 + $0x40] ss:$16 sps:$4 sm:$0xff]  }
 0x11b   : > { %941 = vmatprep.subr.bf16.mxu1 %v5519_v13  ;;  %1463 = vmatprep.subr.bf16.mxu0 %v5539_v25  ;;  %v5564_v54 = vld [vmem:[#allocation10 + $0x48] ss:$16 sps:$4 sm:$0xff]   ;;  %v5569_v55 = vld [vmem:[#allocation10 + $0x24] ss:$16 sps:$4 sm:$0xff]   ;;  %v5572_v56 = vld [vmem:[#allocation10 + $0x2c] ss:$16 sps:$4 sm:$0xff]  }
 0x11c   : > { %v5567_v57 = vld [vmem:[#allocation10 + $0x20] ss:$16 sps:$4 sm:$0xff]   ;;  %v5570_v58 = vld [vmem:[#allocation10 + $0x28] ss:$16 sps:$4 sm:$0xff]   ;;  %v5575_v59 = vld [vmem:[#allocation10 + $0x4] ss:$16 sps:$4 sm:$0xff]  }
 0x11d   : > { %v5578_v60 = vld [vmem:[#allocation10 + $0xc] ss:$16 sps:$4 sm:$0xff]   ;;  %v5573_v61 = vld [vmem:[#allocation10] ss:$16 sps:$4 sm:$0xff]   ;;  %v5576_v62 = vld [vmem:[#allocation10 + $0x8] ss:$16 sps:$4 sm:$0xff]  }
 0x11e   : > { %942 = vmatpush1.bf16.msra.mxu1 %v5521_v14  ;;  %1464 = vmatpush1.bf16.msra.mxu0 %v5537_v26  ;;  %v5581_v63 = vld [vmem:[#allocation10 + $0x1e4] ss:$16 sps:$4 sm:$0xff]   ;;  %v5584_v0 = vld [vmem:[#allocation10 + $0x1ec] ss:$16 sps:$4 sm:$0xff]   ;;  %v5579_v1 = vld [vmem:[#allocation10 + $0x1e0] ss:$16 sps:$4 sm:$0xff]  }
 0x11f   : > { %943 = vmatprep.subr.bf16.mxu1 %v5522_v15  ;;  %1465 = vmatprep.subr.bf16.mxu0 %v5545_v27  ;;  %v5582_v2 = vld [vmem:[#allocation10 + $0x1e8] ss:$16 sps:$4 sm:$0xff]   ;;  %v5587_v3 = vld [vmem:[#allocation10 + $0x1c4] ss:$16 sps:$4 sm:$0xff]   ;;  %v5590_v4 = vld [vmem:[#allocation10 + $0x1cc] ss:$16 sps:$4 sm:$0xff]  }
 0x120   : > { %v5585_v5 = vld [vmem:[#allocation10 + $0x1c0] ss:$16 sps:$4 sm:$0xff]   ;;  %v5588_v6 = vld [vmem:[#allocation10 + $0x1c8] ss:$16 sps:$4 sm:$0xff]   ;;  %v5593_v7 = vld [vmem:[#allocation10 + $0x1a4] ss:$16 sps:$4 sm:$0xff]  }
 0x121   : > { %v5596_v8 = vld [vmem:[#allocation10 + $0x1ac] ss:$16 sps:$4 sm:$0xff]   ;;  %v5591_v9 = vld [vmem:[#allocation10 + $0x1a0] ss:$16 sps:$4 sm:$0xff]   ;;  %v5594_v10 = vld [vmem:[#allocation10 + $0x1a8] ss:$16 sps:$4 sm:$0xff]  }
 0x122   : > { %944 = vmatpush1.bf16.msra.mxu1 %v5524_v16  ;;  %1466 = vmatpush1.bf16.msra.mxu0 %v5543_v28  ;;  %v5599_v11 = vld [vmem:[#allocation10 + $0x184] ss:$16 sps:$4 sm:$0xff]   ;;  %v5602_v12 = vld [vmem:[#allocation10 + $0x18c] ss:$16 sps:$4 sm:$0xff]   ;;  %v5597_v13 = vld [vmem:[#allocation10 + $0x180] ss:$16 sps:$4 sm:$0xff]  }
 0x123   : > { %945 = vmatprep.subr.bf16.mxu1 %v5525_v17  ;;  %1467 = vmatprep.subr.bf16.mxu0 %v5551_v43  ;;  %v5600_v14 = vld [vmem:[#allocation10 + $0x188] ss:$16 sps:$4 sm:$0xff]   ;;  %v5605_v15 = vld [vmem:[#allocation10 + $0x164] ss:$16 sps:$4 sm:$0xff]   ;;  %v5608_v16 = vld [vmem:[#allocation10 + $0x16c] ss:$16 sps:$4 sm:$0xff]  }
 0x124   : > { %v5603_v17 = vld [vmem:[#allocation10 + $0x160] ss:$16 sps:$4 sm:$0xff]   ;;  %v5612_v22 = vld [vmem:[#allocation10 + $0x148] ss:$16 sps:$4 sm:$0xff]   ;;  %v5617_v23 = vld [vmem:[#allocation10 + $0x124] ss:$16 sps:$4 sm:$0xff]  }
 0x125   : > { %v5609_v21 = vld [vmem:[#allocation10 + $0x140] ss:$16 sps:$4 sm:$0xff]   ;;  %v5618_v25 = vld [vmem:[#allocation10 + $0x128] ss:$16 sps:$4 sm:$0xff]   ;;  %v5620_v26 = vld [vmem:[#allocation10 + $0x12c] ss:$16 sps:$4 sm:$0xff]  }
 0x126   : > { %946 = vmatpush1.bf16.msra.mxu1 %v5527_v18  ;;  %1468 = vmatpush1.bf16.msra.mxu0 %v5549_v45  ;;  %v5606_v18 = vld [vmem:[#allocation10 + $0x168] ss:$16 sps:$4 sm:$0xff]   ;;  %v5623_v27 = vld [vmem:[#allocation10 + $0x104] ss:$16 sps:$4 sm:$0xff]   ;;  %v5626_v28 = vld [vmem:[#allocation10 + $0x10c] ss:$16 sps:$4 sm:$0xff]  }
 0x127   : > { %947 = vmatprep.subr.bf16.mxu1 %v5528_v19  ;;  %1469 = vmatprep.subr.bf16.mxu0 %v5557_v47  ;;  %v5611_v19 = vld [vmem:[#allocation10 + $0x144] ss:$16 sps:$4 sm:$0xff]   ;;  %s6954_s0 = smov (!%p747_p4, %s6289_s0), 1 }
 0x128   : > { %s4822_s21 = sshll.u32 %s6954_s0, 3 }
 0x129   : > { %s750_s30 = scalar_lea.vmem %s6947_s7, %s4822_s21 }
 0x12a   : > { %948 = vmatpush1.bf16.msra.mxu1 %v5530_v20  ;;  %1470 = vmatpush1.bf16.msra.mxu0 %v5555_v49  ;;  %v5614_v20 = vld [vmem:[#allocation10 + $0x14c] ss:$16 sps:$4 sm:$0xff]  }
 0x12b   : > { %1502 = vmatprep.subr.bf16.mxu1 %v5536_v24  ;;  %1471 = vmatprep.subr.bf16.mxu0 %v5563_v51  ;;  %v5615_v24 = vld [vmem:[#allocation10 + $0x120] ss:$16 sps:$4 sm:$0xff]  }
 0x12e   : > { %1472 = vmatpush1.bf16.msra.mxu0 %v5561_v53 }
 0x12f   : > { %1473 = vmatprep.subr.bf16.mxu0 %v5569_v55 }
 0x132   : > { %1474 = vmatpush1.bf16.msra.mxu0 %v5567_v57 }
 0x133   : > { %1475 = vmatprep.subr.bf16.mxu0 %v5575_v59 }
 0x136   : > { %1476 = vmatpush1.bf16.msra.mxu0 %v5573_v61 }
 0x137   : > { %1477 = vmatprep.subr.bf16.mxu0 %v5581_v63 }
 0x13a   : > { %1478 = vmatpush2.bf16.msra.mxu0 %v5579_v1 }
 0x13b   : > { %1479 = vmatprep.subr.bf16.mxu0 %v5587_v3 }
 0x13e   : > { %1480 = vmatpush2.bf16.msra.mxu0 %v5585_v5 }
 0x13f   : > { %1481 = vmatprep.subr.bf16.mxu0 %v5593_v7 }
 0x142   : > { %1482 = vmatpush2.bf16.msra.mxu0 %v5591_v9 }
 0x143   : > { %1483 = vmatprep.subr.bf16.mxu0 %v5599_v11 }
 0x146   : > { %1484 = vmatpush2.bf16.msra.mxu0 %v5597_v13 }
 0x147   : > { %1485 = vmatprep.subr.bf16.mxu0 %v5605_v15 }
 0x14a   : > { %1486 = vmatpush2.bf16.msra.mxu0 %v5603_v17 }
 0x14b   : > { %1487 = vmatprep.subr.bf16.mxu0 %v5611_v19 }
 0x14e   : > { %1488 = vmatpush2.bf16.msra.mxu0 %v5609_v21 }
 0x14f   : > { %1489 = vmatprep.subr.bf16.mxu0 %v5617_v23 }
 0x152   : > { %1490 = vmatpush2.bf16.msra.mxu0 %v5615_v24 }
 0x153   : > { %1491 = vmatprep.subr.bf16.mxu0 %v5623_v27  ;;  %v1033_v27 = vld [vmem:[#allocation9] sm:$0x3] }
 0x1d9   : > { %v815_v30 = vpop.f32.mrf.mxu0 }
 0x1da   : > { %v816_v31 = vadd.f32 %v4823_v29, %v815_v30  ;;  %v5621_v29 = vld [vmem:[#allocation10 + $0x100] ss:$16 sps:$4 sm:$0xff]   ;;  %v5624_v30 = vld [vmem:[#allocation10 + $0x108] ss:$16 sps:$4 sm:$0xff]  }
 0x1db   : > { %v5327_v32 = vpop.f32.mrf.mxu0  ;;  %1492 = vmatpush2.bf16.msra.mxu0 %v5621_v29 }
 0x1dc   : > { %vm821_vm2 = vcmp.gt.f32.partialorder %v816_v31, 0.0  ;;  %v822_v33 = vmul.f32 0.2, %v816_v31  ;;  %v6549_v32 = vld [vmem:[#allocation15 + $0x1e0] sm:$0xff] }
 0x1dd   : > { %v818_v34 = vpop.f32.mrf.mxu0 }
 0x1de   : > { %v823_v35 = vsel %vm821_vm2, %v816_v31, %v822_v33  ;;  %v6547_v31 = vld [vmem:[#allocation15 + $0x1c0] sm:$0xff] }
 0x1df   : > { %v5328_v37 = vpop.f32.mrf.mxu0  ;;  %v824_v38 = vpack.c.bf16 %v823_v35, %v823_v35  ;;  %v6551_v33 = vld [vmem:[#allocation15 + $0x5c0] sm:$0xff]  ;;  %v4963_v34 = vcombine.low %v6547_v31, %v6549_v32  ;;  %v4964_v35 = vcombine.high %v6547_v31, %v6549_v32 }
 0x1e0   : > { %v1731_v31 = vld [vmem:[#allocation15 + $0x100] sm:$0xff] }
 0x1e1   : > { %966 = vmatmul.mubr.bf16.vlgmr.msra.gmra.mxu1 %v824_v38  ;;  %3277 = vmatprep.subr.bf16.mxu0 %v4964_v35  ;;  %v1735_v32 = vld [vmem:[#allocation15 + $0x120] sm:$0xff] }
 0x1e2   : > { %1503 = vmatpush1.bf16.msra.mxu1 %v5534_v36  ;;  %v6557_v36 = vld [vmem:[#allocation15 + $0x5e0] sm:$0xff] }
 0x1e3   : > { %1504 = vmatprep.subr.bf16.mxu1 %v5542_v39  ;;  %v5091_v37 = vcombine.low %v6551_v33, %v6557_v36  ;;  %v5092_v38 = vcombine.high %v6551_v33, %v6557_v36  ;;  %v843_v39 = vlaneseq  ;;  %v1863_v33 = vld [vmem:[#allocation15 + $0x520] sm:$0xff]  ;;  %v4939_v36 = vcombine.low %v1731_v31, %v1735_v32 }
 0x1e6   : > { %1505 = vmatpush1.bf16.msra.mxu1 %v5540_v40  ;;  %v6563_v40 = vshrl.u32 %v843_v39, 7 }
 0x1e7   : > { %1506 = vmatprep.subr.bf16.mxu1 %v5548_v41 }
 0x1e8   : > { %v6566_v41 = vsub.s32 0, %v6563_v40  ;;  %v6569_v43 = vsub.s32 1, %v6563_v40 }
 0x1ea   : > { %1507 = vmatpush1.bf16.msra.mxu1 %v5546_v42  ;;  %v841_v42 = vld [vmem:[#allocation6] sm:$0x3] }
 0x1eb   : > { %1508 = vmatprep.subr.bf16.mxu1 %v5554_v44  ;;  %v846_v44 = vrot.slane %v841_v42, %v6566_v41  ;;  %v850_v45 = vrot.slane %v841_v42, %v6569_v43 }
 0x1ee   : > { %1509 = vmatpush1.bf16.msra.mxu1 %v5552_v46 }
 0x1ef   : > { %1510 = vmatprep.subr.bf16.mxu1 %v5560_v48 }
 0x1f2   : > { %1511 = vmatpush1.bf16.msra.mxu1 %v5558_v50 }
 0x1f3   : > { %1512 = vmatprep.subr.bf16.mxu1 %v5566_v52 }
 0x1f6   : > { %1513 = vmatpush1.bf16.msra.mxu1 %v5564_v54 }
 0x1f7   : > { %1514 = vmatprep.subr.bf16.mxu1 %v5572_v56 }
 0x1fa   : > { %1515 = vmatpush1.bf16.msra.mxu1 %v5570_v58 }
 0x1fb   : > { %1516 = vmatprep.subr.bf16.mxu1 %v5578_v60 }
 0x1fe   : > { %1517 = vmatpush1.bf16.msra.mxu1 %v5576_v62 }
 0x1ff   : > { %1518 = vmatprep.subr.bf16.mxu1 %v5584_v0 }
 0x202   : > { %1519 = vmatpush2.bf16.msra.mxu1 %v5582_v2 }
 0x203   : > { %1520 = vmatprep.subr.bf16.mxu1 %v5590_v4 }
 0x206   : > { %1521 = vmatpush2.bf16.msra.mxu1 %v5588_v6 }
 0x207   : > { %1522 = vmatprep.subr.bf16.mxu1 %v5596_v8 }
 0x20a   : > { %1523 = vmatpush2.bf16.msra.mxu1 %v5594_v10 }
 0x20b   : > { %1524 = vmatprep.subr.bf16.mxu1 %v5602_v12 }
 0x20e   : > { %1525 = vmatpush2.bf16.msra.mxu1 %v5600_v14 }
 0x20f   : > { %1526 = vmatprep.subr.bf16.mxu1 %v5608_v16 }
 0x212   : > { %1527 = vmatpush2.bf16.msra.mxu1 %v5606_v18 }
 0x213   : > { %1528 = vmatprep.subr.bf16.mxu1 %v5614_v20 }
 0x216   : > { %1529 = vmatpush2.bf16.msra.mxu1 %v5612_v22 }
 0x217   : > { %1530 = vmatprep.subr.bf16.mxu1 %v5620_v26  ;;  %v1019_v26 = vld [vmem:[#allocation7] sm:$0x3] }
 0x218   : > { %v1024_v29 = vrot.slane %v1019_v26, %v6566_v41  ;;  %v1028_v42 = vrot.slane %v1019_v26, %v6569_v43 }
 0x21a   : > { %1531 = vmatpush2.bf16.msra.mxu1 %v5618_v25 }
 0x21b   : > { %1532 = vmatprep.subr.bf16.mxu1 %v5626_v28 }
 0x21e   : > { %1533 = vmatpush2.bf16.msra.mxu1 %v5624_v30 }
 0x21f   : > { %3318 = vmatprep.subr.bf16.mxu1 %v5092_v38  ;;  %v1038_v38 = vrot.slane %v1033_v27, %v6566_v41 }
 0x2a1   : > { %v967_v46 = vpop.f32.mrf.mxu1 }
 0x2a2   : > { %v968_v47 = vadd.f32 %v967_v46, %v846_v44 }
 0x2a3   : > { %v969_v48 = vpop.f32.mrf.mxu1 }
 0x2a4   : > { %v974_v49 = vrot.slane %v968_v47, 4  ;;  %v989_v50 = vmul.f32 %v968_v47, %v968_v47  ;;  %v970_v51 = vadd.f32 %v969_v48, %v850_v45  ;;  %v1042_v48 = vrot.slane %v1033_v27, %v6569_v43  ;;  %v1707_v27 = vld [vmem:[#allocation15 + $0x40] sm:$0xff] }
 0x2a5   : > { %v971_v52 = vpop.f32.mrf.mxu1 }
 0x2a6   : > { %v975_v53 = vadd.f32 %v974_v49, %v968_v47  ;;  %v991_v54 = vrot.slane %v989_v50, 4  ;;  %v980_v55 = vrot.slane %v970_v51, 4  ;;  %v990_v56 = vmul.f32 %v970_v51, %v970_v51 }
 0x2a7   : > { %v972_v57 = vpop.f32.mrf.mxu1 }
 0x2a8   : > { %v976_v58 = vrot.slane %v975_v53, 2  ;;  %v992_v59 = vadd.f32 %v991_v54, %v989_v50  ;;  %v981_v60 = vadd.f32 %v980_v55, %v970_v51  ;;  %v997_v61 = vrot.slane %v990_v56, 4  ;;  %v1747_v54 = vld [vmem:[#allocation15 + $0x180] sm:$0xff] }
 0x2a9   : > { %v1875_v57 = vld [vmem:[#allocation15 + $0x580] sm:$0xff] }
 0x2aa   : > { %v977_v62 = vadd.f32 %v976_v58, %v975_v53  ;;  %v993_v63 = vrot.slane %v992_v59, 2  ;;  %v982_v0 = vrot.slane %v981_v60, 2  ;;  %v998_v1 = vadd.f32 %v997_v61, %v990_v56  ;;  %v1751_v56 = vld [vmem:[#allocation15 + $0x1a0] sm:$0xff] }
 0x2ab   : > { %v1879_v58 = vld [vmem:[#allocation15 + $0x5a0] sm:$0xff]  ;;  %v4956_v61 = vcombine.high %v1747_v54, %v1751_v56 }
 0x2ac   : > { %v978_v2 = vrot.slane %v977_v62, 1  ;;  %v994_v3 = vadd.f32 %v993_v63, %v992_v59  ;;  %v983_v4 = vadd.f32 %v982_v0, %v981_v60  ;;  %v999_v5 = vrot.slane %v998_v1, 2  ;;  %v1739_v63 = vld [vmem:[#allocation15 + $0x140] sm:$0xff] }
 0x2ad   : > { %v1743_v0 = vld [vmem:[#allocation15 + $0x160] sm:$0xff] }
 0x2ae   : > { %v979_v6 = vadd.f32 %v978_v2, %v977_v62  ;;  %v995_v7 = vrot.slane %v994_v3, 1  ;;  %v984_v8 = vrot.slane %v983_v4, 1  ;;  %v1000_v9 = vadd.f32 %v999_v5, %v998_v1  ;;  %v1867_v1 = vld [vmem:[#allocation15 + $0x540] sm:$0xff] }
 0x2af   : > { %v5084_v62 = vcombine.high %v1875_v57, %v1879_v58  ;;  %v1871_v2 = vld [vmem:[#allocation15 + $0x560] sm:$0xff]  ;;  %v4948_v5 = vcombine.high %v1739_v63, %v1743_v0 }
 0x2b0   : > { %v987_v10 = vmul.f32 0.125, %v979_v6  ;;  %v996_v11 = vadd.f32 %v995_v7, %v994_v3  ;;  %v985_v12 = vadd.f32 %v984_v8, %v983_v4  ;;  %v1001_v13 = vrot.slane %v1000_v9, 1 }
 0x2b1   : > { %v4955_v3 = vcombine.low %v1747_v54, %v1751_v56  ;;  %v5083_v4 = vcombine.low %v1875_v57, %v1879_v58  ;;  %v5076_v6 = vcombine.high %v1867_v1, %v1871_v2  ;;  %v4947_v7 = vcombine.low %v1739_v63, %v1743_v0  ;;  %v1823_v54 = vld [vmem:[#allocation15 + $0x3e0] sm:$0xff] }
 0x2b2   : > { %v1003_v14 = vmul.f32 0.125, %v996_v11  ;;  %v1005_v15 = vmul.f32 %v987_v10, %v987_v10  ;;  %v988_v16 = vmul.f32 0.125, %v985_v12  ;;  %v1002_v17 = vadd.f32 %v1001_v13, %v1000_v9  ;;  %v1723_v11 = vld [vmem:[#allocation15 + $0xc0] sm:$0xff] }
 0x2b3   : > { %v1011_v28 = vsub.f32 %v968_v47, %v987_v10  ;;  %v5075_v8 = vcombine.low %v1867_v1, %v1871_v2  ;;  %v4940_v9 = vcombine.high %v1731_v31, %v1735_v32  ;;  %v1727_v12 = vld [vmem:[#allocation15 + $0xe0] sm:$0xff] }
 0x2b4   : > { %v1007_v18 = vsub.f32 %v1003_v14, %v1005_v15  ;;  %v1006_v19 = vmul.f32 %v988_v16, %v988_v16  ;;  %v1004_v20 = vmul.f32 0.125, %v1002_v17  ;;  %v1012_v39 = vsub.f32 %v970_v51, %v988_v16  ;;  %v1851_v13 = vld [vmem:[#allocation15 + $0x4c0] sm:$0xff] }
 0x2b5   : > { %v4932_v14 = vcombine.high %v1723_v11, %v1727_v12  ;;  %v1855_v15 = vld [vmem:[#allocation15 + $0x4e0] sm:$0xff]  ;;  %v4931_v16 = vcombine.low %v1723_v11, %v1727_v12 }
 0x2b6   : > { %v1009_v21 = vmax.f32 %v1007_v18, 0.0  ;;  %v1008_v22 = vsub.f32 %v1004_v20, %v1006_v19  ;;  %v5059_v17 = vcombine.low %v1851_v13, %v1855_v15  ;;  %v5060_v18 = vcombine.high %v1851_v13, %v1855_v15  ;;  %v1715_v19 = vld [vmem:[#allocation15 + $0x80] sm:$0xff] }
 0x2b7   : > { %v1719_v20 = vld [vmem:[#allocation15 + $0xa0] sm:$0xff] }
 0x2b8   : > { %v1013_v23 = vadd.f32 0.8, %v1009_v21  ;;  %v1010_v24 = vmax.f32 %v1008_v22, 0.0  ;;  %v1843_v21 = vld [vmem:[#allocation15 + $0x480] sm:$0xff]  ;;  %v4924_v22 = vcombine.high %v1715_v19, %v1719_v20 }
 0x2b9   : > { %v1951_v57 = vld [vmem:[#allocation15 + $0x7e0] sm:$0xff] }
 0x2ba   : > { %5691 = vrsqrt.f32 %v1013_v23  ;;  %v1014_v25 = vadd.f32 0.8, %v1010_v24  ;;  %v1847_v23 = vld [vmem:[#allocation15 + $0x4a0] sm:$0xff]  ;;  %v4923_v24 = vcombine.low %v1715_v19, %v1719_v20 }
 0x2bb   : > { %v5052_v26 = vcombine.high %v1843_v21, %v1847_v23  ;;  %v1943_v0 = vld [vmem:[#allocation15 + $0x7a0] sm:$0xff] }
 0x2bc   : > { %5693 = vrsqrt.f32 %v1014_v25  ;;  %v5051_v25 = vcombine.low %v1843_v21, %v1847_v23  ;;  %v1791_v15 = vld [vmem:[#allocation15 + $0x2e0] sm:$0xff] }
 0x2bd   : > { %v1783_v23 = vld [vmem:[#allocation15 + $0x2a0] sm:$0xff] }
 0x2c7   : > { %v5692_v30 = vpop.eup %5691 }
 0x2c8   : > { %v1017_v35 = vmul.f32 %v5692_v30, %v1011_v28  ;;  %v1711_v28 = vld [vmem:[#allocation15 + $0x60] sm:$0xff] }
 0x2c9   : > { %v5694_v44 = vpop.eup %5693  ;;  %v4916_v30 = vcombine.high %v1707_v27, %v1711_v28 }
 0x2ca   : > { %v1031_v45 = vmul.f32 %v1024_v29, %v1017_v35  ;;  %v1018_v46 = vmul.f32 %v5694_v44, %v1012_v39  ;;  %v1835_v29 = vld [vmem:[#allocation15 + $0x440] sm:$0xff] }
 0x2cb   : > { %v1839_v35 = vld [vmem:[#allocation15 + $0x460] sm:$0xff] }
 0x2cc   : > { %v1045_v49 = vadd.f32 %v1038_v38, %v1031_v45  ;;  %v1032_v50 = vmul.f32 %v1028_v42, %v1018_v46  ;;  %v4915_v38 = vcombine.low %v1707_v27, %v1711_v28  ;;  %v5043_v39 = vcombine.low %v1835_v29, %v1839_v35  ;;  %v1699_v44 = vld [vmem:[#allocation15] sm:$0xff] }
 0x2cd   : > { %v5044_v42 = vcombine.high %v1835_v29, %v1839_v35  ;;  %v1703_v45 = vld [vmem:[#allocation15 + $0x20] sm:$0xff] }
 0x2ce   : > { %v1049_v52 = vmul.f32 0.2, %v1045_v49  ;;  %v1046_v53 = vadd.f32 %v1042_v48, %v1032_v50  ;;  %vm1047_vm3 = vcmp.gt.f32.partialorder %v1045_v49, 0.0  ;;  %v1827_v46 = vld [vmem:[#allocation15 + $0x400] sm:$0xff]  ;;  %v4908_v48 = vcombine.high %v1699_v44, %v1703_v45 }
 0x2cf   : > { %v4907_v50 = vcombine.low %v1699_v44, %v1703_v45  ;;  %v1775_v35 = vld [vmem:[#allocation15 + $0x260] sm:$0xff] }
 0x2d0   : > { %vm1048_vm4 = vcmp.gt.f32.partialorder %v1046_v53, 0.0  ;;  %v1050_v47 = vmul.f32 0.2, %v1046_v53  ;;  %v1051_v55 = vsel %vm1047_vm3, %v1045_v49, %v1049_v52  ;;  %v1831_v49 = vld [vmem:[#allocation15 + $0x420] sm:$0xff] }
 0x2d1   : > { %v1053_v60 = vpack.c.bf16 %v1051_v55, %v1051_v55  ;;  %v5035_v52 = vcombine.low %v1827_v46, %v1831_v49  ;;  %v1947_v55 = vld [vmem:[#allocation15 + $0x7c0] sm:$0xff] }
 0x2d2   : > { %v1052_v51 = vsel %vm1048_vm4, %v1046_v53, %v1050_v47  ;;  %v5036_v53 = vcombine.high %v1827_v46, %v1831_v49  ;;  %v1819_v47 = vld [vmem:[#allocation15 + $0x3c0] sm:$0xff] }
 0x2d3   : > { %v1054_v59 = vpack.c.bf16 %v1052_v51, %v1052_v51  ;;  %v5028_v56 = vcombine.high %v1819_v47, %v1823_v54  ;;  %v5027_v58 = vcombine.low %v1819_v47, %v1823_v54  ;;  %v5155_v51 = vcombine.low %v1947_v55, %v1951_v57  ;;  %v1767_v49 = vld [vmem:[#allocation15 + $0x220] sm:$0xff] }
 0x2d5   : > { %1493 = vmatprep.mubr.bf16.mxu0 %v1054_v59  ;;  %1534 = vmatprep.mubr.bf16.mxu1 %v1054_v59  ;;  %v5156_v59 = vcombine.high %v1947_v55, %v1951_v57  ;;  %v6585_v57 = vld [vmem:[#allocation15 + $0x1e8] sm:$0xff] }
 0x2d6   : > { %1494 = vmatmul.mubr.bf16.vlgmr.msra.gmra.mxu0 %v1053_v60  ;;  %1535 = vmatmul.mubr.bf16.vlgmr.msra.gmra.mxu1 %v1053_v60  ;;  %v1811_v60 = vld [vmem:[#allocation15 + $0x380] sm:$0xff] }
 0x2d7   : > { %3278 = vmatpush1.bf16.msra.mxu0 %v4963_v34  ;;  %3319 = vmatpush1.bf16.msra.mxu1 %v5091_v37  ;;  %v1859_v34 = vld [vmem:[#allocation15 + $0x500] sm:$0xff] }
 0x2d8   : > { %3279 = vmatprep.subr.bf16.mxu0 %v4956_v61  ;;  %3320 = vmatprep.subr.bf16.mxu1 %v5084_v62  ;;  %v5067_v37 = vcombine.low %v1859_v34, %v1863_v33  ;;  %v5068_v10 = vcombine.high %v1859_v34, %v1863_v33  ;;  %v1815_v61 = vld [vmem:[#allocation15 + $0x3a0] sm:$0xff] }
 0x2d9   : > { %v1939_v62 = vld [vmem:[#allocation15 + $0x780] sm:$0xff]  ;;  %v5020_v63 = vcombine.high %v1811_v60, %v1815_v61  ;;  %v5019_v1 = vcombine.low %v1811_v60, %v1815_v61 }
 0x2da   : > { %v5147_v2 = vcombine.low %v1939_v62, %v1943_v0  ;;  %v1799_v33 = vld [vmem:[#allocation15 + $0x320] sm:$0xff] }
 0x2db   : > { %3280 = vmatpush1.bf16.msra.mxu0 %v4955_v3  ;;  %3321 = vmatpush1.bf16.msra.mxu1 %v5083_v4  ;;  %v5148_v3 = vcombine.high %v1939_v62, %v1943_v0  ;;  %v1803_v4 = vld [vmem:[#allocation15 + $0x340] sm:$0xff]  ;;  %v1119_v0 = vld [vmem:[%s6946_s27] sm:$0xf] }
 0x2dc   : > { %3281 = vmatprep.subr.bf16.mxu0 %v4948_v5  ;;  %3322 = vmatprep.subr.bf16.mxu1 %v5076_v6  ;;  %v1807_v5 = vld [vmem:[#allocation15 + $0x360] sm:$0xff] }
 0x2dd   : > { %v1931_v6 = vld [vmem:[#allocation15 + $0x740] sm:$0xff]  ;;  %v5011_v31 = vcombine.low %v1803_v4, %v1807_v5 }
 0x2df   : > { %3282 = vmatpush1.bf16.msra.mxu0 %v4947_v7  ;;  %3323 = vmatpush1.bf16.msra.mxu1 %v5075_v8  ;;  %v5012_v7 = vcombine.high %v1803_v4, %v1807_v5  ;;  %v1935_v8 = vld [vmem:[#allocation15 + $0x760] sm:$0xff] }
 0x2e0   : > { %3283 = vmatprep.subr.bf16.mxu0 %v4940_v9  ;;  %3324 = vmatprep.subr.bf16.mxu1 %v5068_v10  ;;  %v5139_v32 = vcombine.low %v1931_v6, %v1935_v8  ;;  %v5140_v34 = vcombine.high %v1931_v6, %v1935_v8  ;;  %v1795_v9 = vld [vmem:[#allocation15 + $0x300] sm:$0xff]  ;;  %v1128_v6 = vrot.slane %v1119_v0, %v6569_v43 }
 0x2e1   : > { %v1927_v10 = vld [vmem:[#allocation15 + $0x720] sm:$0xff]  ;;  %v5003_v11 = vcombine.low %v1795_v9, %v1799_v33 }
 0x2e3   : > { %3284 = vmatpush1.bf16.msra.mxu0 %v4939_v36  ;;  %3325 = vmatpush1.bf16.msra.mxu1 %v5067_v37  ;;  %v1923_v36 = vld [vmem:[#allocation15 + $0x700] sm:$0xff]  ;;  %v5004_v37 = vcombine.high %v1795_v9, %v1799_v33 }
 0x2e4   : > { %3285 = vmatprep.subr.bf16.mxu0 %v4932_v14  ;;  %3326 = vmatprep.subr.bf16.mxu1 %v5060_v18  ;;  %v5131_v12 = vcombine.low %v1923_v36, %v1927_v10  ;;  %v5132_v13 = vcombine.high %v1923_v36, %v1927_v10  ;;  %v1787_v14 = vld [vmem:[#allocation15 + $0x2c0] sm:$0xff] }
 0x2e5   : > { %v1919_v18 = vld [vmem:[#allocation15 + $0x6e0] sm:$0xff]  ;;  %v4995_v19 = vcombine.low %v1787_v14, %v1791_v15 }
 0x2e7   : > { %3286 = vmatpush1.bf16.msra.mxu0 %v4931_v16  ;;  %3327 = vmatpush1.bf16.msra.mxu1 %v5059_v17  ;;  %v1915_v16 = vld [vmem:[#allocation15 + $0x6c0] sm:$0xff]  ;;  %v4996_v17 = vcombine.high %v1787_v14, %v1791_v15 }
 0x2e8   : > { %3287 = vmatprep.subr.bf16.mxu0 %v4924_v22  ;;  %3328 = vmatprep.subr.bf16.mxu1 %v5052_v26  ;;  %v5123_v20 = vcombine.low %v1915_v16, %v1919_v18  ;;  %v5124_v21 = vcombine.high %v1915_v16, %v1919_v18  ;;  %v1779_v22 = vld [vmem:[#allocation15 + $0x280] sm:$0xff] }
 0x2e9   : > { %v1911_v26 = vld [vmem:[#allocation15 + $0x6a0] sm:$0xff]  ;;  %v4987_v27 = vcombine.low %v1779_v22, %v1783_v23 }
 0x2eb   : > { %3288 = vmatpush1.bf16.msra.mxu0 %v4923_v24  ;;  %3329 = vmatpush1.bf16.msra.mxu1 %v5051_v25  ;;  %v1907_v24 = vld [vmem:[#allocation15 + $0x680] sm:$0xff]  ;;  %v4988_v25 = vcombine.high %v1779_v22, %v1783_v23 }
 0x2ec   : > { %3289 = vmatprep.subr.bf16.mxu0 %v4916_v30  ;;  %3330 = vmatprep.subr.bf16.mxu1 %v5044_v42  ;;  %v5115_v28 = vcombine.low %v1907_v24, %v1911_v26  ;;  %v5116_v29 = vcombine.high %v1907_v24, %v1911_v26  ;;  %v1771_v30 = vld [vmem:[#allocation15 + $0x240] sm:$0xff] }
 0x2ed   : > { %v1903_v42 = vld [vmem:[#allocation15 + $0x660] sm:$0xff]  ;;  %v4979_v44 = vcombine.low %v1771_v30, %v1775_v35 }
 0x2ef   : > { %3290 = vmatpush1.bf16.msra.mxu0 %v4915_v38  ;;  %3331 = vmatpush1.bf16.msra.mxu1 %v5043_v39  ;;  %v1899_v38 = vld [vmem:[#allocation15 + $0x640] sm:$0xff]  ;;  %v4980_v39 = vcombine.high %v1771_v30, %v1775_v35 }
 0x2f0   : > { %3291 = vmatprep.subr.bf16.mxu0 %v4908_v48  ;;  %3332 = vmatprep.subr.bf16.mxu1 %v5036_v53  ;;  %v5107_v45 = vcombine.low %v1899_v38, %v1903_v42  ;;  %v5108_v46 = vcombine.high %v1899_v38, %v1903_v42  ;;  %v1763_v48 = vld [vmem:[#allocation15 + $0x200] sm:$0xff] }
 0x2f1   : > { %v1895_v53 = vld [vmem:[#allocation15 + $0x620] sm:$0xff]  ;;  %v4971_v47 = vcombine.low %v1763_v48, %v1767_v49 }
 0x2f3   : > { %3292 = vmatpush1.bf16.msra.mxu0 %v4907_v50  ;;  %3333 = vmatpush1.bf16.msra.mxu1 %v5035_v52  ;;  %v1891_v50 = vld [vmem:[#allocation15 + $0x600] sm:$0xff]  ;;  %v4972_v52 = vcombine.high %v1763_v48, %v1767_v49 }
 0x2f4   : > { %3293 = vmatprep.subr.bf16.mxu0 %v5028_v56  ;;  %3334 = vmatprep.subr.bf16.mxu1 %v5156_v59  ;;  %v5100_v54 = vcombine.high %v1891_v50, %v1895_v53  ;;  %v5099_v55 = vcombine.low %v1891_v50, %v1895_v53  ;;  %v6583_v56 = vld [vmem:[#allocation15 + $0x1c8] sm:$0xff] }
 0x2f5   : > { %v6591_v59 = vld [vmem:[#allocation15 + $0x5e8] sm:$0xff]  ;;  %v4965_v60 = vcombine.low %v6583_v56, %v6585_v57 }
 0x2f7   : > { %3294 = vmatpush2.bf16.msra.mxu0 %v5027_v58  ;;  %3335 = vmatpush2.bf16.msra.mxu1 %v5155_v51  ;;  %v6587_v58 = vld [vmem:[#allocation15 + $0x5c8] sm:$0xff]  ;;  %v4966_v51 = vcombine.high %v6583_v56, %v6585_v57 }
 0x2f8   : > { %3295 = vmatprep.subr.bf16.mxu0 %v5020_v63  ;;  %3336 = vmatprep.subr.bf16.mxu1 %v5148_v3  ;;  %v5093_v61 = vcombine.low %v6587_v58, %v6591_v59  ;;  %v5094_v62 = vcombine.high %v6587_v58, %v6591_v59  ;;  %v6600_v63 = vsub.s32 2, %v6563_v40 }
 0x2fa   : > { %v1132_v3 = vrot.slane %v1119_v0, %v6600_v63 }
 0x2fb   : > { %3296 = vmatpush2.bf16.msra.mxu0 %v5019_v1  ;;  %3337 = vmatpush2.bf16.msra.mxu1 %v5147_v2  ;;  %v6606_v1 = vsub.s32 3, %v6563_v40  ;;  %v1124_v2 = vrot.slane %v1119_v0, %v6566_v41 }
 0x2fc   : > { %3297 = vmatprep.subr.bf16.mxu0 %v5012_v7  ;;  %3338 = vmatprep.subr.bf16.mxu1 %v5140_v34 }
 0x2fd   : > { %v1136_v7 = vrot.slane %v1119_v0, %v6606_v1 }
 0x2ff   : > { %3298 = vmatpush2.bf16.msra.mxu0 %v5011_v31  ;;  %3339 = vmatpush2.bf16.msra.mxu1 %v5139_v32 }
 0x300   : > { %3299 = vmatprep.subr.bf16.mxu0 %v5004_v37  ;;  %3340 = vmatprep.subr.bf16.mxu1 %v5132_v13 }
 0x303   : > { %3300 = vmatpush2.bf16.msra.mxu0 %v5003_v11  ;;  %3341 = vmatpush2.bf16.msra.mxu1 %v5131_v12 }
 0x304   : > { %3301 = vmatprep.subr.bf16.mxu0 %v4996_v17  ;;  %3342 = vmatprep.subr.bf16.mxu1 %v5124_v21 }
 0x307   : > { %3302 = vmatpush2.bf16.msra.mxu0 %v4995_v19  ;;  %3343 = vmatpush2.bf16.msra.mxu1 %v5123_v20 }
 0x308   : > { %3303 = vmatprep.subr.bf16.mxu0 %v4988_v25  ;;  %3344 = vmatprep.subr.bf16.mxu1 %v5116_v29 }
 0x30b   : > { %3304 = vmatpush2.bf16.msra.mxu0 %v4987_v27  ;;  %3345 = vmatpush2.bf16.msra.mxu1 %v5115_v28 }
 0x30c   : > { %3305 = vmatprep.subr.bf16.mxu0 %v4980_v39  ;;  %3346 = vmatprep.subr.bf16.mxu1 %v5108_v46 }
 0x30f   : > { %3306 = vmatpush2.bf16.msra.mxu0 %v4979_v44  ;;  %3347 = vmatpush2.bf16.msra.mxu1 %v5107_v45 }
 0x310   : > { %3307 = vmatprep.subr.bf16.mxu0 %v4972_v52  ;;  %3348 = vmatprep.subr.bf16.mxu1 %v5100_v54 }
 0x313   : > { %3308 = vmatpush2.bf16.msra.mxu0 %v4971_v47  ;;  %3349 = vmatpush2.bf16.msra.mxu1 %v5099_v55 }
 0x314   : > { %3359 = vmatprep.subr.bf16.mxu0 %v4966_v51  ;;  %3400 = vmatprep.subr.bf16.mxu1 %v5094_v62 }
 0x396   : > { %v1495_v4 = vpop.f32.mrf.mxu0  ;;  %v1536_v5 = vpop.f32.mrf.mxu1 }
 0x397   : > { %v6612_v8 = vadd.f32 %v1495_v4, %v1124_v2  ;;  %v6614_v31 = vadd.f32 %v1536_v5, %v1132_v3 }
 0x398   : > { %v1497_v32 = vpop.f32.mrf.mxu0  ;;  %v1538_v34 = vpop.f32.mrf.mxu1 }
 0x399   : > { %v1543_v9 = vrot.slane %v6612_v8, 4  ;;  %v1571_v33 = vmul.f32 %v6612_v8, %v6612_v8  ;;  %v1555_v36 = vrot.slane %v6614_v31, 4  ;;  %v1573_v37 = vmul.f32 %v6614_v31, %v6614_v31 }
 0x39a   : > { %v6622_v10 = vadd.f32 %v1497_v32, %v1128_v6  ;;  %v6624_v11 = vadd.f32 %v1538_v34, %v1136_v7  ;;  %v1499_v12 = vpop.f32.mrf.mxu0  ;;  %v1540_v13 = vpop.f32.mrf.mxu1 }
 0x39b   : > { %v1544_v14 = vadd.f32 %v1543_v9, %v6612_v8  ;;  %v1575_v15 = vrot.slane %v1571_v33, 4  ;;  %v1556_v16 = vadd.f32 %v1555_v36, %v6614_v31  ;;  %v1587_v17 = vrot.slane %v1573_v37, 4 }
 0x39c   : > { %v1549_v18 = vrot.slane %v6622_v10, 4  ;;  %v1572_v19 = vmul.f32 %v6622_v10, %v6622_v10  ;;  %v1561_v20 = vrot.slane %v6624_v11, 4  ;;  %v1574_v21 = vmul.f32 %v6624_v11, %v6624_v11  ;;  %v1500_v22 = vpop.f32.mrf.mxu0  ;;  %v1541_v23 = vpop.f32.mrf.mxu1 }
 0x39d   : > { %v1545_v24 = vrot.slane %v1544_v14, 2  ;;  %v1576_v25 = vadd.f32 %v1575_v15, %v1571_v33  ;;  %v1557_v26 = vrot.slane %v1556_v16, 2  ;;  %v1588_v27 = vadd.f32 %v1587_v17, %v1573_v37 }
 0x39e   : > { %v1550_v28 = vadd.f32 %v1549_v18, %v6622_v10  ;;  %v1581_v29 = vrot.slane %v1572_v19, 4  ;;  %v1562_v30 = vadd.f32 %v1561_v20, %v6624_v11  ;;  %v1593_v35 = vrot.slane %v1574_v21, 4 }
 0x39f   : > { %v1546_v38 = vadd.f32 %v1545_v24, %v1544_v14  ;;  %v1577_v39 = vrot.slane %v1576_v25, 2  ;;  %v1558_v42 = vadd.f32 %v1557_v26, %v1556_v16  ;;  %v1589_v44 = vrot.slane %v1588_v27, 2 }
 0x3a0   : > { %v1551_v45 = vrot.slane %v1550_v28, 2  ;;  %v1582_v46 = vadd.f32 %v1581_v29, %v1572_v19  ;;  %v1563_v48 = vrot.slane %v1562_v30, 2  ;;  %v1594_v49 = vadd.f32 %v1593_v35, %v1574_v21 }
 0x3a1   : > { %v1547_v50 = vrot.slane %v1546_v38, 1  ;;  %v1578_v52 = vadd.f32 %v1577_v39, %v1576_v25  ;;  %v1559_v53 = vrot.slane %v1558_v42, 1  ;;  %v1590_v47 = vadd.f32 %v1589_v44, %v1588_v27 }
 0x3a2   : > { %v1552_v54 = vadd.f32 %v1551_v45, %v1550_v28  ;;  %v1583_v55 = vrot.slane %v1582_v46, 2  ;;  %v1564_v51 = vadd.f32 %v1563_v48, %v1562_v30  ;;  %v1595_v62 = vrot.slane %v1594_v49, 2 }
 0x3a3   : > { %v1548_v0 = vadd.f32 %v1547_v50, %v1546_v38  ;;  %v1579_v2 = vrot.slane %v1578_v52, 1  ;;  %v1560_v3 = vadd.f32 %v1559_v53, %v1558_v42  ;;  %v1591_v4 = vrot.slane %v1590_v47, 1  ;;  %v1657_v50 = vld [vmem:[#allocation13] sm:$0xf] }
 0x3a4   : > { %v1553_v5 = vrot.slane %v1552_v54, 1  ;;  %v1584_v6 = vadd.f32 %v1583_v55, %v1582_v46  ;;  %v1565_v7 = vrot.slane %v1564_v51, 1  ;;  %v1596_v32 = vadd.f32 %v1595_v62, %v1594_v49  ;;  %v1631_v49 = vld [vmem:[#allocation12] sm:$0xf] }
 0x3a5   : > { %v1567_v34 = vmul.f32 0.125, %v1548_v0  ;;  %v1580_v9 = vadd.f32 %v1579_v2, %v1578_v52  ;;  %v1569_v33 = vmul.f32 0.125, %v1560_v3  ;;  %v1592_v36 = vadd.f32 %v1591_v4, %v1590_v47 }
 0x3a6   : > { %v1554_v37 = vadd.f32 %v1553_v5, %v1552_v54  ;;  %v1585_v12 = vrot.slane %v1584_v6, 1  ;;  %v1566_v13 = vadd.f32 %v1565_v7, %v1564_v51  ;;  %v1597_v14 = vrot.slane %v1596_v32, 1 }
 0x3a7   : > { %v1599_v15 = vmul.f32 0.125, %v1580_v9  ;;  %v1603_v16 = vmul.f32 %v1567_v34, %v1567_v34  ;;  %v1601_v17 = vmul.f32 0.125, %v1592_v36  ;;  %v1605_v18 = vmul.f32 %v1569_v33, %v1569_v33 }
 0x3a8   : > { %v1568_v19 = vmul.f32 0.125, %v1554_v37  ;;  %v1586_v20 = vadd.f32 %v1585_v12, %v1584_v6  ;;  %v1570_v22 = vmul.f32 0.125, %v1566_v13  ;;  %v1598_v23 = vadd.f32 %v1597_v14, %v1596_v32 }
 0x3a9   : > { %v1607_v21 = vsub.f32 %v1599_v15, %v1603_v16  ;;  %v1609_v24 = vsub.f32 %v1601_v17, %v1605_v18  ;;  %v1615_v52 = vsub.f32 %v6612_v8, %v1567_v34  ;;  %v1636_v53 = vrot.slane %v1631_v49, %v6566_v41 }
 0x3aa   : > { %v1600_v25 = vmul.f32 0.125, %v1586_v20  ;;  %v1604_v26 = vmul.f32 %v1568_v19, %v1568_v19  ;;  %v1602_v28 = vmul.f32 0.125, %v1598_v23  ;;  %v1606_v29 = vmul.f32 %v1570_v22, %v1570_v22  ;;  %v1748_v23 = vld [vmem:[#allocation15 + $0x188] sm:$0xff] }
 0x3ab   : > { %v1611_v27 = vmax.f32 %v1607_v21, 0.0  ;;  %v1613_v30 = vmax.f32 %v1609_v24, 0.0  ;;  %v1617_v54 = vsub.f32 %v6614_v31, %v1569_v33  ;;  %v1644_v55 = vrot.slane %v1631_v49, %v6600_v63  ;;  %v1752_v24 = vld [vmem:[#allocation15 + $0x1a8] sm:$0xff] }
 0x3ac   : > { %v1608_v35 = vsub.f32 %v1600_v25, %v1604_v26  ;;  %v1610_v39 = vsub.f32 %v1602_v28, %v1606_v29  ;;  %v1662_v0 = vrot.slane %v1657_v50, %v6566_v41  ;;  %v1616_v3 = vsub.f32 %v6622_v10, %v1568_v19  ;;  %v1880_v28 = vld [vmem:[#allocation15 + $0x5a8] sm:$0xff] }
 0x3ad   : > { %v1619_v38 = vadd.f32 0.8, %v1611_v27  ;;  %v1621_v42 = vadd.f32 0.8, %v1613_v30  ;;  %v1640_v4 = vrot.slane %v1631_v49, %v6569_v43  ;;  %v1670_v5 = vrot.slane %v1657_v50, %v6600_v63  ;;  %v1876_v27 = vld [vmem:[#allocation15 + $0x588] sm:$0xff] }
 0x3ae   : > { %v1612_v44 = vmax.f32 %v1608_v35, 0.0  ;;  %v1614_v45 = vmax.f32 %v1610_v39, 0.0  ;;  %v1618_v7 = vsub.f32 %v6624_v11, %v1570_v22  ;;  %v1648_v32 = vrot.slane %v1631_v49, %v6606_v1  ;;  %v1740_v39 = vld [vmem:[#allocation15 + $0x148] sm:$0xff] }
 0x3af   : > { %5695 = vrsqrt.f32 %v1619_v38  ;;  %v1666_v33 = vrot.slane %v1657_v50, %v6569_v43  ;;  %v1674_v37 = vrot.slane %v1657_v50, %v6606_v1  ;;  %v4958_v38 = vcombine.high %v1748_v23, %v1752_v24 }
 0x3b0   : > { %5697 = vrsqrt.f32 %v1621_v42  ;;  %v1620_v46 = vadd.f32 0.8, %v1612_v44  ;;  %v1622_v48 = vadd.f32 0.8, %v1614_v45  ;;  %v1744_v42 = vld [vmem:[#allocation15 + $0x168] sm:$0xff]  ;;  %v5086_v44 = vcombine.high %v1876_v27, %v1880_v28 }
 0x3b1   : > { %v1868_v45 = vld [vmem:[#allocation15 + $0x548] sm:$0xff]  ;;  %v5085_v49 = vcombine.low %v1876_v27, %v1880_v28  ;;  %v4950_v50 = vcombine.high %v1740_v39, %v1744_v42  ;;  %v4949_v56 = vcombine.low %v1740_v39, %v1744_v42 }
 0x3b2   : > { %5699 = vrsqrt.f32 %v1620_v46  ;;  %v1872_v46 = vld [vmem:[#allocation15 + $0x568] sm:$0xff] }
 0x3b3   : > { %5701 = vrsqrt.f32 %v1622_v48  ;;  %v4957_v48 = vcombine.low %v1748_v23, %v1752_v24  ;;  %v5077_v57 = vcombine.low %v1868_v45, %v1872_v46  ;;  %v1820_v23 = vld [vmem:[#allocation15 + $0x3c8] sm:$0xff] }
 0x3b4   : > { %v1824_v24 = vld [vmem:[#allocation15 + $0x3e8] sm:$0xff] }
 0x3b5   : > { %v1952_v27 = vld [vmem:[#allocation15 + $0x7e8] sm:$0xff]  ;;  %v5030_v39 = vcombine.high %v1820_v23, %v1824_v24 }
 0x3bc   : > { %v5696_v47 = vpop.eup %5695 }
 0x3bd   : > { %v5698_v51 = vpop.eup %5697  ;;  %v1627_v62 = vmul.f32 %v5696_v47, %v1615_v52  ;;  %v5078_v52 = vcombine.high %v1868_v45, %v1872_v46  ;;  %v1736_v47 = vld [vmem:[#allocation15 + $0x128] sm:$0xff] }
 0x3be   : > { %v1629_v2 = vmul.f32 %v5698_v51, %v1617_v54  ;;  %v1860_v54 = vld [vmem:[#allocation15 + $0x508] sm:$0xff] }
 0x3bf   : > { %v5700_v6 = vpop.eup %5699  ;;  %v1653_v8 = vmul.f32 %v1636_v53, %v1627_v62  ;;  %v1732_v53 = vld [vmem:[#allocation15 + $0x108] sm:$0xff] }
 0x3c0   : > { %v5702_v31 = vpop.eup %5701  ;;  %v1655_v34 = vmul.f32 %v1644_v55, %v1629_v2  ;;  %v1628_v9 = vmul.f32 %v5700_v6, %v1616_v3  ;;  %v1864_v55 = vld [vmem:[#allocation15 + $0x528] sm:$0xff]  ;;  %v4942_v58 = vcombine.high %v1732_v53, %v1736_v47 }
 0x3c1   : > { %v1630_v36 = vmul.f32 %v5702_v31, %v1618_v7  ;;  %v1679_v12 = vadd.f32 %v1662_v0, %v1653_v8  ;;  %v5070_v59 = vcombine.high %v1860_v54, %v1864_v55  ;;  %v1852_v51 = vld [vmem:[#allocation15 + $0x4c8] sm:$0xff]  ;;  %v4941_v0 = vcombine.low %v1732_v53, %v1736_v47 }
 0x3c2   : > { %v1654_v10 = vmul.f32 %v1640_v4, %v1628_v9  ;;  %v1681_v13 = vadd.f32 %v1670_v5, %v1655_v34  ;;  %v1856_v62 = vld [vmem:[#allocation15 + $0x4e8] sm:$0xff]  ;;  %v5069_v2 = vcombine.low %v1860_v54, %v1864_v55 }
 0x3c3   : > { %v1656_v14 = vmul.f32 %v1648_v32, %v1630_v36  ;;  %v1687_v15 = vmul.f32 0.2, %v1679_v12  ;;  %vm1683_vm5 = vcmp.gt.f32.partialorder %v1679_v12, 0.0  ;;  %v5062_v4 = vcombine.high %v1852_v51, %v1856_v62  ;;  %v1716_v5 = vld [vmem:[#allocation15 + $0x88] sm:$0xff] }
 0x3c4   : > { %v1680_v16 = vadd.f32 %v1666_v33, %v1654_v10  ;;  %v1689_v17 = vmul.f32 0.2, %v1681_v13  ;;  %vm1685_vm6 = vcmp.gt.f32.partialorder %v1681_v13, 0.0  ;;  %v1720_v6 = vld [vmem:[#allocation15 + $0xa8] sm:$0xff]  ;;  %v5061_v31 = vcombine.low %v1852_v51, %v1856_v62 }
 0x3c5   : > { %v1682_v18 = vadd.f32 %v1674_v37, %v1656_v14  ;;  %v1691_v20 = vsel %vm1683_vm5, %v1679_v12, %v1687_v15  ;;  %v1844_v8 = vld [vmem:[#allocation15 + $0x488] sm:$0xff]  ;;  %v4926_v34 = vcombine.high %v1716_v5, %v1720_v6  ;;  %v4925_v10 = vcombine.low %v1716_v5, %v1720_v6 }
 0x3c6   : > { %vm1684_vm7 = vcmp.gt.f32.partialorder %v1680_v16, 0.0  ;;  %v1688_v11 = vmul.f32 0.2, %v1680_v16  ;;  %v1693_v22 = vsel %vm1685_vm6, %v1681_v13, %v1689_v17  ;;  %v6652_v30 = vpack.c.bf16 %v1691_v20, %v1691_v20  ;;  %v1848_v7 = vld [vmem:[#allocation15 + $0x4a8] sm:$0xff] }
 0x3c7   : > { %vm1686_vm8 = vcmp.gt.f32.partialorder %v1682_v18, 0.0  ;;  %v1690_v19 = vmul.f32 0.2, %v1682_v18  ;;  %v6655_v35 = vpack.c.bf16 %v1693_v22, %v1693_v22  ;;  %v5054_v9 = vcombine.high %v1844_v8, %v1848_v7  ;;  %v1708_v33 = vld [vmem:[#allocation15 + $0x48] sm:$0xff] }
 0x3c8   : > { %v1692_v21 = vsel %vm1684_vm7, %v1680_v16, %v1688_v11  ;;  %v1712_v36 = vld [vmem:[#allocation15 + $0x68] sm:$0xff]  ;;  %v5053_v13 = vcombine.low %v1844_v8, %v1848_v7 }
 0x3c9   : > { %v6648_v25 = vpack.c.bf16 %v1692_v21, %v1692_v21  ;;  %v1694_v26 = vsel %vm1686_vm8, %v1682_v18, %v1690_v19  ;;  %v1836_v37 = vld [vmem:[#allocation15 + $0x448] sm:$0xff]  ;;  %v4918_v14 = vcombine.high %v1708_v33, %v1712_v36  ;;  %v4917_v19 = vcombine.low %v1708_v33, %v1712_v36 }
 0x3ca   : > { %v6650_v29 = vpack.c.bf16 %v1694_v26, %v1694_v26  ;;  %v1840_v12 = vld [vmem:[#allocation15 + $0x468] sm:$0xff] }
 0x3cb   : > { %3309 = vmatprep.mubr.bf16.mxu0 %v6648_v25  ;;  %v5046_v15 = vcombine.high %v1836_v37, %v1840_v12  ;;  %v1700_v16 = vld [vmem:[#allocation15 + $0x8] sm:$0xff]  ;;  %v5045_v20 = vcombine.low %v1836_v37, %v1840_v12 }
 0x3cc   : > { %3350 = vmatprep.mubr.bf16.mxu1 %v6650_v29  ;;  %3310 = vmatmul.mubr.bf16.vlgmr.msra.gmra.mxu0 %v6652_v30  ;;  %v1704_v17 = vld [vmem:[#allocation15 + $0x28] sm:$0xff] }
 0x3cd   : > { %3351 = vmatmul.mubr.bf16.vlgmr.msra.gmra.mxu1 %v6655_v35  ;;  %3360 = vmatpush1.bf16.msra.mxu0 %v4965_v60  ;;  %v1724_v60 = vld [vmem:[#allocation15 + $0xc8] sm:$0xff]  ;;  %v4910_v21 = vcombine.high %v1700_v16, %v1704_v17  ;;  %v4909_v28 = vcombine.low %v1700_v16, %v1704_v17 }
 0x3ce   : > { %3401 = vmatpush1.bf16.msra.mxu1 %v5093_v61  ;;  %3391 = vmatprep.mubr.bf16.mxu0 %v6648_v25  ;;  %v1728_v61 = vld [vmem:[#allocation15 + $0xe8] sm:$0xff] }
 0x3cf   : > { %3432 = vmatprep.mubr.bf16.mxu1 %v6650_v29  ;;  %3361 = vmatprep.subr.bf16.mxu0 %v4958_v38  ;;  %v4934_v3 = vcombine.high %v1724_v60, %v1728_v61  ;;  %v4933_v32 = vcombine.low %v1724_v60, %v1728_v61  ;;  %v1828_v18 = vld [vmem:[#allocation15 + $0x408] sm:$0xff] }
 0x3d0   : > { %3402 = vmatprep.subr.bf16.mxu1 %v5086_v44  ;;  %v1832_v11 = vld [vmem:[#allocation15 + $0x428] sm:$0xff] }
 0x3d1   : > { %3362 = vmatpush1.bf16.msra.mxu0 %v4957_v48  ;;  %v5038_v22 = vcombine.high %v1828_v18, %v1832_v11  ;;  %v1948_v26 = vld [vmem:[#allocation15 + $0x7c8] sm:$0xff]  ;;  %v5037_v38 = vcombine.low %v1828_v18, %v1832_v11 }
 0x3d2   : > { %3403 = vmatpush1.bf16.msra.mxu1 %v5085_v49  ;;  %3363 = vmatprep.subr.bf16.mxu0 %v4950_v50  ;;  %v5158_v42 = vcombine.high %v1948_v26, %v1952_v27  ;;  %v1812_v44 = vld [vmem:[#allocation15 + $0x388] sm:$0xff]  ;;  %v5029_v49 = vcombine.low %v1820_v23, %v1824_v24  ;;  %v5157_v50 = vcombine.low %v1948_v26, %v1952_v27 }
 0x3d3   : > { %3404 = vmatprep.subr.bf16.mxu1 %v5078_v52  ;;  %v1816_v45 = vld [vmem:[#allocation15 + $0x3a8] sm:$0xff] }
 0x3d4   : > { %v1940_v46 = vld [vmem:[#allocation15 + $0x788] sm:$0xff]  ;;  %v5022_v52 = vcombine.high %v1812_v44, %v1816_v45 }
 0x3d5   : > { %3364 = vmatpush1.bf16.msra.mxu0 %v4949_v56  ;;  %v1944_v48 = vld [vmem:[#allocation15 + $0x7a8] sm:$0xff] }
 0x3d6   : > { %3405 = vmatpush1.bf16.msra.mxu1 %v5077_v57  ;;  %3365 = vmatprep.subr.bf16.mxu0 %v4942_v58  ;;  %v5150_v53 = vcombine.high %v1940_v46, %v1944_v48  ;;  %v1804_v47 = vld [vmem:[#allocation15 + $0x348] sm:$0xff]  ;;  %v5021_v57 = vcombine.low %v1812_v44, %v1816_v45  ;;  %v5149_v58 = vcombine.low %v1940_v46, %v1944_v48  ;;  %v1757_v45 = vld [vmem:[#allocation15 + $0x1d0] sm:$0xff] }
 0x3d7   : > { %3406 = vmatprep.subr.bf16.mxu1 %v5070_v59  ;;  %v1808_v54 = vld [vmem:[#allocation15 + $0x368] sm:$0xff]  ;;  %v1761_v46 = vld [vmem:[#allocation15 + $0x1f0] sm:$0xff] }
 0x3d8   : > { %v1932_v55 = vld [vmem:[#allocation15 + $0x748] sm:$0xff]  ;;  %v5014_v59 = vcombine.high %v1804_v47, %v1808_v54  ;;  %v1885_v48 = vld [vmem:[#allocation15 + $0x5d0] sm:$0xff] }
 0x3d9   : > { %3366 = vmatpush1.bf16.msra.mxu0 %v4941_v0  ;;  %v1936_v56 = vld [vmem:[#allocation15 + $0x768] sm:$0xff] }
 0x3da   : > { %3407 = vmatpush1.bf16.msra.mxu1 %v5069_v2  ;;  %3367 = vmatprep.subr.bf16.mxu0 %v4934_v3  ;;  %v5142_v60 = vcombine.high %v1932_v55, %v1936_v56  ;;  %v1796_v61 = vld [vmem:[#allocation15 + $0x308] sm:$0xff]  ;;  %v5013_v2 = vcombine.low %v1804_v47, %v1808_v54  ;;  %v5141_v3 = vcombine.low %v1932_v55, %v1936_v56  ;;  %v1749_v54 = vld [vmem:[#allocation15 + $0x190] sm:$0xff] }
 0x3db   : > { %3408 = vmatprep.subr.bf16.mxu1 %v5062_v4  ;;  %v1800_v51 = vld [vmem:[#allocation15 + $0x328] sm:$0xff]  ;;  %v1753_v55 = vld [vmem:[#allocation15 + $0x1b0] sm:$0xff]  ;;  %v4967_v56 = vcombine.low %v1757_v45, %v1761_v46 }
 0x3dc   : > { %v1924_v62 = vld [vmem:[#allocation15 + $0x708] sm:$0xff]  ;;  %v5006_v4 = vcombine.high %v1796_v61, %v1800_v51 }
 0x3dd   : > { %3368 = vmatpush1.bf16.msra.mxu0 %v4933_v32  ;;  %v1928_v0 = vld [vmem:[#allocation15 + $0x728] sm:$0xff] }
 0x3de   : > { %3409 = vmatpush1.bf16.msra.mxu1 %v5061_v31  ;;  %3369 = vmatprep.subr.bf16.mxu0 %v4926_v34  ;;  %v5134_v5 = vcombine.high %v1924_v62, %v1928_v0  ;;  %v1788_v6 = vld [vmem:[#allocation15 + $0x2c8] sm:$0xff]  ;;  %v5005_v31 = vcombine.low %v1796_v61, %v1800_v51  ;;  %v5133_v34 = vcombine.low %v1924_v62, %v1928_v0  ;;  %v1741_v61 = vld [vmem:[#allocation15 + $0x150] sm:$0xff] }
 0x3df   : > { %3410 = vmatprep.subr.bf16.mxu1 %v5054_v9  ;;  %v1792_v8 = vld [vmem:[#allocation15 + $0x2e8] sm:$0xff]  ;;  %v1745_v51 = vld [vmem:[#allocation15 + $0x170] sm:$0xff] }
 0x3e0   : > { %v1916_v7 = vld [vmem:[#allocation15 + $0x6c8] sm:$0xff]  ;;  %v4998_v9 = vcombine.high %v1788_v6, %v1792_v8  ;;  %v1869_v0 = vld [vmem:[#allocation15 + $0x550] sm:$0xff] }
 0x3e1   : > { %3370 = vmatpush1.bf16.msra.mxu0 %v4925_v10  ;;  %v1920_v32 = vld [vmem:[#allocation15 + $0x6e8] sm:$0xff] }
 0x3e2   : > { %3411 = vmatpush1.bf16.msra.mxu1 %v5053_v13  ;;  %3371 = vmatprep.subr.bf16.mxu0 %v4918_v14  ;;  %v5126_v33 = vcombine.high %v1916_v7, %v1920_v32  ;;  %v1780_v36 = vld [vmem:[#allocation15 + $0x288] sm:$0xff]  ;;  %v4997_v13 = vcombine.low %v1788_v6, %v1792_v8  ;;  %v5125_v14 = vcombine.low %v1916_v7, %v1920_v32  ;;  %v1733_v8 = vld [vmem:[#allocation15 + $0x110] sm:$0xff] }
 0x3e3   : > { %3412 = vmatprep.subr.bf16.mxu1 %v5046_v15  ;;  %v1784_v37 = vld [vmem:[#allocation15 + $0x2a8] sm:$0xff]  ;;  %v1737_v7 = vld [vmem:[#allocation15 + $0x130] sm:$0xff] }
 0x3e4   : > { %v1908_v12 = vld [vmem:[#allocation15 + $0x688] sm:$0xff]  ;;  %v4990_v15 = vcombine.high %v1780_v36, %v1784_v37  ;;  %v1861_v32 = vld [vmem:[#allocation15 + $0x510] sm:$0xff] }
 0x3e5   : > { %3372 = vmatpush1.bf16.msra.mxu0 %v4917_v19  ;;  %v1912_v10 = vld [vmem:[#allocation15 + $0x6a8] sm:$0xff] }
 0x3e6   : > { %3413 = vmatpush1.bf16.msra.mxu1 %v5045_v20  ;;  %3373 = vmatprep.subr.bf16.mxu0 %v4910_v21  ;;  %v5118_v16 = vcombine.high %v1908_v12, %v1912_v10  ;;  %v1772_v17 = vld [vmem:[#allocation15 + $0x248] sm:$0xff]  ;;  %v4989_v20 = vcombine.low %v1780_v36, %v1784_v37  ;;  %v5117_v21 = vcombine.low %v1908_v12, %v1912_v10  ;;  %v1725_v37 = vld [vmem:[#allocation15 + $0xd0] sm:$0xff] }
 0x3e7   : > { %3414 = vmatprep.subr.bf16.mxu1 %v5038_v22  ;;  %v1776_v18 = vld [vmem:[#allocation15 + $0x268] sm:$0xff]  ;;  %v1729_v12 = vld [vmem:[#allocation15 + $0xf0] sm:$0xff] }
 0x3e8   : > { %v1900_v11 = vld [vmem:[#allocation15 + $0x648] sm:$0xff]  ;;  %v4982_v22 = vcombine.high %v1772_v17, %v1776_v18  ;;  %v1853_v10 = vld [vmem:[#allocation15 + $0x4d0] sm:$0xff] }
 0x3e9   : > { %3374 = vmatpush1.bf16.msra.mxu0 %v4909_v28  ;;  %v1904_v19 = vld [vmem:[#allocation15 + $0x668] sm:$0xff] }
 0x3ea   : > { %3415 = vmatpush1.bf16.msra.mxu1 %v5037_v38  ;;  %3375 = vmatprep.subr.bf16.mxu0 %v5030_v39  ;;  %v5110_v23 = vcombine.high %v1900_v11, %v1904_v19  ;;  %v1764_v24 = vld [vmem:[#allocation15 + $0x208] sm:$0xff]  ;;  %v4981_v38 = vcombine.low %v1772_v17, %v1776_v18  ;;  %v5109_v39 = vcombine.low %v1900_v11, %v1904_v19  ;;  %v1717_v18 = vld [vmem:[#allocation15 + $0x90] sm:$0xff] }
 0x3eb   : > { %3416 = vmatprep.subr.bf16.mxu1 %v5158_v42  ;;  %v1768_v26 = vld [vmem:[#allocation15 + $0x228] sm:$0xff]  ;;  %v1721_v11 = vld [vmem:[#allocation15 + $0xb0] sm:$0xff] }
 0x3ec   : > { %v1892_v27 = vld [vmem:[#allocation15 + $0x608] sm:$0xff]  ;;  %v4974_v42 = vcombine.high %v1764_v24, %v1768_v26  ;;  %v1845_v19 = vld [vmem:[#allocation15 + $0x490] sm:$0xff] }
 0x3ed   : > { %3376 = vmatpush2.bf16.msra.mxu0 %v5029_v49  ;;  %v1896_v28 = vld [vmem:[#allocation15 + $0x628] sm:$0xff]  ;;  %v1889_v49 = vld [vmem:[#allocation15 + $0x5f0] sm:$0xff] }
 0x3ee   : > { %3417 = vmatpush2.bf16.msra.mxu1 %v5157_v50  ;;  %3377 = vmatprep.subr.bf16.mxu0 %v5022_v52  ;;  %v5102_v44 = vcombine.high %v1892_v27, %v1896_v28  ;;  %v4973_v50 = vcombine.low %v1764_v24, %v1768_v26  ;;  %v5101_v52 = vcombine.low %v1892_v27, %v1896_v28  ;;  %v1709_v26 = vld [vmem:[#allocation15 + $0x50] sm:$0xff] }
 0x3ef   : > { %3418 = vmatprep.subr.bf16.mxu1 %v5150_v53  ;;  %v4968_v53 = vcombine.high %v1757_v45, %v1761_v46  ;;  %v5096_v47 = vcombine.high %v1885_v48, %v1889_v49  ;;  %v1713_v27 = vld [vmem:[#allocation15 + $0x70] sm:$0xff] }
 0x3f0   : > { %v1837_v28 = vld [vmem:[#allocation15 + $0x450] sm:$0xff] }
 0x3f1   : > { %3378 = vmatpush2.bf16.msra.mxu0 %v5021_v57  ;;  %v1877_v57 = vld [vmem:[#allocation15 + $0x590] sm:$0xff] }
 0x3f2   : > { %3419 = vmatpush2.bf16.msra.mxu1 %v5149_v58  ;;  %3379 = vmatprep.subr.bf16.mxu0 %v5014_v59  ;;  %v1881_v58 = vld [vmem:[#allocation15 + $0x5b0] sm:$0xff]  ;;  %v5095_v59 = vcombine.low %v1885_v48, %v1889_v49 }
 0x3f3   : > { %3420 = vmatprep.subr.bf16.mxu1 %v5142_v60  ;;  %v4960_v60 = vcombine.high %v1749_v54, %v1753_v55  ;;  %v5088_v62 = vcombine.high %v1877_v57, %v1881_v58  ;;  %v1701_v46 = vld [vmem:[#allocation15 + $0x10] sm:$0xff] }
 0x3f4   : > { %v1705_v48 = vld [vmem:[#allocation15 + $0x30] sm:$0xff] }
 0x3f5   : > { %3380 = vmatpush2.bf16.msra.mxu0 %v5013_v2  ;;  %v1873_v2 = vld [vmem:[#allocation15 + $0x570] sm:$0xff] }
 0x3f6   : > { %3421 = vmatpush2.bf16.msra.mxu1 %v5141_v3  ;;  %3381 = vmatprep.subr.bf16.mxu0 %v5006_v4  ;;  %v4959_v3 = vcombine.low %v1749_v54, %v1753_v55  ;;  %v5087_v4 = vcombine.low %v1877_v57, %v1881_v58  ;;  %v5080_v6 = vcombine.high %v1869_v0, %v1873_v2  ;;  %v1829_v49 = vld [vmem:[#allocation15 + $0x410] sm:$0xff] }
 0x3f7   : > { %3422 = vmatprep.subr.bf16.mxu1 %v5134_v5  ;;  %v4952_v5 = vcombine.high %v1741_v61, %v1745_v51  ;;  %v1821_v55 = vld [vmem:[#allocation15 + $0x3d0] sm:$0xff] }
 0x3f8   : > { %v1949_v57 = vld [vmem:[#allocation15 + $0x7d0] sm:$0xff] }
 0x3f9   : > { %3382 = vmatpush2.bf16.msra.mxu0 %v5005_v31  ;;  %v1865_v31 = vld [vmem:[#allocation15 + $0x530] sm:$0xff] }
 0x3fa   : > { %3423 = vmatpush2.bf16.msra.mxu1 %v5133_v34  ;;  %3383 = vmatprep.subr.bf16.mxu0 %v4998_v9  ;;  %v4951_v34 = vcombine.low %v1741_v61, %v1745_v51  ;;  %v5079_v9 = vcombine.low %v1869_v0, %v1873_v2  ;;  %v5072_v36 = vcombine.high %v1861_v32, %v1865_v31  ;;  %v1953_v58 = vld [vmem:[#allocation15 + $0x7f0] sm:$0xff] }
 0x3fb   : > { %3424 = vmatprep.subr.bf16.mxu1 %v5126_v33  ;;  %v4944_v33 = vcombine.high %v1733_v8, %v1737_v7  ;;  %v5160_v51 = vcombine.high %v1949_v57, %v1953_v58  ;;  %v1817_v0 = vld [vmem:[#allocation15 + $0x3b0] sm:$0xff] }
 0x3fc   : > { %v1941_v2 = vld [vmem:[#allocation15 + $0x790] sm:$0xff] }
 0x3fd   : > { %3384 = vmatpush2.bf16.msra.mxu0 %v4997_v13  ;;  %v1857_v13 = vld [vmem:[#allocation15 + $0x4f0] sm:$0xff] }
 0x3fe   : > { %3425 = vmatpush2.bf16.msra.mxu1 %v5125_v14  ;;  %3385 = vmatprep.subr.bf16.mxu0 %v4990_v15  ;;  %v4943_v14 = vcombine.low %v1733_v8, %v1737_v7  ;;  %v5071_v15 = vcombine.low %v1861_v32, %v1865_v31  ;;  %v5064_v17 = vcombine.high %v1853_v10, %v1857_v13  ;;  %v1805_v7 = vld [vmem:[#allocation15 + $0x350] sm:$0xff] }
 0x3ff   : > { %3426 = vmatprep.subr.bf16.mxu1 %v5118_v16  ;;  %v4936_v16 = vcombine.high %v1725_v37, %v1729_v12  ;;  %v1809_v32 = vld [vmem:[#allocation15 + $0x370] sm:$0xff] }
 0x400   : > { %v1933_v31 = vld [vmem:[#allocation15 + $0x750] sm:$0xff] }
 0x401   : > { %3386 = vmatpush2.bf16.msra.mxu0 %v4989_v20  ;;  %v1849_v20 = vld [vmem:[#allocation15 + $0x4b0] sm:$0xff] }
 0x402   : > { %3427 = vmatpush2.bf16.msra.mxu1 %v5117_v21  ;;  %3387 = vmatprep.subr.bf16.mxu0 %v4982_v22  ;;  %v4935_v21 = vcombine.low %v1725_v37, %v1729_v12  ;;  %v5063_v22 = vcombine.low %v1853_v10, %v1857_v13  ;;  %v5056_v24 = vcombine.high %v1845_v19, %v1849_v20  ;;  %v1797_v12 = vld [vmem:[#allocation15 + $0x310] sm:$0xff] }
 0x403   : > { %3428 = vmatprep.subr.bf16.mxu1 %v5110_v23  ;;  %v4928_v23 = vcombine.high %v1717_v18, %v1721_v11  ;;  %v1801_v10 = vld [vmem:[#allocation15 + $0x330] sm:$0xff] }
 0x404   : > { %v1925_v13 = vld [vmem:[#allocation15 + $0x710] sm:$0xff] }
 0x405   : > { %3388 = vmatpush2.bf16.msra.mxu0 %v4981_v38  ;;  %v1841_v38 = vld [vmem:[#allocation15 + $0x470] sm:$0xff] }
 0x406   : > { %3429 = vmatpush2.bf16.msra.mxu1 %v5109_v39  ;;  %3389 = vmatprep.subr.bf16.mxu0 %v4974_v42  ;;  %v4927_v39 = vcombine.low %v1717_v18, %v1721_v11  ;;  %v5055_v42 = vcombine.low %v1845_v19, %v1849_v20  ;;  %v5048_v45 = vcombine.high %v1837_v28, %v1841_v38  ;;  %v1789_v11 = vld [vmem:[#allocation15 + $0x2d0] sm:$0xff] }
 0x407   : > { %3430 = vmatprep.subr.bf16.mxu1 %v5102_v44  ;;  %v4920_v44 = vcombine.high %v1709_v26, %v1713_v27  ;;  %v1793_v19 = vld [vmem:[#allocation15 + $0x2f0] sm:$0xff] }
 0x408   : > { %v1917_v20 = vld [vmem:[#allocation15 + $0x6d0] sm:$0xff] }
 0x409   : > { %3390 = vmatpush2.bf16.msra.mxu0 %v4973_v50  ;;  %v1833_v50 = vld [vmem:[#allocation15 + $0x430] sm:$0xff] }
 0x40a   : > { %3431 = vmatpush2.bf16.msra.mxu1 %v5101_v52  ;;  %3441 = vmatprep.subr.bf16.mxu0 %v4968_v53  ;;  %v4919_v52 = vcombine.low %v1709_v26, %v1713_v27  ;;  %v5047_v53 = vcombine.low %v1837_v28, %v1841_v38  ;;  %v5040_v54 = vcombine.high %v1829_v49, %v1833_v50  ;;  %v1781_v27 = vld [vmem:[#allocation15 + $0x290] sm:$0xff] }
 0x40b   : > { %3482 = vmatprep.subr.bf16.mxu1 %v5096_v47  ;;  %v4912_v47 = vcombine.high %v1701_v46, %v1705_v48  ;;  %v1785_v28 = vld [vmem:[#allocation15 + $0x2b0] sm:$0xff] }
 0x40c   : > { %3392 = vmatmul.mubr.bf16.vlgmr.msra.gmra.mxu0 %v6652_v30  ;;  %v1909_v38 = vld [vmem:[#allocation15 + $0x690] sm:$0xff] }
 0x40d   : > { %3433 = vmatmul.mubr.bf16.vlgmr.msra.gmra.mxu1 %v6655_v35  ;;  %3442 = vmatpush1.bf16.msra.mxu0 %v4967_v56  ;;  %v1825_v56 = vld [vmem:[#allocation15 + $0x3f0] sm:$0xff] }
 0x40e   : > { %3473 = vmatprep.mubr.bf16.mxu0 %v6648_v25  ;;  %3483 = vmatpush1.bf16.msra.mxu1 %v5095_v59  ;;  %v4911_v59 = vcombine.low %v1701_v46, %v1705_v48  ;;  %v5032_v61 = vcombine.high %v1821_v55, %v1825_v56  ;;  %v1773_v48 = vld [vmem:[#allocation15 + $0x250] sm:$0xff] }
 0x40f   : > { %3514 = vmatprep.mubr.bf16.mxu1 %v6650_v29  ;;  %3443 = vmatprep.subr.bf16.mxu0 %v4960_v60  ;;  %v5039_v60 = vcombine.low %v1829_v49, %v1833_v50  ;;  %v1777_v49 = vld [vmem:[#allocation15 + $0x270] sm:$0xff] }
 0x410   : > { %3484 = vmatprep.subr.bf16.mxu1 %v5088_v62  ;;  %v1813_v62 = vld [vmem:[#allocation15 + $0x390] sm:$0xff] }
 0x411   : > { %3444 = vmatpush1.bf16.msra.mxu0 %v4959_v3  ;;  %v1945_v3 = vld [vmem:[#allocation15 + $0x7b0] sm:$0xff] }
 0x412   : > { %3485 = vmatpush1.bf16.msra.mxu1 %v5087_v4  ;;  %3445 = vmatprep.subr.bf16.mxu0 %v4952_v5  ;;  %v5031_v4 = vcombine.low %v1821_v55, %v1825_v56  ;;  %v5159_v5 = vcombine.low %v1949_v57, %v1953_v58  ;;  %v5152_v8 = vcombine.high %v1941_v2, %v1945_v3  ;;  %v1901_v50 = vld [vmem:[#allocation15 + $0x650] sm:$0xff] }
 0x413   : > { %3486 = vmatprep.subr.bf16.mxu1 %v5080_v6  ;;  %v5024_v6 = vcombine.high %v1813_v62, %v1817_v0  ;;  %v1765_v56 = vld [vmem:[#allocation15 + $0x210] sm:$0xff] }
 0x414   : > { %v1769_v57 = vld [vmem:[#allocation15 + $0x230] sm:$0xff] }
 0x415   : > { %3446 = vmatpush1.bf16.msra.mxu0 %v4951_v34  ;;  %v1937_v34 = vld [vmem:[#allocation15 + $0x770] sm:$0xff] }
 0x416   : > { %3487 = vmatpush1.bf16.msra.mxu1 %v5079_v9  ;;  %3447 = vmatprep.subr.bf16.mxu0 %v4944_v33  ;;  %v5023_v9 = vcombine.low %v1813_v62, %v1817_v0  ;;  %v5151_v33 = vcombine.low %v1941_v2, %v1945_v3  ;;  %v5144_v37 = vcombine.high %v1933_v31, %v1937_v34  ;;  %v1893_v58 = vld [vmem:[#allocation15 + $0x610] sm:$0xff]  ;;  %v1758_v0 = vld [vmem:[#allocation15 + $0x1d8] sm:$0xff] }
 0x417   : > { %3488 = vmatprep.subr.bf16.mxu1 %v5072_v36  ;;  %v5016_v36 = vcombine.high %v1805_v7, %v1809_v32  ;;  %v1762_v2 = vld [vmem:[#allocation15 + $0x1f8] sm:$0xff] }
 0x418   : > { %v1886_v3 = vld [vmem:[#allocation15 + $0x5d8] sm:$0xff] }
 0x419   : > { %3448 = vmatpush1.bf16.msra.mxu0 %v4943_v14  ;;  %v1929_v14 = vld [vmem:[#allocation15 + $0x730] sm:$0xff] }
 0x41a   : > { %3489 = vmatpush1.bf16.msra.mxu1 %v5071_v15  ;;  %3449 = vmatprep.subr.bf16.mxu0 %v4936_v16  ;;  %v5015_v15 = vcombine.low %v1805_v7, %v1809_v32  ;;  %v5143_v16 = vcombine.low %v1933_v31, %v1937_v34  ;;  %v5136_v18 = vcombine.high %v1925_v13, %v1929_v14  ;;  %v1750_v32 = vld [vmem:[#allocation15 + $0x198] sm:$0xff] }
 0x41b   : > { %3490 = vmatprep.subr.bf16.mxu1 %v5064_v17  ;;  %v5008_v17 = vcombine.high %v1797_v12, %v1801_v10  ;;  %v1754_v31 = vld [vmem:[#allocation15 + $0x1b8] sm:$0xff]  ;;  %v4969_v34 = vcombine.low %v1758_v0, %v1762_v2 }
 0x41d   : > { %3450 = vmatpush1.bf16.msra.mxu0 %v4935_v21  ;;  %v1921_v21 = vld [vmem:[#allocation15 + $0x6f0] sm:$0xff] }
 0x41e   : > { %3491 = vmatpush1.bf16.msra.mxu1 %v5063_v22  ;;  %3451 = vmatprep.subr.bf16.mxu0 %v4928_v23  ;;  %v5007_v22 = vcombine.low %v1797_v12, %v1801_v10  ;;  %v5135_v23 = vcombine.low %v1925_v13, %v1929_v14  ;;  %v5128_v26 = vcombine.high %v1917_v20, %v1921_v21  ;;  %v1742_v12 = vld [vmem:[#allocation15 + $0x158] sm:$0xff] }
 0x41f   : > { %3492 = vmatprep.subr.bf16.mxu1 %v5056_v24  ;;  %v5000_v24 = vcombine.high %v1789_v11, %v1793_v19  ;;  %v1746_v10 = vld [vmem:[#allocation15 + $0x178] sm:$0xff] }
 0x420   : > { %v1870_v14 = vld [vmem:[#allocation15 + $0x558] sm:$0xff] }
 0x421   : > { %3452 = vmatpush1.bf16.msra.mxu0 %v4927_v39  ;;  %v1913_v39 = vld [vmem:[#allocation15 + $0x6b0] sm:$0xff] }
 0x422   : > { %3493 = vmatpush1.bf16.msra.mxu1 %v5055_v42  ;;  %3453 = vmatprep.subr.bf16.mxu0 %v4920_v44  ;;  %v4999_v42 = vcombine.low %v1789_v11, %v1793_v19  ;;  %v5127_v44 = vcombine.low %v1917_v20, %v1921_v21  ;;  %v5120_v46 = vcombine.high %v1909_v38, %v1913_v39  ;;  %v1734_v19 = vld [vmem:[#allocation15 + $0x118] sm:$0xff] }
 0x423   : > { %3494 = vmatprep.subr.bf16.mxu1 %v5048_v45  ;;  %v4992_v45 = vcombine.high %v1781_v27, %v1785_v28  ;;  %v1738_v20 = vld [vmem:[#allocation15 + $0x138] sm:$0xff] }
 0x424   : > { %v1862_v21 = vld [vmem:[#allocation15 + $0x518] sm:$0xff] }
 0x425   : > { %3454 = vmatpush1.bf16.msra.mxu0 %v4919_v52  ;;  %v1905_v52 = vld [vmem:[#allocation15 + $0x670] sm:$0xff] }
 0x426   : > { %3495 = vmatpush1.bf16.msra.mxu1 %v5047_v53  ;;  %3455 = vmatprep.subr.bf16.mxu0 %v4912_v47  ;;  %v4991_v53 = vcombine.low %v1781_v27, %v1785_v28  ;;  %v5119_v47 = vcombine.low %v1909_v38, %v1913_v39  ;;  %v5112_v55 = vcombine.high %v1901_v50, %v1905_v52  ;;  %v1726_v27 = vld [vmem:[#allocation15 + $0xd8] sm:$0xff] }
 0x427   : > { %3496 = vmatprep.subr.bf16.mxu1 %v5040_v54  ;;  %v4984_v54 = vcombine.high %v1773_v48, %v1777_v49  ;;  %v1730_v28 = vld [vmem:[#allocation15 + $0xf8] sm:$0xff] }
 0x428   : > { %v1854_v38 = vld [vmem:[#allocation15 + $0x4d8] sm:$0xff] }
 0x429   : > { %3456 = vmatpush1.bf16.msra.mxu0 %v4911_v59  ;;  %v1897_v59 = vld [vmem:[#allocation15 + $0x630] sm:$0xff]  ;;  %v1858_v39 = vld [vmem:[#allocation15 + $0x4f8] sm:$0xff] }
 0x42a   : > { %3497 = vmatpush1.bf16.msra.mxu1 %v5039_v60  ;;  %3457 = vmatprep.subr.bf16.mxu0 %v5032_v61  ;;  %v4983_v60 = vcombine.low %v1773_v48, %v1777_v49  ;;  %v5111_v61 = vcombine.low %v1901_v50, %v1905_v52  ;;  %v5104_v62 = vcombine.high %v1893_v58, %v1897_v59  ;;  %v1722_v48 = vld [vmem:[#allocation15 + $0xb8] sm:$0xff] }
 0x42b   : > { %3498 = vmatprep.subr.bf16.mxu1 %v5160_v51  ;;  %v4976_v51 = vcombine.high %v1765_v56, %v1769_v57  ;;  %v1846_v49 = vld [vmem:[#allocation15 + $0x498] sm:$0xff]  ;;  %v4937_v52 = vcombine.low %v1726_v27, %v1730_v28 }
 0x42c   : > { %v1850_v50 = vld [vmem:[#allocation15 + $0x4b8] sm:$0xff] }
 0x42d   : > { %3458 = vmatpush2.bf16.msra.mxu0 %v5031_v4  ;;  %v1890_v4 = vld [vmem:[#allocation15 + $0x5f8] sm:$0xff] }
 0x42e   : > { %3499 = vmatpush2.bf16.msra.mxu1 %v5159_v5  ;;  %3459 = vmatprep.subr.bf16.mxu0 %v5024_v6  ;;  %v4975_v5 = vcombine.low %v1765_v56, %v1769_v57  ;;  %v5103_v6 = vcombine.low %v1893_v58, %v1897_v59  ;;  %v5098_v7 = vcombine.high %v1886_v3, %v1890_v4  ;;  %v1714_v56 = vld [vmem:[#allocation15 + $0x78] sm:$0xff] }
 0x42f   : > { %3500 = vmatprep.subr.bf16.mxu1 %v5152_v8  ;;  %v4970_v8 = vcombine.high %v1758_v0, %v1762_v2  ;;  %v1838_v57 = vld [vmem:[#allocation15 + $0x458] sm:$0xff] }
 0x430   : > { %v1842_v58 = vld [vmem:[#allocation15 + $0x478] sm:$0xff] }
 0x431   : > { %3460 = vmatpush2.bf16.msra.mxu0 %v5023_v9  ;;  %v1878_v9 = vld [vmem:[#allocation15 + $0x598] sm:$0xff] }
 0x432   : > { %3501 = vmatpush2.bf16.msra.mxu1 %v5151_v33  ;;  %3461 = vmatprep.subr.bf16.mxu0 %v5016_v36  ;;  %v1882_v33 = vld [vmem:[#allocation15 + $0x5b8] sm:$0xff]  ;;  %v5097_v36 = vcombine.low %v1886_v3, %v1890_v4 }
 0x433   : > { %3502 = vmatprep.subr.bf16.mxu1 %v5144_v37  ;;  %v4962_v37 = vcombine.high %v1750_v32, %v1754_v31  ;;  %v5090_v13 = vcombine.high %v1878_v9, %v1882_v33  ;;  %v1706_v0 = vld [vmem:[#allocation15 + $0x38] sm:$0xff] }
 0x434   : > { %v1830_v2 = vld [vmem:[#allocation15 + $0x418] sm:$0xff] }
 0x435   : > { %3462 = vmatpush2.bf16.msra.mxu0 %v5015_v15  ;;  %v1874_v15 = vld [vmem:[#allocation15 + $0x578] sm:$0xff] }
 0x436   : > { %3503 = vmatpush2.bf16.msra.mxu1 %v5143_v16  ;;  %3463 = vmatprep.subr.bf16.mxu0 %v5008_v17  ;;  %v4961_v16 = vcombine.low %v1750_v32, %v1754_v31  ;;  %v5089_v17 = vcombine.low %v1878_v9, %v1882_v33  ;;  %v5082_v11 = vcombine.high %v1870_v14, %v1874_v15  ;;  %v1834_v3 = vld [vmem:[#allocation15 + $0x438] sm:$0xff] }
 0x437   : > { %3504 = vmatprep.subr.bf16.mxu1 %v5136_v18  ;;  %v4954_v18 = vcombine.high %v1742_v12, %v1746_v10  ;;  %v1826_v32 = vld [vmem:[#allocation15 + $0x3f8] sm:$0xff]  ;;  %v5041_v33 = vcombine.low %v1830_v2, %v1834_v3 }
 0x438   : > { %v1950_v31 = vld [vmem:[#allocation15 + $0x7d8] sm:$0xff] }
 0x439   : > { %3464 = vmatpush2.bf16.msra.mxu0 %v5007_v22  ;;  %v1866_v22 = vld [vmem:[#allocation15 + $0x538] sm:$0xff] }
 0x43a   : > { %3505 = vmatpush2.bf16.msra.mxu1 %v5135_v23  ;;  %3465 = vmatprep.subr.bf16.mxu0 %v5000_v24  ;;  %v4953_v23 = vcombine.low %v1742_v12, %v1746_v10  ;;  %v5081_v24 = vcombine.low %v1870_v14, %v1874_v15  ;;  %v1814_v12 = vld [vmem:[#allocation15 + $0x398] sm:$0xff] }
 0x43b   : > { %3506 = vmatprep.subr.bf16.mxu1 %v5128_v26  ;;  %v4946_v26 = vcombine.high %v1734_v19, %v1738_v20  ;;  %v1818_v10 = vld [vmem:[#allocation15 + $0x3b8] sm:$0xff] }
 0x43c   : > { %v1946_v14 = vld [vmem:[#allocation15 + $0x7b8] sm:$0xff] }
 0x43d   : > { %3466 = vmatpush2.bf16.msra.mxu0 %v4999_v42  ;;  %v5073_v42 = vcombine.low %v1862_v21, %v1866_v22 }
 0x43e   : > { %3507 = vmatpush2.bf16.msra.mxu1 %v5127_v44  ;;  %3467 = vmatprep.subr.bf16.mxu0 %v4992_v45  ;;  %v4938_v44 = vcombine.high %v1726_v27, %v1730_v28  ;;  %v5066_v45 = vcombine.high %v1854_v38, %v1858_v39  ;;  %v1802_v27 = vld [vmem:[#allocation15 + $0x338] sm:$0xff] }
 0x43f   : > { %3508 = vmatprep.subr.bf16.mxu1 %v5120_v46  ;;  %v1718_v46 = vld [vmem:[#allocation15 + $0x98] sm:$0xff] }
 0x440   : > { %v4929_v59 = vcombine.low %v1718_v46, %v1722_v48  ;;  %v1926_v28 = vld [vmem:[#allocation15 + $0x718] sm:$0xff] }
 0x441   : > { %3468 = vmatpush2.bf16.msra.mxu0 %v4991_v53  ;;  %v5065_v53 = vcombine.low %v1854_v38, %v1858_v39  ;;  %v1930_v38 = vld [vmem:[#allocation15 + $0x738] sm:$0xff] }
 0x442   : > { %3509 = vmatpush2.bf16.msra.mxu1 %v5119_v47  ;;  %3469 = vmatprep.subr.bf16.mxu0 %v4984_v54  ;;  %v4930_v47 = vcombine.high %v1718_v46, %v1722_v48  ;;  %v5058_v54 = vcombine.high %v1846_v49, %v1850_v50  ;;  %v1794_v46 = vld [vmem:[#allocation15 + $0x2f8] sm:$0xff] }
 0x443   : > { %3510 = vmatprep.subr.bf16.mxu1 %v5112_v55  ;;  %v1710_v55 = vld [vmem:[#allocation15 + $0x58] sm:$0xff] }
 0x444   : > { %v4921_v4 = vcombine.low %v1710_v55, %v1714_v56  ;;  %v1918_v48 = vld [vmem:[#allocation15 + $0x6d8] sm:$0xff] }
 0x445   : > { %3470 = vmatpush2.bf16.msra.mxu0 %v4983_v60  ;;  %v5057_v60 = vcombine.low %v1846_v49, %v1850_v50  ;;  %v1922_v49 = vld [vmem:[#allocation15 + $0x6f8] sm:$0xff] }
 0x446   : > { %3511 = vmatpush2.bf16.msra.mxu1 %v5111_v61  ;;  %3471 = vmatprep.subr.bf16.mxu0 %v4976_v51  ;;  %v4922_v61 = vcombine.high %v1710_v55, %v1714_v56  ;;  %v5050_v51 = vcombine.high %v1838_v57, %v1842_v58  ;;  %v1786_v55 = vld [vmem:[#allocation15 + $0x2b8] sm:$0xff] }
 0x447   : > { %3512 = vmatprep.subr.bf16.mxu1 %v5104_v62  ;;  %v1702_v62 = vld [vmem:[#allocation15 + $0x18] sm:$0xff] }
 0x448   : > { %v4913_v9 = vcombine.low %v1702_v62, %v1706_v0  ;;  %v1910_v56 = vld [vmem:[#allocation15 + $0x698] sm:$0xff] }
 0x449   : > { %3472 = vmatpush2.bf16.msra.mxu0 %v4975_v5  ;;  %v5049_v5 = vcombine.low %v1838_v57, %v1842_v58  ;;  %v1914_v57 = vld [vmem:[#allocation15 + $0x6b8] sm:$0xff] }
 0x44a   : > { %3513 = vmatpush2.bf16.msra.mxu1 %v5103_v6  ;;  %3523 = vmatprep.subr.bf16.mxu0 %v4970_v8  ;;  %v4914_v6 = vcombine.high %v1702_v62, %v1706_v0  ;;  %v5042_v8 = vcombine.high %v1830_v2, %v1834_v3  ;;  %v1778_v62 = vld [vmem:[#allocation15 + $0x278] sm:$0xff] }
 0x44b   : > { %3564 = vmatprep.subr.bf16.mxu1 %v5098_v7  ;;  %v1822_v7 = vld [vmem:[#allocation15 + $0x3d8] sm:$0xff] }
 0x44c   : > { %3474 = vmatmul.mubr.bf16.vlgmr.msra.gmra.mxu0 %v6652_v30  ;;  %v5033_v15 = vcombine.low %v1822_v7, %v1826_v32  ;;  %v1902_v0 = vld [vmem:[#allocation15 + $0x658] sm:$0xff] }
 0x44d   : > { %3515 = vmatmul.mubr.bf16.vlgmr.msra.gmra.mxu1 %v6655_v35  ;;  %3524 = vmatpush1.bf16.msra.mxu0 %v4969_v34  ;;  %v1954_v34 = vld [vmem:[#allocation15 + $0x7f8] sm:$0xff] }
 0x44e   : > { %3555 = vmatprep.mubr.bf16.mxu0 %v6648_v25  ;;  %3565 = vmatpush1.bf16.msra.mxu1 %v5097_v36  ;;  %v5074_v25 = vcombine.high %v1862_v21, %v1866_v22  ;;  %v5034_v36 = vcombine.high %v1822_v7, %v1826_v32  ;;  %v1938_v21 = vld [vmem:[#allocation15 + $0x778] sm:$0xff]  ;;  %v5025_v22 = vcombine.low %v1814_v12, %v1818_v10 }
 0x44f   : > { %3596 = vmatprep.mubr.bf16.mxu1 %v6650_v29  ;;  %3525 = vmatprep.subr.bf16.mxu0 %v4962_v37  ;;  %v4945_v29 = vcombine.low %v1734_v19, %v1738_v20  ;;  %v5162_v37 = vcombine.high %v1950_v31, %v1954_v34  ;;  %v1810_v19 = vld [vmem:[#allocation15 + $0x378] sm:$0xff] }
 0x450   : > { %3566 = vmatprep.subr.bf16.mxu1 %v5090_v13  ;;  %v1942_v13 = vld [vmem:[#allocation15 + $0x798] sm:$0xff] }
 0x451   : > { %3526 = vmatpush1.bf16.msra.mxu0 %v4961_v16  ;;  %v5161_v16 = vcombine.low %v1950_v31, %v1954_v34  ;;  %v1934_v20 = vld [vmem:[#allocation15 + $0x758] sm:$0xff] }
 0x452   : > { %3567 = vmatpush1.bf16.msra.mxu1 %v5089_v17  ;;  %3527 = vmatprep.subr.bf16.mxu0 %v4954_v18  ;;  %v5026_v17 = vcombine.high %v1814_v12, %v1818_v10  ;;  %v5154_v18 = vcombine.high %v1942_v13, %v1946_v14  ;;  %v1906_v2 = vld [vmem:[#allocation15 + $0x678] sm:$0xff]  ;;  %v6676_v10 = vld [vmem:[#allocation16] sm:$0xff] }
 0x453   : > { %3568 = vmatprep.subr.bf16.mxu1 %v5082_v11  ;;  %v1806_v11 = vld [vmem:[#allocation15 + $0x358] sm:$0xff] }
 0x454   : > { %v5017_v39 = vcombine.low %v1806_v11, %v1810_v19  ;;  %v1770_v7 = vld [vmem:[#allocation15 + $0x238] sm:$0xff] }
 0x455   : > { %3528 = vmatpush1.bf16.msra.mxu0 %v4953_v23  ;;  %v5153_v23 = vcombine.low %v1942_v13, %v1946_v14  ;;  %v1894_v32 = vld [vmem:[#allocation15 + $0x618] sm:$0xff]  ;;  %v5627_v13 = vld [vmem:[%s6532_s22 + $0x78] sm:$0xff]  }
 0x456   : > { %3569 = vmatpush1.bf16.msra.mxu1 %v5081_v24  ;;  %3529 = vmatprep.subr.bf16.mxu0 %v4946_v26  ;;  %v5018_v24 = vcombine.high %v1806_v11, %v1810_v19  ;;  %v5146_v26 = vcombine.high %v1934_v20, %v1938_v21  ;;  %v1898_v31 = vld [vmem:[#allocation15 + $0x638] sm:$0xff]  ;;  %v5643_v14 = vld [vmem:[%s6532_s22 + $0xf8] sm:$0xff]   ;;  %v1964_v11 = vrot.slane %v6676_v10, %v6569_v43  ;;  %v5645_v19 = vld [vmem:[%s6532_s22 + $0xf0] sm:$0xff]  }
 0x457   : > { %3570 = vmatprep.subr.bf16.mxu1 %v5074_v25  ;;  %v1798_v25 = vld [vmem:[#allocation15 + $0x318] sm:$0xff]  ;;  %v5105_v12 = vcombine.low %v1894_v32, %v1898_v31 }
 0x458   : > { %v5009_v50 = vcombine.low %v1798_v25, %v1802_v27 }
 0x459   : > { %3530 = vmatpush1.bf16.msra.mxu0 %v4945_v29  ;;  %v5145_v29 = vcombine.low %v1934_v20, %v1938_v21 }
 0x45a   : > { %3571 = vmatpush1.bf16.msra.mxu1 %v5073_v42  ;;  %3531 = vmatprep.subr.bf16.mxu0 %v4938_v44  ;;  %v5010_v42 = vcombine.high %v1798_v25, %v1802_v27  ;;  %v5138_v44 = vcombine.high %v1926_v28, %v1930_v38  ;;  %v5646_v25 = vld [vmem:[%s6532_s22 + $0xb0] sm:$0xff]  }
 0x45b   : > { %3572 = vmatprep.subr.bf16.mxu1 %v5066_v45  ;;  %v1790_v45 = vld [vmem:[#allocation15 + $0x2d8] sm:$0xff] }
 0x45c   : > { %v5001_v58 = vcombine.low %v1790_v45, %v1794_v46 }
 0x45d   : > { %3532 = vmatpush1.bf16.msra.mxu0 %v4937_v52  ;;  %v5137_v52 = vcombine.low %v1926_v28, %v1930_v38  ;;  %v5647_v38 = vld [vmem:[%s6532_s22 + $0xe8] sm:$0xff]  }
 0x45e   : > { %3573 = vmatpush1.bf16.msra.mxu1 %v5065_v53  ;;  %3533 = vmatprep.subr.bf16.mxu0 %v4930_v47  ;;  %v5002_v53 = vcombine.high %v1790_v45, %v1794_v46  ;;  %v5130_v47 = vcombine.high %v1918_v48, %v1922_v49  ;;  %v5632_v45 = vld [vmem:[%s6532_s22 + $0x28] sm:$0xff]  }
 0x45f   : > { %3574 = vmatprep.subr.bf16.mxu1 %v5058_v54  ;;  %v1782_v54 = vld [vmem:[#allocation15 + $0x298] sm:$0xff] }
 0x460   : > { %v4993_v3 = vcombine.low %v1782_v54, %v1786_v55 }
 0x461   : > { %3534 = vmatpush1.bf16.msra.mxu0 %v4929_v59  ;;  %v5129_v59 = vcombine.low %v1918_v48, %v1922_v49  ;;  %v5633_v48 = vld [vmem:[%s6532_s22 + $0x60] sm:$0xff]   ;;  %v5648_v49 = vld [vmem:[%s6532_s22 + $0xa8] sm:$0xff]  }
 0x462   : > { %3575 = vmatpush1.bf16.msra.mxu1 %v5057_v60  ;;  %3535 = vmatprep.subr.bf16.mxu0 %v4922_v61  ;;  %v4994_v60 = vcombine.high %v1782_v54, %v1786_v55  ;;  %v5122_v61 = vcombine.high %v1910_v56, %v1914_v57  ;;  %v5649_v55 = vld [vmem:[%s6532_s22 + $0xe0] sm:$0xff]  }
 0x463   : > { %3576 = vmatprep.subr.bf16.mxu1 %v5050_v51  ;;  %v1774_v51 = vld [vmem:[#allocation15 + $0x258] sm:$0xff] }
 0x464   : > { %v4985_v34 = vcombine.low %v1774_v51, %v1778_v62 }
 0x465   : > { %3536 = vmatpush1.bf16.msra.mxu0 %v4921_v4  ;;  %v5121_v4 = vcombine.low %v1910_v56, %v1914_v57 }
 0x466   : > { %3577 = vmatpush1.bf16.msra.mxu1 %v5049_v5  ;;  %3537 = vmatprep.subr.bf16.mxu0 %v4914_v6  ;;  %v4986_v5 = vcombine.high %v1774_v51, %v1778_v62  ;;  %v5114_v6 = vcombine.high %v1902_v0, %v1906_v2  ;;  %v5650_v51 = vld [vmem:[%s6532_s22 + $0xa0] sm:$0xff]  }
 0x467   : > { %3578 = vmatprep.subr.bf16.mxu1 %v5042_v8  ;;  %v1766_v8 = vld [vmem:[#allocation15 + $0x218] sm:$0xff] }
 0x469   : > { %3538 = vmatpush1.bf16.msra.mxu0 %v4913_v9  ;;  %v5113_v9 = vcombine.low %v1902_v0, %v1906_v2 }
 0x46a   : > { %3579 = vmatpush1.bf16.msra.mxu1 %v5041_v33  ;;  %3539 = vmatprep.subr.bf16.mxu0 %v5034_v36  ;;  %v4978_v33 = vcombine.high %v1766_v8, %v1770_v7  ;;  %v5106_v36 = vcombine.high %v1894_v32, %v1898_v31  ;;  %v5636_v32 = vld [vmem:[%s6532_s22 + $0x18] sm:$0xff]   ;;  %v5637_v31 = vld [vmem:[%s6532_s22 + $0x50] sm:$0xff]  }
 0x46b   : > { %3580 = vmatprep.subr.bf16.mxu1 %v5162_v37  ;;  %v4977_v37 = vcombine.low %v1766_v8, %v1770_v7 }
 0x46d   : > { %3540 = vmatpush2.bf16.msra.mxu0 %v5033_v15  ;;  %v1960_v15 = vrot.slane %v6676_v10, %v6566_v41 }
 0x46e   : > { %3581 = vmatpush2.bf16.msra.mxu1 %v5161_v16  ;;  %3541 = vmatprep.subr.bf16.mxu0 %v5026_v17  ;;  %v5628_v16 = vld [vmem:[%s6532_s22 + $0x38] sm:$0xff]   ;;  %v5629_v17 = vld [vmem:[%s6532_s22 + $0x70] sm:$0xff]  }
 0x46f   : > { %3582 = vmatprep.subr.bf16.mxu1 %v5154_v18  ;;  %v5644_v18 = vld [vmem:[%s6532_s22 + $0xb8] sm:$0xff]  }
 0x471   : > { %3542 = vmatpush2.bf16.msra.mxu0 %v5025_v22 }
 0x472   : > { %3583 = vmatpush2.bf16.msra.mxu1 %v5153_v23  ;;  %3543 = vmatprep.subr.bf16.mxu0 %v5018_v24  ;;  %v5630_v23 = vld [vmem:[%s6532_s22 + $0x30] sm:$0xff]  }
 0x473   : > { %3584 = vmatprep.subr.bf16.mxu1 %v5146_v26  ;;  %v5631_v26 = vld [vmem:[%s6532_s22 + $0x68] sm:$0xff]  }
 0x475   : > { %3544 = vmatpush2.bf16.msra.mxu0 %v5017_v39 }
 0x476   : > { %3585 = vmatpush2.bf16.msra.mxu1 %v5145_v29  ;;  %3545 = vmatprep.subr.bf16.mxu0 %v5010_v42 }
 0x477   : > { %3586 = vmatprep.subr.bf16.mxu1 %v5138_v44 }
 0x479   : > { %3546 = vmatpush2.bf16.msra.mxu0 %v5009_v50 }
 0x47a   : > { %3587 = vmatpush2.bf16.msra.mxu1 %v5137_v52  ;;  %3547 = vmatprep.subr.bf16.mxu0 %v5002_v53 }
 0x47b   : > { %3588 = vmatprep.subr.bf16.mxu1 %v5130_v47 }
 0x47d   : > { %3548 = vmatpush2.bf16.msra.mxu0 %v5001_v58 }
 0x47e   : > { %3589 = vmatpush2.bf16.msra.mxu1 %v5129_v59  ;;  %3549 = vmatprep.subr.bf16.mxu0 %v4994_v60  ;;  %v5634_v60 = vld [vmem:[%s6532_s22 + $0x20] sm:$0xff]  }
 0x47f   : > { %3590 = vmatprep.subr.bf16.mxu1 %v5122_v61  ;;  %v5635_v61 = vld [vmem:[%s6532_s22 + $0x58] sm:$0xff]  }
 0x481   : > { %3550 = vmatpush2.bf16.msra.mxu0 %v4993_v3 }
 0x482   : > { %3591 = vmatpush2.bf16.msra.mxu1 %v5121_v4  ;;  %3551 = vmatprep.subr.bf16.mxu0 %v4986_v5  ;;  %v5651_v4 = vld [vmem:[%s6532_s22 + $0xd8] sm:$0xff]  }
 0x483   : > { %3592 = vmatprep.subr.bf16.mxu1 %v5114_v6 }
 0x485   : > { %3552 = vmatpush2.bf16.msra.mxu0 %v4985_v34  ;;  %v5652_v34 = vld [vmem:[%s6532_s22 + $0x98] sm:$0xff]  }
 0x486   : > { %3593 = vmatpush2.bf16.msra.mxu1 %v5113_v9  ;;  %3553 = vmatprep.subr.bf16.mxu0 %v4978_v33 }
 0x487   : > { %3594 = vmatprep.subr.bf16.mxu1 %v5106_v36 }
 0x489   : > { %3554 = vmatpush2.bf16.msra.mxu0 %v4977_v37 }
 0x48a   : > { %3595 = vmatpush2.bf16.msra.mxu1 %v5105_v12  ;;  %5233 = vmatprep.subr.bf16.mxu0 %v5627_v13  ;;  %v5653_v12 = vld [vmem:[%s6532_s22 + $0xd0] sm:$0xff]  }
 0x48b   : > { %5255 = vmatprep.subr.bf16.mxu1 %v5643_v14 }
 0x48c   : > { %3556 = vmatmul.mubr.bf16.vlgmr.msra.gmra.mxu0 %v6652_v30  ;;  %v3311_v20 = vpop.f32.mrf.mxu0 }
 0x48d   : > { %3597 = vmatmul.mubr.bf16.vlgmr.msra.gmra.mxu1 %v6655_v35  ;;  %v3312_v21 = vadd.f32 %v3311_v20, %v1960_v15  ;;  %v3352_v22 = vpop.f32.mrf.mxu1  ;;  %5234 = vmatpush3.bf16.msra.mxu0 %v5628_v16 }
 0x48e   : > { %v3313_v24 = vpop.f32.mrf.mxu0  ;;  %5235 = vmatprep.subr.bf16.mxu0 %v5629_v17  ;;  %5256 = vmatpush3.bf16.msra.mxu1 %v5644_v18  ;;  %v5638_v17 = vld [vmem:[%s6532_s22 + $0x10] sm:$0xff]   ;;  %v5639_v18 = vld [vmem:[%s6532_s22 + $0x48] sm:$0xff]  }
 0x48f   : > { %v6693_v27 = vadd.f32 %v3352_v22, %v3312_v21  ;;  %v3314_v28 = vadd.f32 %v3313_v24, %v1964_v11  ;;  %v3354_v30 = vpop.f32.mrf.mxu1  ;;  %5257 = vmatprep.subr.bf16.mxu1 %v5645_v19  ;;  %v5654_v11 = vld [vmem:[%s6532_s22 + $0x90] sm:$0xff]   ;;  %v5655_v22 = vld [vmem:[%s6532_s22 + $0xc8] sm:$0xff]  }
 0x490   : > { %v3315_v39 = vpop.f32.mrf.mxu0 }
 0x491   : > { %v3605_v35 = vrot.slane %v6693_v27, 4  ;;  %v3661_v29 = vmul.f32 %v6693_v27, %v6693_v27  ;;  %v6699_v42 = vadd.f32 %v3354_v30, %v3314_v28  ;;  %v3356_v44 = vpop.f32.mrf.mxu1  ;;  %5236 = vmatpush3.bf16.msra.mxu0 %v5630_v23  ;;  %v5641_v30 = vld [vmem:[%s6532_s22 + $0x40] sm:$0xff]  }
 0x492   : > { %v3316_v46 = vpop.f32.mrf.mxu0  ;;  %5237 = vmatprep.subr.bf16.mxu0 %v5631_v26  ;;  %5258 = vmatpush3.bf16.msra.mxu1 %v5646_v25  ;;  %v5640_v25 = vld [vmem:[%s6532_s22 + $0x8] sm:$0xff]  }
 0x493   : > { %v3606_v50 = vadd.f32 %v3605_v35, %v6693_v27  ;;  %v3669_v52 = vrot.slane %v3661_v29, 4  ;;  %v3611_v53 = vrot.slane %v6699_v42, 4  ;;  %v3662_v47 = vmul.f32 %v6699_v42, %v6699_v42  ;;  %v3357_v54 = vpop.f32.mrf.mxu1  ;;  %5259 = vmatprep.subr.bf16.mxu1 %v5647_v38  ;;  %v5656_v38 = vld [vmem:[%s6532_s22 + $0x88] sm:$0xff]   ;;  %v5657_v35 = vld [vmem:[%s6532_s22 + $0xc0] sm:$0xff]  }
 0x495   : > { %v3607_v56 = vrot.slane %v3606_v50, 2  ;;  %v3670_v57 = vadd.f32 %v3669_v52, %v3661_v29  ;;  %v3612_v58 = vadd.f32 %v3611_v53, %v6699_v42  ;;  %v3675_v59 = vrot.slane %v3662_v47, 4  ;;  %5238 = vmatpush3.bf16.msra.mxu0 %v5632_v45  ;;  %v5642_v45 = vld [vmem:[%s6532_s22] sm:$0xff]   ;;  %v6729_v52 = vld [vmem:[#allocation18] sm:$0xff]  ;;  %v6731_v53 = vld [vmem:[#allocation19] sm:$0xff] }
 0x496   : > { %5239 = vmatprep.subr.bf16.mxu0 %v5633_v48  ;;  %5260 = vmatpush3.bf16.msra.mxu1 %v5648_v49  ;;  %v5658_v48 = vld [vmem:[%s6532_s22 + $0x80] sm:$0xff]   ;;  %v5659_v49 = vld [vmem:[%s6532_s22 + $0x178] sm:$0xff]   ;;  %v3786_v54 = vrot.slane %v6729_v52, %v6566_v41 }
 0x497   : > { %v3608_v62 = vadd.f32 %v3607_v56, %v3606_v50  ;;  %v3671_v0 = vrot.slane %v3670_v57, 2  ;;  %v3613_v2 = vrot.slane %v3612_v58, 2  ;;  %v3676_v3 = vadd.f32 %v3675_v59, %v3662_v47  ;;  %5261 = vmatprep.subr.bf16.mxu1 %v5649_v55 }
 0x498   : > { %v3790_v59 = vrot.slane %v6729_v52, %v6569_v43 }
 0x499   : > { %v3609_v5 = vrot.slane %v3608_v62, 1  ;;  %v3672_v6 = vadd.f32 %v3671_v0, %v3670_v57  ;;  %v3614_v8 = vadd.f32 %v3613_v2, %v3612_v58  ;;  %v3677_v7 = vrot.slane %v3676_v3, 2  ;;  %5240 = vmatpush3.bf16.msra.mxu0 %v5634_v60 }
 0x49a   : > { %5241 = vmatprep.subr.bf16.mxu0 %v5635_v61  ;;  %5262 = vmatpush3.bf16.msra.mxu1 %v5650_v51  ;;  %v3836_v57 = vrot.slane %v6731_v53, %v6566_v41 }
 0x49b   : > { %v3610_v9 = vadd.f32 %v3609_v5, %v3608_v62  ;;  %v3673_v33 = vrot.slane %v3672_v6, 1  ;;  %v3615_v36 = vrot.slane %v3614_v8, 1  ;;  %v3678_v37 = vadd.f32 %v3677_v7, %v3676_v3  ;;  %5263 = vmatprep.subr.bf16.mxu1 %v5651_v4  ;;  %v5661_v7 = vld [vmem:[%s6532_s22 + $0x170] sm:$0xff]  }
 0x49d   : > { %v3653_v13 = vmul.f32 0.125, %v3610_v9  ;;  %v3674_v14 = vadd.f32 %v3673_v33, %v3672_v6  ;;  %v3616_v15 = vadd.f32 %v3615_v36, %v3614_v8  ;;  %v3679_v16 = vrot.slane %v3678_v37, 1  ;;  %5242 = vmatpush3.bf16.msra.mxu0 %v5636_v32  ;;  %v5660_v6 = vld [vmem:[%s6532_s22 + $0x138] sm:$0xff]   ;;  %v5663_v32 = vld [vmem:[%s6532_s22 + $0x168] sm:$0xff]   ;;  %v5665_v9 = vld [vmem:[%s6532_s22 + $0x160] sm:$0xff]  }
 0x49e   : > { %5243 = vmatprep.subr.bf16.mxu0 %v5637_v31  ;;  %5264 = vmatpush3.bf16.msra.mxu1 %v5652_v34  ;;  %v1968_v31 = vrot.slane %v6676_v10, %v6600_v63  ;;  %v5664_v34 = vld [vmem:[%s6532_s22 + $0x128] sm:$0xff]   ;;  %v1972_v33 = vrot.slane %v6676_v10, %v6606_v1 }
 0x49f   : > { %v3717_v19 = vmul.f32 0.125, %v3674_v14  ;;  %v3725_v20 = vmul.f32 %v3653_v13, %v3653_v13  ;;  %v3654_v21 = vmul.f32 0.125, %v3616_v15  ;;  %5265 = vmatprep.subr.bf16.mxu1 %v5653_v12  ;;  %v3680_v23 = vadd.f32 %v3679_v16, %v3678_v37  ;;  %v5667_v15 = vld [vmem:[%s6532_s22 + $0x158] sm:$0xff]  }
 0x4a0   : > { %v3749_v47 = vsub.f32 %v6693_v27, %v3653_v13  ;;  %v3840_v27 = vrot.slane %v6731_v53, %v6569_v43  ;;  %v5662_v43 = vld [vmem:[%s6532_s22 + $0x130] sm:$0xff]   ;;  %v5666_v13 = vld [vmem:[%s6532_s22 + $0x120] sm:$0xff]  }
 0x4a1   : > { %v3733_v24 = vsub.f32 %v3717_v19, %v3725_v20  ;;  %v3726_v26 = vmul.f32 %v3654_v21, %v3654_v21  ;;  %5244 = vmatpush3.bf16.msra.mxu0 %v5638_v17  ;;  %v3718_v28 = vmul.f32 0.125, %v3680_v23  ;;  %v3750_v58 = vsub.f32 %v6699_v42, %v3654_v21  ;;  %v5668_v23 = vld [vmem:[%s6532_s22 + $0x118] sm:$0xff]  }
 0x4a2   : > { %5245 = vmatprep.subr.bf16.mxu0 %v5639_v18  ;;  %5266 = vmatpush3.bf16.msra.mxu1 %v5654_v11 }
 0x4a3   : > { %v3741_v39 = vmax.f32 %v3733_v24, 0.0  ;;  %5267 = vmatprep.subr.bf16.mxu1 %v5655_v22  ;;  %v3734_v29 = vsub.f32 %v3718_v28, %v3726_v26  ;;  %v5669_v26 = vld [vmem:[%s6532_s22 + $0x150] sm:$0xff]  }
 0x4a5   : > { %v3757_v44 = vadd.f32 0.8, %v3741_v39  ;;  %5246 = vmatpush3.bf16.msra.mxu0 %v5640_v25  ;;  %v3742_v46 = vmax.f32 %v3734_v29, 0.0 }
 0x4a6   : > { %5247 = vmatprep.subr.bf16.mxu0 %v5641_v30  ;;  %5268 = vmatpush3.bf16.msra.mxu1 %v5656_v38 }
 0x4a7   : > { %5703 = vrsqrt.f32 %v3757_v44  ;;  %5269 = vmatprep.subr.bf16.mxu1 %v5657_v35  ;;  %v3758_v50 = vadd.f32 0.8, %v3742_v46  ;;  %v5670_v46 = vld [vmem:[%s6532_s22 + $0x110] sm:$0xff]  }
 0x4a9   : > { %5248 = vmatpush3.bf16.msra.mxu0 %v5642_v45  ;;  %5705 = vrsqrt.f32 %v3758_v50 }
 0x4aa   : > { %5270 = vmatpush3.bf16.msra.mxu1 %v5658_v48  ;;  %5277 = vmatprep.subr.bf16.mxu0 %v5659_v49  ;;  %v5671_v48 = vld [vmem:[%s6532_s22 + $0x148] sm:$0xff]  }
 0x4b4   : > { %v5704_v55 = vpop.eup %5703 }
 0x4b5   : > { %v3773_v56 = vmul.f32 %v5704_v55, %v3749_v47 }
 0x4b6   : > { %v5706_v60 = vpop.eup %5705 }
 0x4b7   : > { %v3823_v61 = vmul.f32 %v3786_v54, %v3773_v56  ;;  %v3774_v51 = vmul.f32 %v5706_v60, %v3750_v58  ;;  %v5673_v60 = vld [vmem:[%s6532_s22 + $0x140] sm:$0xff]  }
 0x4b9   : > { %v3873_v62 = vadd.f32 %v3836_v57, %v3823_v61  ;;  %v3824_v0 = vmul.f32 %v3790_v59, %v3774_v51  ;;  %v5672_v59 = vld [vmem:[%s6532_s22 + $0x108] sm:$0xff]  }
 0x4bb   : > { %v3889_v2 = vmul.f32 0.2, %v3873_v62  ;;  %v3874_v3 = vadd.f32 %v3840_v27, %v3824_v0  ;;  %vm3881_vm9 = vcmp.gt.f32.partialorder %v3873_v62, 0.0 }
 0x4bd   : > { %vm3882_vm10 = vcmp.gt.f32.partialorder %v3874_v3, 0.0  ;;  %v3890_v41 = vmul.f32 0.2, %v3874_v3  ;;  %v3897_v42 = vsel %vm3881_vm9, %v3873_v62, %v3889_v2 }
 0x4be   : > { %v3905_v8 = vpack.c.bf16 %v3897_v42, %v3897_v42  ;;  %v5674_v42 = vld [vmem:[%s6532_s22 + $0x100] sm:$0xff]  }
 0x4bf   : > { %v3898_v4 = vsel %vm3882_vm10, %v3874_v3, %v3890_v41 }
 0x4c0   : > { %v3906_v5 = vpack.c.bf16 %v3898_v4, %v3898_v4 }
 0x4c2   : > { %4464 = vmatprep.mubr.bf16.mxu0 %v3906_v5 }
 0x4c3   : > { %4465 = vmatmul.mubr.bf16.vlgmr.msra.gmra.mxu0 %v3905_v8 }
 0x4c4   : > { %5278 = vmatpush3.bf16.msra.mxu0 %v5660_v6 }
 0x4c5   : > { %5279 = vmatprep.subr.bf16.mxu0 %v5661_v7 }
 0x4c8   : > { %5280 = vmatpush3.bf16.msra.mxu0 %v5662_v43 }
 0x4c9   : > { %5281 = vmatprep.subr.bf16.mxu0 %v5663_v32 }
 0x4cc   : > { %v3393_v36 = vpop.f32.mrf.mxu0  ;;  %5282 = vmatpush3.bf16.msra.mxu0 %v5664_v34  ;;  %v5675_v34 = vld [vmem:[%s6532_s22 + $0x1f8] sm:$0xff]  }
 0x4cd   : > { %v3394_v37 = vadd.f32 %v3393_v36, %v1968_v31  ;;  %v3434_v12 = vpop.f32.mrf.mxu1  ;;  %5283 = vmatprep.subr.bf16.mxu0 %v5665_v9  ;;  %5299 = vmatprep.subr.bf16.mxu1 %v5675_v34 }
 0x4ce   : > { %v3395_v14 = vpop.f32.mrf.mxu0 }
 0x4cf   : > { %v6755_v16 = vadd.f32 %v3434_v12, %v3394_v37  ;;  %v3396_v17 = vadd.f32 %v3395_v14, %v1972_v33  ;;  %v3436_v18 = vpop.f32.mrf.mxu1 }
 0x4d0   : > { %v3397_v11 = vpop.f32.mrf.mxu0  ;;  %5284 = vmatpush3.bf16.msra.mxu0 %v5666_v13  ;;  %v3794_v13 = vrot.slane %v6729_v52, %v6600_v63 }
 0x4d1   : > { %v3617_v19 = vrot.slane %v6755_v16, 4  ;;  %v3663_v20 = vmul.f32 %v6755_v16, %v6755_v16  ;;  %v6760_v21 = vadd.f32 %v3436_v18, %v3396_v17  ;;  %v3438_v22 = vpop.f32.mrf.mxu1  ;;  %5285 = vmatprep.subr.bf16.mxu0 %v5667_v15  ;;  %v3844_v17 = vrot.slane %v6731_v53, %v6600_v63 }
 0x4d2   : > { %v3398_v24 = vpop.f32.mrf.mxu0  ;;  %v3798_v11 = vrot.slane %v6729_v52, %v6606_v1 }
 0x4d3   : > { %v3618_v25 = vadd.f32 %v3617_v19, %v6755_v16  ;;  %v3681_v28 = vrot.slane %v3663_v20, 4  ;;  %v3623_v30 = vrot.slane %v6760_v21, 4  ;;  %v3664_v38 = vmul.f32 %v6760_v21, %v6760_v21  ;;  %v3439_v39 = vpop.f32.mrf.mxu1 }
 0x4d4   : > { %5286 = vmatpush3.bf16.msra.mxu0 %v5668_v23 }
 0x4d5   : > { %v3619_v35 = vrot.slane %v3618_v25, 2  ;;  %v3682_v29 = vadd.f32 %v3681_v28, %v3663_v20  ;;  %v3624_v44 = vadd.f32 %v3623_v30, %v6760_v21  ;;  %v3687_v45 = vrot.slane %v3664_v38, 4  ;;  %5287 = vmatprep.subr.bf16.mxu0 %v5669_v26 }
 0x4d7   : > { %v3620_v49 = vadd.f32 %v3619_v35, %v3618_v25  ;;  %v3683_v50 = vrot.slane %v3682_v29, 2  ;;  %v3625_v47 = vrot.slane %v3624_v44, 2  ;;  %v3688_v54 = vadd.f32 %v3687_v45, %v3664_v38  ;;  %v5676_v38 = vld [vmem:[%s6532_s22 + $0x1b8] sm:$0xff]   ;;  %v5677_v35 = vld [vmem:[%s6532_s22 + $0x1f0] sm:$0xff]  }
 0x4d8   : > { %5288 = vmatpush3.bf16.msra.mxu0 %v5670_v46  ;;  %v6793_v45 = vsub.s32 5, %v6563_v40 }
 0x4d9   : > { %v3621_v55 = vrot.slane %v3620_v49, 1  ;;  %v3684_v56 = vadd.f32 %v3683_v50, %v3682_v29  ;;  %v3626_v57 = vadd.f32 %v3625_v47, %v3624_v44  ;;  %v3689_v58 = vrot.slane %v3688_v54, 2  ;;  %5289 = vmatprep.subr.bf16.mxu0 %v5671_v48  ;;  %v5678_v29 = vld [vmem:[%s6532_s22 + $0x1b0] sm:$0xff]   ;;  %v5679_v44 = vld [vmem:[%s6532_s22 + $0x1e8] sm:$0xff]  }
 0x4da   : > { %v5680_v48 = vld [vmem:[%s6532_s22 + $0x1a8] sm:$0xff]   ;;  %v1980_v50 = vrot.slane %v6676_v10, %v6793_v45 }
 0x4db   : > { %v3622_v61 = vadd.f32 %v3621_v55, %v3620_v49  ;;  %v3685_v51 = vrot.slane %v3684_v56, 1  ;;  %v3627_v27 = vrot.slane %v3626_v57, 1  ;;  %v3690_v62 = vadd.f32 %v3689_v58, %v3688_v54  ;;  %v5681_v49 = vld [vmem:[%s6532_s22 + $0x1e0] sm:$0xff]   ;;  %v5683_v58 = vld [vmem:[%s6532_s22 + $0x1d8] sm:$0xff]  }
 0x4dc   : > { %5290 = vmatpush3.bf16.msra.mxu0 %v5672_v59 }
 0x4dd   : > { %v3655_v0 = vmul.f32 0.125, %v3622_v61  ;;  %v3686_v2 = vadd.f32 %v3685_v51, %v3684_v56  ;;  %v3628_v3 = vadd.f32 %v3627_v27, %v3626_v57  ;;  %v3691_v41 = vrot.slane %v3690_v62, 1  ;;  %5291 = vmatprep.subr.bf16.mxu0 %v5673_v60  ;;  %v5682_v56 = vld [vmem:[%s6532_s22 + $0x1a0] sm:$0xff]  }
 0x4df   : > { %v3719_v4 = vmul.f32 0.125, %v3686_v2  ;;  %v3727_v5 = vmul.f32 %v3655_v0, %v3655_v0  ;;  %v3656_v6 = vmul.f32 0.125, %v3628_v3  ;;  %v3692_v8 = vadd.f32 %v3691_v41, %v3690_v62  ;;  %v5684_v3 = vld [vmem:[%s6532_s22 + $0x198] sm:$0xff]  }
 0x4e0   : > { %5292 = vmatpush3.bf16.msra.mxu0 %v5674_v42  ;;  %v3751_v12 = vsub.f32 %v6755_v16, %v3655_v0  ;;  %v3848_v16 = vrot.slane %v6731_v53, %v6606_v1  ;;  %v6788_v1 = vsub.s32 4, %v6563_v40  ;;  %v5685_v42 = vld [vmem:[%s6532_s22 + $0x1d0] sm:$0xff]  }
 0x4e1   : > { %v3735_v7 = vsub.f32 %v3719_v4, %v3727_v5  ;;  %v3728_v43 = vmul.f32 %v3656_v6, %v3656_v6  ;;  %v3720_v32 = vmul.f32 0.125, %v3692_v8  ;;  %v3752_v18 = vsub.f32 %v6760_v21, %v3656_v6 }
 0x4e2   : > { %v1976_v46 = vrot.slane %v6676_v10, %v6788_v1 }
 0x4e3   : > { %v3743_v31 = vmax.f32 %v3735_v7, 0.0  ;;  %v3736_v9 = vsub.f32 %v3720_v32, %v3728_v43 }
 0x4e5   : > { %v3759_v33 = vadd.f32 0.8, %v3743_v31  ;;  %v3744_v36 = vmax.f32 %v3736_v9, 0.0  ;;  %v5686_v9 = vld [vmem:[%s6532_s22 + $0x190] sm:$0xff]  }
 0x4e7   : > { %5707 = vrsqrt.f32 %v3759_v33  ;;  %v3760_v37 = vadd.f32 0.8, %v3744_v36  ;;  %v5687_v33 = vld [vmem:[%s6532_s22 + $0x1c8] sm:$0xff]  }
 0x4e9   : > { %5709 = vrsqrt.f32 %v3760_v37 }
 0x4f4   : > { %v5708_v14 = vpop.eup %5707 }
 0x4f5   : > { %v3775_v15 = vmul.f32 %v5708_v14, %v3751_v12 }
 0x4f6   : > { %v5710_v19 = vpop.eup %5709 }
 0x4f7   : > { %v3825_v20 = vmul.f32 %v3794_v13, %v3775_v15  ;;  %v3776_v22 = vmul.f32 %v5710_v19, %v3752_v18  ;;  %v5689_v19 = vld [vmem:[%s6532_s22 + $0x1c0] sm:$0xff]  }
 0x4f9   : > { %v3875_v23 = vadd.f32 %v3844_v17, %v3825_v20  ;;  %v3826_v24 = vmul.f32 %v3798_v11, %v3776_v22  ;;  %v5688_v11 = vld [vmem:[%s6532_s22 + $0x188] sm:$0xff]  }
 0x4fb   : > { %v3891_v26 = vmul.f32 0.2, %v3875_v23  ;;  %v3876_v25 = vadd.f32 %v3848_v16, %v3826_v24  ;;  %vm3883_vm11 = vcmp.gt.f32.partialorder %v3875_v23, 0.0 }
 0x4fd   : > { %vm3884_vm12 = vcmp.gt.f32.partialorder %v3876_v25, 0.0  ;;  %v3892_v63 = vmul.f32 0.2, %v3876_v25  ;;  %v3899_v21 = vsel %vm3883_vm11, %v3875_v23, %v3891_v26 }
 0x4fe   : > { %v3907_v39 = vpack.c.bf16 %v3899_v21, %v3899_v21  ;;  %v5690_v21 = vld [vmem:[%s6532_s22 + $0x180] sm:$0xff]  }
 0x4ff   : > { %v3900_v28 = vsel %vm3884_vm12, %v3876_v25, %v3892_v63 }
 0x500   : > { %v3908_v30 = vpack.c.bf16 %v3900_v28, %v3900_v28 }
 0x502   : > { %4504 = vmatprep.mubr.bf16.mxu1 %v3908_v30 }
 0x503   : > { %4505 = vmatmul.mubr.bf16.vlgmr.msra.gmra.mxu1 %v3907_v39 }
 0x504   : > { %5300 = vmatpush3.bf16.msra.mxu1 %v5676_v38 }
 0x505   : > { %5301 = vmatprep.subr.bf16.mxu1 %v5677_v35 }
 0x508   : > { %5302 = vmatpush3.bf16.msra.mxu1 %v5678_v29 }
 0x509   : > { %5303 = vmatprep.subr.bf16.mxu1 %v5679_v44 }
 0x50c   : > { %v3475_v47 = vpop.f32.mrf.mxu0  ;;  %5304 = vmatpush3.bf16.msra.mxu1 %v5680_v48 }
 0x50d   : > { %v3476_v54 = vadd.f32 %v3475_v47, %v1976_v46  ;;  %v3516_v55 = vpop.f32.mrf.mxu1  ;;  %5305 = vmatprep.subr.bf16.mxu1 %v5681_v49 }
 0x50e   : > { %v3477_v57 = vpop.f32.mrf.mxu0 }
 0x50f   : > { %v6803_v59 = vadd.f32 %v3516_v55, %v3476_v54  ;;  %v3478_v60 = vadd.f32 %v3477_v57, %v1980_v50  ;;  %v3518_v61 = vpop.f32.mrf.mxu1  ;;  %v3802_v54 = vrot.slane %v6729_v52, %v6788_v1  ;;  %v3852_v57 = vrot.slane %v6731_v53, %v6788_v1 }
 0x510   : > { %v3479_v51 = vpop.f32.mrf.mxu0  ;;  %5306 = vmatpush3.bf16.msra.mxu1 %v5682_v56 }
 0x511   : > { %v3629_v27 = vrot.slane %v6803_v59, 4  ;;  %v3665_v62 = vmul.f32 %v6803_v59, %v6803_v59  ;;  %v6808_v0 = vadd.f32 %v3518_v61, %v3478_v60  ;;  %v3520_v2 = vpop.f32.mrf.mxu1  ;;  %5307 = vmatprep.subr.bf16.mxu1 %v5683_v58  ;;  %v3806_v60 = vrot.slane %v6729_v52, %v6793_v45 }
 0x512   : > { %v3480_v41 = vpop.f32.mrf.mxu0  ;;  %v3856_v2 = vrot.slane %v6731_v53, %v6793_v45 }
 0x513   : > { %v3630_v4 = vadd.f32 %v3629_v27, %v6803_v59  ;;  %v3693_v5 = vrot.slane %v3665_v62, 4  ;;  %v3635_v6 = vrot.slane %v6808_v0, 4  ;;  %v3666_v8 = vmul.f32 %v6808_v0, %v6808_v0  ;;  %v3521_v7 = vpop.f32.mrf.mxu1 }
 0x514   : > { %5308 = vmatpush3.bf16.msra.mxu1 %v5684_v3  ;;  %v6836_v7 = vsub.s32 7, %v6563_v40 }
 0x515   : > { %v3631_v43 = vrot.slane %v3630_v4, 2  ;;  %v3694_v32 = vadd.f32 %v3693_v5, %v3665_v62  ;;  %v3636_v31 = vadd.f32 %v3635_v6, %v6808_v0  ;;  %v3699_v34 = vrot.slane %v3666_v8, 4  ;;  %5309 = vmatprep.subr.bf16.mxu1 %v5685_v42 }
 0x517   : > { %v3632_v36 = vadd.f32 %v3631_v43, %v3630_v4  ;;  %v3695_v37 = vrot.slane %v3694_v32, 2  ;;  %v3637_v12 = vrot.slane %v3636_v31, 2  ;;  %v3700_v13 = vadd.f32 %v3699_v34, %v3666_v8 }
 0x518   : > { %5310 = vmatpush3.bf16.msra.mxu1 %v5686_v9  ;;  %v1988_v43 = vrot.slane %v6676_v10, %v6836_v7 }
 0x519   : > { %v3633_v14 = vrot.slane %v3632_v36, 1  ;;  %v3696_v15 = vadd.f32 %v3695_v37, %v3694_v32  ;;  %v3638_v17 = vadd.f32 %v3637_v12, %v3636_v31  ;;  %v3701_v18 = vrot.slane %v3700_v13, 2  ;;  %5311 = vmatprep.subr.bf16.mxu1 %v5687_v33 }
 0x51b   : > { %v3634_v20 = vadd.f32 %v3633_v14, %v3632_v36  ;;  %v3697_v22 = vrot.slane %v3696_v15, 1  ;;  %v3639_v16 = vrot.slane %v3638_v17, 1  ;;  %v3702_v23 = vadd.f32 %v3701_v18, %v3700_v13 }
 0x51c   : > { %5312 = vmatpush3.bf16.msra.mxu1 %v5688_v11 }
 0x51d   : > { %v3657_v24 = vmul.f32 0.125, %v3634_v20  ;;  %v3698_v26 = vadd.f32 %v3697_v22, %v3696_v15  ;;  %v3640_v25 = vadd.f32 %v3639_v16, %v3638_v17  ;;  %v3703_v63 = vrot.slane %v3702_v23, 1  ;;  %5313 = vmatprep.subr.bf16.mxu1 %v5689_v19 }
 0x51f   : > { %v3721_v28 = vmul.f32 0.125, %v3698_v26  ;;  %v3729_v30 = vmul.f32 %v3657_v24, %v3657_v24  ;;  %v3658_v38 = vmul.f32 0.125, %v3640_v25  ;;  %v3704_v39 = vadd.f32 %v3703_v63, %v3702_v23 }
 0x520   : > { %5314 = vmatpush3.bf16.msra.mxu1 %v5690_v21  ;;  %v3753_v55 = vsub.f32 %v6803_v59, %v3657_v24 }
 0x521   : > { %v3737_v35 = vsub.f32 %v3721_v28, %v3729_v30  ;;  %v3730_v29 = vmul.f32 %v3658_v38, %v3658_v38  ;;  %v3722_v44 = vmul.f32 0.125, %v3704_v39  ;;  %v3754_v61 = vsub.f32 %v6808_v0, %v3658_v38 }
 0x522   : > { %v6833_v0 = vsub.s32 6, %v6563_v40 }
 0x523   : > { %v3745_v46 = vmax.f32 %v3737_v35, 0.0  ;;  %v3738_v48 = vsub.f32 %v3722_v44, %v3730_v29 }
 0x524   : > { %v1984_v45 = vrot.slane %v6676_v10, %v6833_v0 }
 0x525   : > { %v3761_v49 = vadd.f32 0.8, %v3745_v46  ;;  %v3746_v50 = vmax.f32 %v3738_v48, 0.0 }
 0x527   : > { %5711 = vrsqrt.f32 %v3761_v49  ;;  %v3762_v47 = vadd.f32 0.8, %v3746_v50 }
 0x529   : > { %5713 = vrsqrt.f32 %v3762_v47 }
 0x534   : > { %v5712_v56 = vpop.eup %5711 }
 0x535   : > { %v3777_v58 = vmul.f32 %v5712_v56, %v3753_v55 }
 0x536   : > { %v5714_v51 = vpop.eup %5713 }
 0x537   : > { %v3827_v27 = vmul.f32 %v3802_v54, %v3777_v58  ;;  %v3778_v62 = vmul.f32 %v5714_v51, %v3754_v61 }
 0x539   : > { %v3877_v3 = vadd.f32 %v3852_v57, %v3827_v27  ;;  %v3828_v41 = vmul.f32 %v3806_v60, %v3778_v62 }
 0x53b   : > { %v3893_v42 = vmul.f32 0.2, %v3877_v3  ;;  %v3878_v59 = vadd.f32 %v3856_v2, %v3828_v41  ;;  %vm3885_vm13 = vcmp.gt.f32.partialorder %v3877_v3, 0.0  ;;  %v3810_v41 = vrot.slane %v6729_v52, %v6833_v0 }
 0x53d   : > { %vm3886_vm14 = vcmp.gt.f32.partialorder %v3878_v59, 0.0  ;;  %v3894_v4 = vmul.f32 0.2, %v3878_v59  ;;  %v3901_v1 = vsel %vm3885_vm13, %v3877_v3, %v3893_v42 }
 0x53e   : > { %v3909_v8 = vpack.c.bf16 %v3901_v1, %v3901_v1 }
 0x53f   : > { %v3902_v5 = vsel %vm3886_vm14, %v3878_v59, %v3894_v4  ;;  %v3860_v4 = vrot.slane %v6731_v53, %v6833_v0 }
 0x540   : > { %v3910_v6 = vpack.c.bf16 %v3902_v5, %v3902_v5  ;;  %v3814_v5 = vrot.slane %v6729_v52, %v6836_v7 }
 0x542   : > { %4544 = vmatprep.mubr.bf16.mxu0 %v3910_v6 }
 0x543   : > { %4545 = vmatmul.mubr.bf16.vlgmr.msra.gmra.mxu0 %v3909_v8 }
 0x54c   : > { %v3557_v32 = vpop.f32.mrf.mxu0 }
 0x54d   : > { %v3558_v31 = vadd.f32 %v3557_v32, %v1984_v45  ;;  %v3598_v34 = vpop.f32.mrf.mxu1  ;;  %v3864_v32 = vrot.slane %v6731_v53, %v6836_v7  ;;  %v5163_v53 = vld [vmem:[%s693_s29] ss:$0 sm:$0xff] }
 0x54e   : > { %v3559_v9 = vpop.f32.mrf.mxu0 }
 0x54f   : > { %v3599_v33 = vadd.f32 %v3598_v34, %v3558_v31  ;;  %v3560_v36 = vadd.f32 %v3559_v9, %v1988_v43  ;;  %v3600_v37 = vpop.f32.mrf.mxu1 }
 0x550   : > { %v3561_v12 = vpop.f32.mrf.mxu0 }
 0x551   : > { %v3641_v13 = vrot.slane %v3599_v33, 4  ;;  %v3667_v14 = vmul.f32 %v3599_v33, %v3599_v33  ;;  %v3601_v15 = vadd.f32 %v3600_v37, %v3560_v36  ;;  %v3602_v17 = vpop.f32.mrf.mxu1 }
 0x552   : > { %v3562_v40 = vpop.f32.mrf.mxu0 }
 0x553   : > { %v3642_v18 = vadd.f32 %v3641_v13, %v3599_v33  ;;  %v3705_v11 = vrot.slane %v3667_v14, 4  ;;  %v3647_v19 = vrot.slane %v3601_v15, 4  ;;  %v3668_v20 = vmul.f32 %v3601_v15, %v3601_v15  ;;  %v3603_v22 = vpop.f32.mrf.mxu1 }
 0x555   : > { %v3643_v16 = vrot.slane %v3642_v18, 2  ;;  %v3706_v10 = vadd.f32 %v3705_v11, %v3667_v14  ;;  %v3648_v23 = vadd.f32 %v3647_v19, %v3601_v15  ;;  %v3711_v24 = vrot.slane %v3668_v20, 4 }
 0x557   : > { %v3644_v26 = vadd.f32 %v3643_v16, %v3642_v18  ;;  %v3707_v25 = vrot.slane %v3706_v10, 2  ;;  %v3649_v63 = vrot.slane %v3648_v23, 2  ;;  %v3712_v21 = vadd.f32 %v3711_v24, %v3668_v20 }
 0x559   : > { %v3645_v28 = vrot.slane %v3644_v26, 1  ;;  %v3708_v30 = vadd.f32 %v3707_v25, %v3706_v10  ;;  %v3650_v38 = vadd.f32 %v3649_v63, %v3648_v23  ;;  %v3713_v39 = vrot.slane %v3712_v21, 2 }
 0x55b   : > { %v3646_v35 = vadd.f32 %v3645_v28, %v3644_v26  ;;  %v3709_v29 = vrot.slane %v3708_v30, 1  ;;  %v3651_v44 = vrot.slane %v3650_v38, 1  ;;  %v3714_v46 = vadd.f32 %v3713_v39, %v3712_v21 }
 0x55d   : > { %v3659_v48 = vmul.f32 0.125, %v3646_v35  ;;  %v3710_v49 = vadd.f32 %v3709_v29, %v3708_v30  ;;  %v3652_v50 = vadd.f32 %v3651_v44, %v3650_v38  ;;  %v3715_v47 = vrot.slane %v3714_v46, 1 }
 0x55f   : > { %v3723_v54 = vmul.f32 0.125, %v3710_v49  ;;  %v3731_v55 = vmul.f32 %v3659_v48, %v3659_v48  ;;  %v3660_v56 = vmul.f32 0.125, %v3652_v50  ;;  %v3716_v57 = vadd.f32 %v3715_v47, %v3714_v46 }
 0x560   : > { %v3755_v42 = vsub.f32 %v3599_v33, %v3659_v48 }
 0x561   : > { %v3739_v58 = vsub.f32 %v3723_v54, %v3731_v55  ;;  %v3732_v60 = vmul.f32 %v3660_v56, %v3660_v56  ;;  %v3724_v61 = vmul.f32 0.125, %v3716_v57  ;;  %v3756_v6 = vsub.f32 %v3601_v15, %v3660_v56 }
 0x563   : > { %v3747_v51 = vmax.f32 %v3739_v58, 0.0  ;;  %v3740_v27 = vsub.f32 %v3724_v61, %v3732_v60 }
 0x565   : > { %v3763_v62 = vadd.f32 0.8, %v3747_v51  ;;  %v3748_v2 = vmax.f32 %v3740_v27, 0.0 }
 0x567   : > { %5715 = vrsqrt.f32 %v3763_v62  ;;  %v3764_v3 = vadd.f32 0.8, %v3748_v2 }
 0x569   : > { %5717 = vrsqrt.f32 %v3764_v3 }
 0x574   : > { %v5716_v59 = vpop.eup %5715 }
 0x575   : > { %v3779_v1 = vmul.f32 %v5716_v59, %v3755_v42 }
 0x576   : > { %v5718_v8 = vpop.eup %5717 }
 0x577   : > { %v3829_v45 = vmul.f32 %v3810_v41, %v3779_v1  ;;  %v3780_v43 = vmul.f32 %v5718_v8, %v3756_v6 }
 0x579   : > { %v3879_v31 = vadd.f32 %v3860_v4, %v3829_v45  ;;  %v3830_v34 = vmul.f32 %v3814_v5, %v3780_v43 }
 0x57b   : > { %v3895_v9 = vmul.f32 0.2, %v3879_v31  ;;  %v3880_v33 = vadd.f32 %v3864_v32, %v3830_v34  ;;  %vm3887_vm15 = vcmp.gt.f32.partialorder %v3879_v31, 0.0 }
 0x57d   : > { %vm3888_vm0 = vcmp.gt.f32.partialorder %v3880_v33, 0.0  ;;  %v3896_v36 = vmul.f32 0.2, %v3880_v33  ;;  %v3903_v0 = vsel %vm3887_vm15, %v3879_v31, %v3895_v9 }
 0x57e   : > { %v3911_v13 = vpack.c.bf16 %v3903_v0, %v3903_v0 }
 0x57f   : > { %v3904_v37 = vsel %vm3888_vm0, %v3880_v33, %v3896_v36 }
 0x580   : > { %v3912_v12 = vpack.c.bf16 %v3904_v37, %v3904_v37 }
 0x582   : > { %4584 = vmatprep.mubr.bf16.mxu1 %v3912_v12 }
 0x583   : > { %4585 = vmatmul.mubr.bf16.vlgmr.msra.gmra.mxu1 %v3911_v13  ;;  %v5249_v52 = vpop.f32.mrf.mxu0 }
 0x585   : > { %v5250_v14 = vpop.f32.mrf.mxu0 }
 0x586   : > { %v5251_v15 = vadd.f32 %v5250_v14, %v5249_v52 }
 0x587   : > { %v5252_v17 = vpop.f32.mrf.mxu0 }
 0x588   : > { %v4467_v11 = vadd.f32 %v5251_v15, %v5163_v53 }
 0x589   : > { %v5253_v40 = vpop.f32.mrf.mxu0 }
 0x5c3   : > { %v5271_v7 = vpop.f32.mrf.mxu1 }
 0x5c5   : > { %v5272_v18 = vpop.f32.mrf.mxu1 }
 0x5c6   : > { %v5273_v19 = vadd.f32 %v5272_v18, %v5271_v7 }
 0x5c7   : > { %v5274_v20 = vpop.f32.mrf.mxu1 }
 0x5c8   : > { %v4507_v22 = vadd.f32 %v5273_v19, %v4467_v11 }
 0x5c9   : > { %v5275_v16 = vpop.f32.mrf.mxu1 }
 0x603   : > { %v5293_v10 = vpop.f32.mrf.mxu0 }
 0x605   : > { %v5294_v23 = vpop.f32.mrf.mxu0 }
 0x606   : > { %v5295_v24 = vadd.f32 %v5294_v23, %v5293_v10 }
 0x607   : > { %v5296_v26 = vpop.f32.mrf.mxu0 }
 0x608   : > { %v4547_v25 = vadd.f32 %v5295_v24, %v4507_v22 }
 0x609   : > { %v5297_v63 = vpop.f32.mrf.mxu0 }
 0x643   : > { %v5315_v21 = vpop.f32.mrf.mxu1 }
 0x645   : > { %v5316_v28 = vpop.f32.mrf.mxu1 }
 0x646   : > { %v5317_v30 = vadd.f32 %v5316_v28, %v5315_v21 }
 0x647   : > { %v5318_v38 = vpop.f32.mrf.mxu1 }
 0x648   : > { %v4587_v39 = vadd.f32 %v5317_v30, %v4547_v25 }
 0x649   : > { %v5319_v35 = vpop.f32.mrf.mxu1 }
 0x64a   : > { %5719 = vtanh.f32 %v4587_v39 }
 0x657   : > { %v5720_v29 = vpop.eup %5719 }
 0x658   : > { %4593 = vst [vmem:[%s750_s30] sm:$0xff] %v5720_v29 }
 0x659 PF: > { %s6948_s3 = sld [smem:[#allocation31_spill]]  ;;  %p31_p3 = scmp.ge.s32.totalorder %s6371_s20, 4  }
 0x65a   : > { %s6949_s24 = smov %s6143_s25  ;;  %s6950_s25 = smov %s6147_s26 }
 0x65b   : > { %s6952_s27 = smov %s6371_s20  ;;  %33 = sbr.rel (!%p31_p3) target bundleno = 19 (0x13), region = 186 }
 0x65f   : > { %s6951_s26 = smov %s6948_s3 }
 0x660   :  { %4613 = vsyncpa [#allocation3], 1 }
 0x661   :  { %4615 = vsyncpa [#allocation3 + $0x1], 1 }
 0x662   :  { %4616 = vsyncpa [#allocation5], 1 }
 0x663   :  { %4617 = vsyncpa [#allocation8], 1 }
 0x664   :  { %4618 = vsyncpa [#allocation11], 1 }
 0x665   :  { %4619 = vsyncpa [#allocation14], 1 }
 0x666   :  { %4620 = vsyncpa [#allocation17], 1 }
 0x667   :  { %4621 = vsyncpa [#allocation20], 1 }

</bundles_post_ra>
